<compile_context>
chip_gen: v6e
topology: v6e:2x2x1
jax: 0.10.0
libtpu: 0.0.40
codegen_flags: <defaults>
</compile_context>

<pallas_src>
import functools

import jax
import jax.numpy as jnp
from jax.experimental import pallas as pl
from jax.experimental.pallas import tpu as pltpu


# ----------------------------------------------------------------------------
# Kernel 1: fused packed-QKV multi-head self-attention + LayerNorm.
# One grid step processes a block of Bt batch elements; all weights are
# VMEM-resident full blocks (constant index_map -> no re-DMA across steps).
# ----------------------------------------------------------------------------
def mha_layernorm_kernel(x_ref, wqkv_ref, bqkv_ref, wo_ref, bo_ref,
                         gamma_ref, beta_ref, o_ref, *, num_heads, eps=1e-5):
    Bt, S, D = x_ref.shape
    H = num_heads
    dh = D // H

    x = x_ref[...].reshape(Bt * S, D).astype(jnp.bfloat16)

    # Packed QKV projection: one (Bt*S, D) @ (D, 3D) MXU GEMM.
    # The 1/sqrt(dh) attention scale is already folded into the Wq / bq slice.
    qkv = jnp.dot(x, wqkv_ref[...], preferred_element_type=jnp.float32)
    qkv = qkv + bqkv_ref[...]

    def split_heads(m):                     # (Bt*S, D) -> (Bt*H, S, dh)
        return m.reshape(Bt, S, H, dh).transpose(0, 2, 1, 3).reshape(Bt * H, S, dh)

    q = split_heads(qkv[:, :D]).astype(jnp.bfloat16)
    k = split_heads(qkv[:, D:2 * D]).astype(jnp.bfloat16)
    v = split_heads(qkv[:, 2 * D:]).astype(jnp.bfloat16)

    # Heads live on a batch axis -> batched einsums, no per-head lane slices.
    s = jnp.einsum('gqd,gkd->gqk', q, k, preferred_element_type=jnp.float32)
    s = s - jnp.max(s, axis=-1, keepdims=True)
    p = jnp.exp(s)
    p = p * pl.reciprocal(jnp.sum(p, axis=-1, keepdims=True), approx=True)
    ctx = jnp.einsum('gqk,gkd->gqd', p.astype(jnp.bfloat16), v,
                     preferred_element_type=jnp.float32)

    attn = ctx.reshape(Bt, H, S, dh).transpose(0, 2, 1, 3).reshape(Bt * S, D)

    # Output projection.
    y = jnp.dot(attn.astype(jnp.bfloat16), wo_ref[...],
                preferred_element_type=jnp.float32) + bo_ref[...]

    # LayerNorm (f32 math) over the latent dimension, eps=1e-5, affine.
    mu = jnp.mean(y, axis=-1, keepdims=True)
    var = jnp.mean(jnp.square(y - mu), axis=-1, keepdims=True)
    y = (y - mu) * jax.lax.rsqrt(var + eps)
    y = y * gamma_ref[...] + beta_ref[...]

    o_ref[...] = y.reshape(Bt, S, D)


def mha_layernorm(x, params, num_heads, block_b):
    B, S, D = x.shape
    assert B % block_b == 0 and D % num_heads == 0
    kern = functools.partial(mha_layernorm_kernel, num_heads=num_heads)

    def full(arr):
        shape = arr.shape
        return pl.BlockSpec(shape, lambda b: (0,) * len(shape))

    return pl.pallas_call(
        kern,
        out_shape=jax.ShapeDtypeStruct((B, S, D), jnp.float32),
        grid=(B // block_b,),
        in_specs=[
            pl.BlockSpec((block_b, S, D), lambda b: (b, 0, 0)),   # x block
            full(params["wqkv"]), full(params["bqkv"]),
            full(params["wo"]), full(params["bo"]),
            full(params["gamma"]), full(params["beta"]),
        ],
        out_specs=pl.BlockSpec((block_b, S, D), lambda b: (b, 0, 0)),
        compiler_params=pltpu.CompilerParams(
            dimension_semantics=("parallel",),
            vmem_limit_bytes=32 * 1024 * 1024),
    )(x, params["wqkv"], params["bqkv"], params["wo"], params["bo"],
      params["gamma"], params["beta"])


# ----------------------------------------------------------------------------
# Kernel 2: fused classifier head.
# conv3x3(s2,p1) as an im2col GEMM (+bias,+ReLU) -> global average pool ->
# final Linear, for a block of batch elements per grid step; only the tiny
# (Bt, 1, num_class) logits block hits HBM.
# ----------------------------------------------------------------------------
def classifier_head_kernel(p_ref, w_ref, b_ref, fcw_ref, fcb_ref, o_ref):
    Bt, HW, K = p_ref.shape
    patches = p_ref[...].reshape(Bt * HW, K).astype(jnp.bfloat16)   # (Bt*HW, 9)
    conv = jnp.dot(patches, w_ref[...], preferred_element_type=jnp.float32)
    conv = jnp.maximum(conv + b_ref[...], 0.0)                      # (Bt*HW, Cout)
    pooled = jnp.mean(conv.reshape(Bt, HW, conv.shape[-1]), axis=1) # (Bt, Cout)
    logits = jnp.dot(pooled, fcw_ref[...],
                     preferred_element_type=jnp.float32) + fcb_ref[...]
    o_ref[...] = logits.reshape(Bt, 1, logits.shape[-1])


def classifier_head(y, params, block_b):
    # im2col of a single channel (3x3, stride 2, pad 1).  The conv weight was
    # pre-summed over its 3 identical input channels, so the repeat(1,3,1,1)
    # broadcast is never materialized and K is 9 instead of 27.
    B, Hh, Ww = y.shape
    assert B % block_b == 0
    Ho = (Hh + 2 - 3) // 2 + 1
    Wo = (Ww + 2 - 3) // 2 + 1
    yp = jnp.pad(y, ((0, 0), (1, 1), (1, 1)))
    cols = [yp[:, dy:dy + 2 * Ho - 1:2, dx:dx + 2 * Wo - 1:2]
            for dy in range(3) for dx in range(3)]
    patches = jnp.stack(cols, axis=-1).reshape(B, Ho * Wo, 9)

    num_class = params["fc_w"].shape[1]

    def full(arr):
        shape = arr.shape
        return pl.BlockSpec(shape, lambda b: (0,) * len(shape))

    logits = pl.pallas_call(
        classifier_head_kernel,
        out_shape=jax.ShapeDtypeStruct((B, 1, num_class), jnp.float32),
        grid=(B // block_b,),
        in_specs=[
            pl.BlockSpec((block_b, Ho * Wo, 9), lambda b: (b, 0, 0)),
            full(params["conv_w_gemm"]), full(params["conv_b"]),
            full(params["fc_w"]), full(params["fc_b"]),
        ],
        out_specs=pl.BlockSpec((block_b, 1, num_class), lambda b: (b, 0, 0)),
        compiler_params=pltpu.CompilerParams(
            dimension_semantics=("parallel",),
            vmem_limit_bytes=32 * 1024 * 1024),
    )(patches, params["conv_w_gemm"], params["conv_b"],
      params["fc_w"], params["fc_b"])
    return logits.reshape(B, num_class)


# ----------------------------------------------------------------------------
# Full forward pass.
# ----------------------------------------------------------------------------
def _pick_block_b(B, cap=16):
    """Largest divisor of B that is <= cap (batch elements per grid step)."""
    bt = 1
    for d in range(1, min(B, cap) + 1):
        if B % d == 0:
            bt = d
    return bt


def attention_classifier_forward(embed, params, num_heads, block_b=None):
    B, S, D = embed.shape
    if block_b is None:
        block_b = _pick_block_b(B)
    y = mha_layernorm(embed, params, num_heads, block_b)     # (B, S, D) f32
    return classifier_head(y, params, block_b)               # (B, num_class)


# ----------------------------------------------------------------------------
# Deterministic parameter construction (synthetic weights, no checkpoint).
# Weights are pre-packed / pre-folded for the kernels:
#   wqkv = [Wq * 1/sqrt(dh) | Wk | Wv]  (bf16),  bqkv likewise (f32)
#   conv_w_gemm = sum_over_Cin(conv_w) reshaped to (9, Cout)   (bf16)
# ----------------------------------------------------------------------------
def init_params(key, latent_dim, num_heads, num_class, conv_ch=16):
    ks = jax.random.split(key, 8)
    sd = 0.02
    D = latent_dim
    dh = D // num_heads
    scale = 1.0 / (dh ** 0.5)

    wq = sd * jax.random.normal(ks[0], (D, D), jnp.float32)
    wk = sd * jax.random.normal(ks[1], (D, D), jnp.float32)
    wv = sd * jax.random.normal(ks[2], (D, D), jnp.float32)
    wo = sd * jax.random.normal(ks[3], (D, D), jnp.float32)
    bq = jnp.zeros((D,), jnp.float32)
    bk = jnp.zeros((D,), jnp.float32)
    bv = jnp.zeros((D,), jnp.float32)

    wqkv = jnp.concatenate([wq * scale, wk, wv], axis=1).astype(jnp.bfloat16)
    bqkv = jnp.concatenate([bq * scale, bk, bv])[None, :]        # (1, 3D) f32

    conv_w = sd * jax.random.normal(ks[4], (conv_ch, 3, 3, 3), jnp.float32)
    # Sum over identical input channels, flatten (ky, kx) -> (9, Cout) GEMM weight.
    conv_w_gemm = conv_w.sum(axis=1).reshape(conv_ch, 9).T.astype(jnp.bfloat16)

    return {
        "wqkv": wqkv,
        "bqkv": bqkv,
        "wo": wo.astype(jnp.bfloat16),
        "bo": jnp.zeros((1, D), jnp.float32),
        "gamma": jnp.ones((1, D), jnp.float32),
        "beta": jnp.zeros((1, D), jnp.float32),
        "conv_w_gemm": conv_w_gemm,
        "conv_b": jnp.zeros((1, conv_ch), jnp.float32),
        "fc_w": sd * jax.random.normal(ks[5], (conv_ch, num_class), jnp.float32),
        "fc_b": jnp.zeros((1, num_class), jnp.float32),
    }


if __name__ == "__main__":
    # Small shapes consistent with the module: embed is (batch, h, w=latent_dim).
    batch, seq, latent_dim = 2, 8, 128     # module default latent_dim=512, kept small
    num_heads, num_class = 8, 5

    key = jax.random.PRNGKey(0)
    k_x, k_p = jax.random.split(key)
    embed = jax.random.normal(k_x, (batch, seq, latent_dim), jnp.float32)
    params = init_params(k_p, latent_dim, num_heads, num_class)

    fwd = jax.jit(functools.partial(attention_classifier_forward,
                                    num_heads=num_heads))
    out = jax.block_until_ready(fwd(embed, params))
    assert out.shape == (batch, num_class)
    assert bool(jnp.all(jnp.isfinite(out)))
    print("KERNEL_OK")
</pallas_src>

<mosaic_0001>
module attributes {stable_mosaic.version = 11 : i64} {
  func.func @mha_layernorm_kernel(%arg0: i32, %arg1: memref<2x8x128xf32, #tpu.memory_space<vmem>>, %arg2: memref<128x384xbf16, #tpu.memory_space<vmem>>, %arg3: memref<1x384xf32, #tpu.memory_space<vmem>>, %arg4: memref<128x128xbf16, #tpu.memory_space<vmem>>, %arg5: memref<1x128xf32, #tpu.memory_space<vmem>>, %arg6: memref<1x128xf32, #tpu.memory_space<vmem>>, %arg7: memref<1x128xf32, #tpu.memory_space<vmem>>, %arg8: memref<2x8x128xf32, #tpu.memory_space<vmem>>) attributes {dimension_semantics = [#tpu.dimension_semantics<parallel>], iteration_bounds = array<i64: 1>, scalar_prefetch = 0 : i64, scratch_operands = 0 : i64, tpu.core_type = #tpu.core_type<tc>, window_params = [{transform_indices = @transform_0, window_bounds = array<i64: 2, 8, 128>}, {pipeline_mode = #tpu.pipeline_mode<synchronous>, transform_indices = @transform_1, window_bounds = array<i64: 128, 384>}, {pipeline_mode = #tpu.pipeline_mode<synchronous>, transform_indices = @transform_2, window_bounds = array<i64: 1, 384>}, {pipeline_mode = #tpu.pipeline_mode<synchronous>, transform_indices = @transform_3, window_bounds = array<i64: 128, 128>}, {pipeline_mode = #tpu.pipeline_mode<synchronous>, transform_indices = @transform_4, window_bounds = array<i64: 1, 128>}, {pipeline_mode = #tpu.pipeline_mode<synchronous>, transform_indices = @transform_5, window_bounds = array<i64: 1, 128>}, {pipeline_mode = #tpu.pipeline_mode<synchronous>, transform_indices = @transform_6, window_bounds = array<i64: 1, 128>}, {transform_indices = @transform_7, window_bounds = array<i64: 2, 8, 128>}]} {
    %c0 = arith.constant 0 : index
    %c0_0 = arith.constant 0 : index
    %c0_1 = arith.constant 0 : index
    %0 = vector.load %arg1[%c0, %c0_0, %c0_1] : memref<2x8x128xf32, #tpu.memory_space<vmem>>, vector<2x8x128xf32>
    %1 = vector.shape_cast %0 : vector<2x8x128xf32> to vector<16x128xf32>
    %2 = arith.truncf %1 : vector<16x128xf32> to vector<16x128xbf16>
    %c0_2 = arith.constant 0 : index
    %c0_3 = arith.constant 0 : index
    %3 = vector.load %arg2[%c0_2, %c0_3] : memref<128x384xbf16, #tpu.memory_space<vmem>>, vector<128x384xbf16>
    %cst = arith.constant dense<0.000000e+00> : vector<16x384xf32>
    %4 = tpu.matmul %2, %3, %cst {dimension_numbers = #tpu.dot_dimension_numbers<[1], [0], [0], [1], [0, 0, 1, 1], [], []>} : vector<16x128xbf16>, vector<128x384xbf16>, vector<16x384xf32> -> vector<16x384xf32>
    %c0_4 = arith.constant 0 : index
    %c0_5 = arith.constant 0 : index
    %5 = vector.load %arg3[%c0_4, %c0_5] : memref<1x384xf32, #tpu.memory_space<vmem>>, vector<1x384xf32>
    %6 = vector.broadcast %5 : vector<1x384xf32> to vector<16x384xf32>
    %7 = arith.addf %4, %6 : vector<16x384xf32>
    %8 = vector.extract_strided_slice %7 {offsets = [0, 0], sizes = [16, 128], strides = [1, 1]} : vector<16x384xf32> to vector<16x128xf32>
    %9 = vector.shape_cast %8 : vector<16x128xf32> to vector<2x8x8x16xf32>
    %10 = tpu.transpose %9, [0, 2, 1, 3] : vector<2x8x8x16xf32> -> vector<2x8x8x16xf32>
    %11 = vector.shape_cast %10 : vector<2x8x8x16xf32> to vector<16x8x16xf32>
    %12 = arith.truncf %11 : vector<16x8x16xf32> to vector<16x8x16xbf16>
    %13 = vector.extract_strided_slice %7 {offsets = [0, 128], sizes = [16, 128], strides = [1, 1]} : vector<16x384xf32> to vector<16x128xf32>
    %14 = vector.shape_cast %13 : vector<16x128xf32> to vector<2x8x8x16xf32>
    %15 = tpu.transpose %14, [0, 2, 1, 3] : vector<2x8x8x16xf32> -> vector<2x8x8x16xf32>
    %16 = vector.shape_cast %15 : vector<2x8x8x16xf32> to vector<16x8x16xf32>
    %17 = arith.truncf %16 : vector<16x8x16xf32> to vector<16x8x16xbf16>
    %18 = vector.extract_strided_slice %7 {offsets = [0, 256], sizes = [16, 128], strides = [1, 1]} : vector<16x384xf32> to vector<16x128xf32>
    %19 = vector.shape_cast %18 : vector<16x128xf32> to vector<2x8x8x16xf32>
    %20 = tpu.transpose %19, [0, 2, 1, 3] : vector<2x8x8x16xf32> -> vector<2x8x8x16xf32>
    %21 = vector.shape_cast %20 : vector<2x8x8x16xf32> to vector<16x8x16xf32>
    %22 = arith.truncf %21 : vector<16x8x16xf32> to vector<16x8x16xbf16>
    "tpu.trace_start"() <{level = 10 : i32, message = "gqd,gkd->gqk"}> : () -> ()
    %cst_6 = arith.constant dense<0.000000e+00> : vector<16x8x8xf32>
    %23 = tpu.matmul %12, %17, %cst_6 {dimension_numbers = #tpu.dot_dimension_numbers<[2], [2], [1], [1], [0, 0, 0, 1, 1, 1], [0], [0]>} : vector<16x8x16xbf16>, vector<16x8x16xbf16>, vector<16x8x8xf32> -> vector<16x8x8xf32>
    "tpu.trace_stop"() : () -> ()
    %cst_7 = arith.constant dense<0xFF800000> : vector<16x8xf32>
    %24 = vector.multi_reduction <maximumf>, %23, %cst_7 [2] : vector<16x8x8xf32> to vector<16x8xf32>
    %25 = vector.shape_cast %24 : vector<16x8xf32> to vector<16x8x1xf32>
    %26 = vector.broadcast %25 : vector<16x8x1xf32> to vector<16x8x8xf32>
    %27 = arith.subf %23, %26 : vector<16x8x8xf32>
    %28 = math.exp %27 : vector<16x8x8xf32>
    %cst_8 = arith.constant dense<0.000000e+00> : vector<16x8xf32>
    %29 = vector.multi_reduction <add>, %28, %cst_8 [2] : vector<16x8x8xf32> to vector<16x8xf32>
    %30 = vector.shape_cast %29 : vector<16x8xf32> to vector<16x8x1xf32>
    %31 = tpu.reciprocal %30 {approx = true} : vector<16x8x1xf32> -> vector<16x8x1xf32>
    %32 = vector.broadcast %31 : vector<16x8x1xf32> to vector<16x8x8xf32>
    %33 = arith.mulf %28, %32 : vector<16x8x8xf32>
    %34 = arith.truncf %33 : vector<16x8x8xf32> to vector<16x8x8xbf16>
    "tpu.trace_start"() <{level = 10 : i32, message = "gqk,gkd->gqd"}> : () -> ()
    %cst_9 = arith.constant dense<0.000000e+00> : vector<16x8x16xf32>
    %35 = tpu.matmul %34, %22, %cst_9 {dimension_numbers = #tpu.dot_dimension_numbers<[2], [1], [1], [2], [0, 0, 0, 1, 1, 2], [0], [0]>} : vector<16x8x8xbf16>, vector<16x8x16xbf16>, vector<16x8x16xf32> -> vector<16x8x16xf32>
    "tpu.trace_stop"() : () -> ()
    %36 = vector.shape_cast %35 : vector<16x8x16xf32> to vector<2x8x8x16xf32>
    %37 = tpu.transpose %36, [0, 2, 1, 3] : vector<2x8x8x16xf32> -> vector<2x8x8x16xf32>
    %38 = vector.shape_cast %37 : vector<2x8x8x16xf32> to vector<16x128xf32>
    %39 = arith.truncf %38 : vector<16x128xf32> to vector<16x128xbf16>
    %c0_10 = arith.constant 0 : index
    %c0_11 = arith.constant 0 : index
    %40 = vector.load %arg4[%c0_10, %c0_11] : memref<128x128xbf16, #tpu.memory_space<vmem>>, vector<128x128xbf16>
    %cst_12 = arith.constant dense<0.000000e+00> : vector<16x128xf32>
    %41 = tpu.matmul %39, %40, %cst_12 {dimension_numbers = #tpu.dot_dimension_numbers<[1], [0], [0], [1], [0, 0, 1, 1], [], []>} : vector<16x128xbf16>, vector<128x128xbf16>, vector<16x128xf32> -> vector<16x128xf32>
    %c0_13 = arith.constant 0 : index
    %c0_14 = arith.constant 0 : index
    %42 = vector.load %arg5[%c0_13, %c0_14] : memref<1x128xf32, #tpu.memory_space<vmem>>, vector<1x128xf32>
    %43 = vector.broadcast %42 : vector<1x128xf32> to vector<16x128xf32>
    %44 = arith.addf %41, %43 : vector<16x128xf32>
    %cst_15 = arith.constant dense<0.000000e+00> : vector<16xf32>
    %45 = vector.multi_reduction <add>, %44, %cst_15 [1] : vector<16x128xf32> to vector<16xf32>
    %46 = vector.shape_cast %45 : vector<16xf32> to vector<16x1xf32>
    %cst_16 = arith.constant 1.280000e+02 : f32
    %47 = vector.broadcast %cst_16 : f32 to vector<16x1xf32>
    %48 = arith.divf %46, %47 : vector<16x1xf32>
    %49 = vector.broadcast %48 : vector<16x1xf32> to vector<16x128xf32>
    %50 = arith.subf %44, %49 : vector<16x128xf32>
    %51 = arith.mulf %50, %50 : vector<16x128xf32>
    %cst_17 = arith.constant dense<0.000000e+00> : vector<16xf32>
    %52 = vector.multi_reduction <add>, %51, %cst_17 [1] : vector<16x128xf32> to vector<16xf32>
    %53 = vector.shape_cast %52 : vector<16xf32> to vector<16x1xf32>
    %cst_18 = arith.constant 1.280000e+02 : f32
    %54 = vector.broadcast %cst_18 : f32 to vector<16x1xf32>
    %55 = arith.divf %53, %54 : vector<16x1xf32>
    %56 = vector.broadcast %48 : vector<16x1xf32> to vector<16x128xf32>
    %57 = arith.subf %44, %56 : vector<16x128xf32>
    %cst_19 = arith.constant 9.99999974E-6 : f32
    %58 = vector.broadcast %cst_19 : f32 to vector<16x1xf32>
    %59 = arith.addf %55, %58 : vector<16x1xf32>
    %60 = math.rsqrt %59 : vector<16x1xf32>
    %61 = vector.broadcast %60 : vector<16x1xf32> to vector<16x128xf32>
    %62 = arith.mulf %57, %61 : vector<16x128xf32>
    %c0_20 = arith.constant 0 : index
    %c0_21 = arith.constant 0 : index
    %63 = vector.load %arg6[%c0_20, %c0_21] : memref<1x128xf32, #tpu.memory_space<vmem>>, vector<1x128xf32>
    %64 = vector.broadcast %63 : vector<1x128xf32> to vector<16x128xf32>
    %65 = arith.mulf %62, %64 : vector<16x128xf32>
    %c0_22 = arith.constant 0 : index
    %c0_23 = arith.constant 0 : index
    %66 = vector.load %arg7[%c0_22, %c0_23] : memref<1x128xf32, #tpu.memory_space<vmem>>, vector<1x128xf32>
    %67 = vector.broadcast %66 : vector<1x128xf32> to vector<16x128xf32>
    %68 = arith.addf %65, %67 : vector<16x128xf32>
    %69 = vector.shape_cast %68 : vector<16x128xf32> to vector<2x8x128xf32>
    %c0_24 = arith.constant 0 : index
    %c0_25 = arith.constant 0 : index
    %c0_26 = arith.constant 0 : index
    %70 = vector.load %arg8[%c0_24, %c0_25, %c0_26] : memref<2x8x128xf32, #tpu.memory_space<vmem>>, vector<2x8x128xf32>
    tpu.vector_store %arg8[%c0_24, %c0_25, %c0_26], %69 {strides = array<i32>} : memref<2x8x128xf32, #tpu.memory_space<vmem>>, vector<2x8x128xf32>,
    return
  }
  func.func @transform_0(%arg0: i32) -> (i32, i32, i32) {
    %c0_i32 = arith.constant 0 : i32
    %c0_i32_0 = arith.constant 0 : i32
    %c0_i32_1 = arith.constant 0 : i32
    return %arg0, %c0_i32, %c0_i32_0 : i32, i32, i32
  }
  func.func @transform_1(%arg0: i32) -> (i32, i32) {
    %c0_i32 = arith.constant 0 : i32
    %c0_i32_0 = arith.constant 0 : i32
    %c0_i32_1 = arith.constant 0 : i32
    return %c0_i32, %c0_i32_0 : i32, i32
  }
  func.func @transform_2(%arg0: i32) -> (i32, i32) {
    %c0_i32 = arith.constant 0 : i32
    %c0_i32_0 = arith.constant 0 : i32
    %c0_i32_1 = arith.constant 0 : i32
    return %c0_i32, %c0_i32_0 : i32, i32
  }
  func.func @transform_3(%arg0: i32) -> (i32, i32) {
    %c0_i32 = arith.constant 0 : i32
    %c0_i32_0 = arith.constant 0 : i32
    %c0_i32_1 = arith.constant 0 : i32
    return %c0_i32, %c0_i32_0 : i32, i32
  }
  func.func @transform_4(%arg0: i32) -> (i32, i32) {
    %c0_i32 = arith.constant 0 : i32
    %c0_i32_0 = arith.constant 0 : i32
    %c0_i32_1 = arith.constant 0 : i32
    return %c0_i32, %c0_i32_0 : i32, i32
  }
  func.func @transform_5(%arg0: i32) -> (i32, i32) {
    %c0_i32 = arith.constant 0 : i32
    %c0_i32_0 = arith.constant 0 : i32
    %c0_i32_1 = arith.constant 0 : i32
    return %c0_i32, %c0_i32_0 : i32, i32
  }
  func.func @transform_6(%arg0: i32) -> (i32, i32) {
    %c0_i32 = arith.constant 0 : i32
    %c0_i32_0 = arith.constant 0 : i32
    %c0_i32_1 = arith.constant 0 : i32
    return %c0_i32, %c0_i32_0 : i32, i32
  }
  func.func @transform_7(%arg0: i32) -> (i32, i32, i32) {
    %c0_i32 = arith.constant 0 : i32
    %c0_i32_0 = arith.constant 0 : i32
    %c0_i32_1 = arith.constant 0 : i32
    return %arg0, %c0_i32, %c0_i32_0 : i32, i32, i32
  }
}

module attributes {stable_mosaic.version = 11 : i64} {
  func.func @classifier_head_kernel(%arg0: i32, %arg1: memref<2x256x9xf32, #tpu.memory_space<vmem>>, %arg2: memref<9x16xbf16, #tpu.memory_space<vmem>>, %arg3: memref<1x16xf32, #tpu.memory_space<vmem>>, %arg4: memref<16x5xf32, #tpu.memory_space<vmem>>, %arg5: memref<1x5xf32, #tpu.memory_space<vmem>>, %arg6: memref<2x1x5xf32, #tpu.memory_space<vmem>>) attributes {dimension_semantics = [#tpu.dimension_semantics<parallel>], iteration_bounds = array<i64: 1>, scalar_prefetch = 0 : i64, scratch_operands = 0 : i64, tpu.core_type = #tpu.core_type<tc>, window_params = [{transform_indices = @transform_0, window_bounds = array<i64: 2, 256, 9>}, {pipeline_mode = #tpu.pipeline_mode<synchronous>, transform_indices = @transform_1, window_bounds = array<i64: 9, 16>}, {pipeline_mode = #tpu.pipeline_mode<synchronous>, transform_indices = @transform_2, window_bounds = array<i64: 1, 16>}, {pipeline_mode = #tpu.pipeline_mode<synchronous>, transform_indices = @transform_3, window_bounds = array<i64: 16, 5>}, {pipeline_mode = #tpu.pipeline_mode<synchronous>, transform_indices = @transform_4, window_bounds = array<i64: 1, 5>}, {transform_indices = @transform_5, window_bounds = array<i64: 2, 1, 5>}]} {
    %c0 = arith.constant 0 : index
    %c0_0 = arith.constant 0 : index
    %c0_1 = arith.constant 0 : index
    %0 = vector.load %arg1[%c0, %c0_0, %c0_1] : memref<2x256x9xf32, #tpu.memory_space<vmem>>, vector<2x256x9xf32>
    %1 = vector.shape_cast %0 : vector<2x256x9xf32> to vector<512x9xf32>
    %2 = arith.truncf %1 : vector<512x9xf32> to vector<512x9xbf16>
    %c0_2 = arith.constant 0 : index
    %c0_3 = arith.constant 0 : index
    %3 = vector.load %arg2[%c0_2, %c0_3] : memref<9x16xbf16, #tpu.memory_space<vmem>>, vector<9x16xbf16>
    %cst = arith.constant dense<0.000000e+00> : vector<512x16xf32>
    %4 = tpu.matmul %2, %3, %cst {dimension_numbers = #tpu.dot_dimension_numbers<[1], [0], [0], [1], [0, 0, 1, 1], [], []>} : vector<512x9xbf16>, vector<9x16xbf16>, vector<512x16xf32> -> vector<512x16xf32>
    %c0_4 = arith.constant 0 : index
    %c0_5 = arith.constant 0 : index
    %5 = vector.load %arg3[%c0_4, %c0_5] : memref<1x16xf32, #tpu.memory_space<vmem>>, vector<1x16xf32>
    %6 = vector.broadcast %5 : vector<1x16xf32> to vector<512x16xf32>
    %7 = arith.addf %4, %6 : vector<512x16xf32>
    %cst_6 = arith.constant 0.000000e+00 : f32
    %8 = vector.broadcast %cst_6 : f32 to vector<512x16xf32>
    %9 = arith.maximumf %7, %8 : vector<512x16xf32>
    %10 = vector.shape_cast %9 : vector<512x16xf32> to vector<2x256x16xf32>
    %cst_7 = arith.constant dense<0.000000e+00> : vector<2x16xf32>
    %11 = vector.multi_reduction <add>, %10, %cst_7 [1] : vector<2x256x16xf32> to vector<2x16xf32>
    %cst_8 = arith.constant 2.560000e+02 : f32
    %12 = vector.broadcast %cst_8 : f32 to vector<2x16xf32>
    %13 = arith.divf %11, %12 : vector<2x16xf32>
    %c0_9 = arith.constant 0 : index
    %c0_10 = arith.constant 0 : index
    %14 = vector.load %arg4[%c0_9, %c0_10] : memref<16x5xf32, #tpu.memory_space<vmem>>, vector<16x5xf32>
    %cst_11 = arith.constant dense<0.000000e+00> : vector<2x5xf32>
    %15 = tpu.matmul %13, %14, %cst_11 {dimension_numbers = #tpu.dot_dimension_numbers<[1], [0], [0], [1], [0, 0, 1, 1], [], []>} : vector<2x16xf32>, vector<16x5xf32>, vector<2x5xf32> -> vector<2x5xf32>
    %c0_12 = arith.constant 0 : index
    %c0_13 = arith.constant 0 : index
    %16 = vector.load %arg5[%c0_12, %c0_13] : memref<1x5xf32, #tpu.memory_space<vmem>>, vector<1x5xf32>
    %17 = vector.broadcast %16 : vector<1x5xf32> to vector<2x5xf32>
    %18 = arith.addf %15, %17 : vector<2x5xf32>
    %19 = vector.shape_cast %18 : vector<2x5xf32> to vector<2x1x5xf32>
    %c0_14 = arith.constant 0 : index
    %c0_15 = arith.constant 0 : index
    %c0_16 = arith.constant 0 : index
    %20 = vector.load %arg6[%c0_14, %c0_15, %c0_16] : memref<2x1x5xf32, #tpu.memory_space<vmem>>, vector<2x1x5xf32>
    tpu.vector_store %arg6[%c0_14, %c0_15, %c0_16], %19 {strides = array<i32>} : memref<2x1x5xf32, #tpu.memory_space<vmem>>, vector<2x1x5xf32>,
    return
  }
  func.func @transform_0(%arg0: i32) -> (i32, i32, i32) {
    %c0_i32 = arith.constant 0 : i32
    %c0_i32_0 = arith.constant 0 : i32
    %c0_i32_1 = arith.constant 0 : i32
    return %arg0, %c0_i32, %c0_i32_0 : i32, i32, i32
  }
  func.func @transform_1(%arg0: i32) -> (i32, i32) {
    %c0_i32 = arith.constant 0 : i32
    %c0_i32_0 = arith.constant 0 : i32
    %c0_i32_1 = arith.constant 0 : i32
    return %c0_i32, %c0_i32_0 : i32, i32
  }
  func.func @transform_2(%arg0: i32) -> (i32, i32) {
    %c0_i32 = arith.constant 0 : i32
    %c0_i32_0 = arith.constant 0 : i32
    %c0_i32_1 = arith.constant 0 : i32
    return %c0_i32, %c0_i32_0 : i32, i32
  }
  func.func @transform_3(%arg0: i32) -> (i32, i32) {
    %c0_i32 = arith.constant 0 : i32
    %c0_i32_0 = arith.constant 0 : i32
    %c0_i32_1 = arith.constant 0 : i32
    return %c0_i32, %c0_i32_0 : i32, i32
  }
  func.func @transform_4(%arg0: i32) -> (i32, i32) {
    %c0_i32 = arith.constant 0 : i32
    %c0_i32_0 = arith.constant 0 : i32
    %c0_i32_1 = arith.constant 0 : i32
    return %c0_i32, %c0_i32_0 : i32, i32
  }
  func.func @transform_5(%arg0: i32) -> (i32, i32, i32) {
    %c0_i32 = arith.constant 0 : i32
    %c0_i32_0 = arith.constant 0 : i32
    %c0_i32_1 = arith.constant 0 : i32
    return %arg0, %c0_i32, %c0_i32_0 : i32, i32, i32
  }
}

</mosaic_0001>

<bundles_post_ra>
// kernel: attention_classifier_forward.3
= control target key start
LH: loop header
LB: loop body
LE: loop exit
PB: predicated region body
PF: predicated region fallthrough
CT: control target
= control target key end

     0   :  { %vm229_vm0 = vcmask 1043456   ;;  %vm230_vm1 = vcmask 1044480   ;;  %vm132_vm2 = vcmask 72704   ;;  %v1037_v3 = vmov 65535   ;;  %s1499_s0 = inlined_call_operand.vmem [shape: f32[2,256,9], index: 0, kind: input, shape index: {}]   ;;  %s1500_s1 = inlined_call_operand.vmem [shape: bf16[9,16], index: 1, kind: input, shape index: {}]   ;;  %s1501_s2 = inlined_call_operand.vmem [shape: f32[1,16], index: 2, kind: input, shape index: {}]   ;;  %s1502_s3 = inlined_call_operand.vmem [shape: f32[16,5], index: 3, kind: input, shape index: {}]   ;;  %s1503_s4 = inlined_call_operand.vmem [shape: f32[1,5], index: 4, kind: input, shape index: {}]   ;;  %s1504_s5 = inlined_call_operand.hbm [shape: f32[2,1,5], index: 5, kind: output, shape index: {}]  }
   0x1   :  { %v1014_v0 = vld [vmem:[%s1500_s1] sm:$0x1f]   ;;  %v23_v2 = vld [vmem:[%s1499_s0 + $0x8] sm:$0xff]  ;;  %v231_v4 = vsel %vm229_vm0, 4294967295, %v1037_v3  ;;  %v24_v7 = vld [vmem:[%s1499_s0 + $0x10] sm:$0xff] }
   0x2   :  { %v22_v1 = vld [vmem:[%s1499_s0] sm:$0xff]  ;;  %v232_v6 = vsel %vm230_vm1, %v231_v4, 0  ;;  %v25_v8 = vld [vmem:[%s1499_s0 + $0x18] sm:$0xff]  ;;  %v27_v11 = vld [vmem:[%s1499_s0 + $0x28] sm:$0xff] }
   0x3   :  { %v86_v5 = vpack.c.bf16 %v23_v2, %v22_v1  ;;  %v234_v9 = vand.u32 %v1014_v0, %v232_v6  ;;  %v26_v10 = vld [vmem:[%s1499_s0 + $0x20] sm:$0xff]  ;;  %v87_v12 = vpack.c.bf16 %v25_v8, %v24_v7  ;;  %v28_v14 = vld [vmem:[%s1499_s0 + $0x30] sm:$0xff]  ;;  %v29_v15 = vld [vmem:[%s1499_s0 + $0x38] sm:$0xff] }
   0x4   :  { %v88_v13 = vpack.c.bf16 %v27_v11, %v26_v10  ;;  %v30_v16 = vld [vmem:[%s1499_s0 + $0x40] sm:$0xff]  ;;  %v31_v17 = vld [vmem:[%s1499_s0 + $0x48] sm:$0xff]  ;;  %v89_v20 = vpack.c.bf16 %v29_v15, %v28_v14  ;;  %v60_v22 = vld [vmem:[%s1499_s0 + $0x130] sm:$0xff] }
   0x5   :  { %934 = vmatprep.mubr.msk.bf16.mxu0 %vm132_vm2, %v86_v5  ;;  %932 = vmatprep.subr.bf16.mxu0 %v234_v9  ;;  %v58_v18 = vld [vmem:[%s1499_s0 + $0x120] sm:$0xff]  ;;  %v59_v19 = vld [vmem:[%s1499_s0 + $0x128] sm:$0xff]  ;;  %v61_v23 = vld [vmem:[%s1499_s0 + $0x138] sm:$0xff]  ;;  %v90_v25 = vpack.c.bf16 %v31_v17, %v30_v16 }
   0x6   :  { %1005 = vmatprep.subr.bf16.mxu1 %v234_v9  ;;  %933 = vmatpush3.bf16.msra.mxu0 %v234_v9  ;;  %v104_v21 = vpack.c.bf16 %v59_v19, %v58_v18  ;;  %v62_v24 = vld [vmem:[%s1499_s0 + $0x140] sm:$0xff]  ;;  %v105_v26 = vpack.c.bf16 %v61_v23, %v60_v22  ;;  %v63_v27 = vld [vmem:[%s1499_s0 + $0x148] sm:$0xff]  ;;  %v32_v29 = vld [vmem:[%s1499_s0 + $0x50] sm:$0xff] }
   0x7   :  { %1006 = vmatpush3.bf16.msra.mxu1 %v234_v9  ;;  %v106_v28 = vpack.c.bf16 %v63_v27, %v62_v24  ;;  %v64_v30 = vld [vmem:[%s1499_s0 + $0x150] sm:$0xff]  ;;  %v65_v31 = vld [vmem:[%s1499_s0 + $0x158] sm:$0xff]  ;;  %v66_v33 = vld [vmem:[%s1499_s0 + $0x160] sm:$0xff] }
   0x8   :  { %970 = vmatprep.mubr.msk.bf16.mxu1 %vm132_vm2, %v104_v21  ;;  %v33_v32 = vld [vmem:[%s1499_s0 + $0x58] sm:$0xff]  ;;  %v67_v34 = vld [vmem:[%s1499_s0 + $0x168] sm:$0xff]  ;;  %v34_v35 = vld [vmem:[%s1499_s0 + $0x60] sm:$0xff]  ;;  %v107_v37 = vpack.c.bf16 %v65_v31, %v64_v30 }
   0x9   :  { %935 = vmatmul.mubr.msk.bf16.vlgmr.msra.gmra.mxu0 %vm132_vm2, %v87_v12  ;;  %v35_v36 = vld [vmem:[%s1499_s0 + $0x68] sm:$0xff]  ;;  %v91_v38 = vpack.c.bf16 %v33_v32, %v32_v29  ;;  %v108_v39 = vpack.c.bf16 %v67_v34, %v66_v33 }
   0xa   :  { %938 = vmatprep.mubr.msk.bf16.mxu0 %vm132_vm2, %v88_v13  ;;  %971 = vmatmul.mubr.msk.bf16.vlgmr.msra.gmra.mxu1 %vm132_vm2, %v105_v26 }
   0xb   :  { %974 = vmatprep.mubr.msk.bf16.mxu1 %vm132_vm2, %v106_v28 }
  0x11   :  { %939 = vmatmul.mubr.msk.bf16.gmra.mxu0 %vm132_vm2, %v89_v20 }
  0x12   :  { %942 = vmatprep.mubr.msk.bf16.mxu0 %vm132_vm2, %v90_v25 }
  0x13   :  { %10 = vsyncpa [#allocation3], 0  ;;  %v92_v40 = vpack.c.bf16 %v35_v36, %v34_v35  ;;  %975 = vmatmul.mubr.msk.bf16.gmra.mxu1 %vm132_vm2, %v107_v37  ;;  %v36_v41 = vld [vmem:[%s1499_s0 + $0x70] sm:$0xff]  ;;  %v69_v43 = vld [vmem:[%s1499_s0 + $0x178] sm:$0xff]  ;;  %vm589_vm3 = vcmask 130048   ;;  %vm1039_vm4 = vmmov 0  }
  0x14   :  { %978 = vmatprep.mubr.msk.bf16.mxu1 %vm132_vm2, %v108_v39  ;;  %v68_v42 = vld [vmem:[%s1499_s0 + $0x170] sm:$0xff]  ;;  %v37_v44 = vld [vmem:[%s1499_s0 + $0x78] sm:$0xff]  ;;  %v70_v45 = vld [vmem:[%s1499_s0 + $0x180] sm:$0xff]  ;;  %vm742_vm5 = vcmask 1041409   ;;  %s1041_s23 = smov [#allocation2]   ;;  %vm841_vm6 = vcmask 32768  }
  0x15   :  { %v71_v46 = vld [vmem:[%s1499_s0 + $0x188] sm:$0xff]  ;;  %v38_v47 = vld [vmem:[%s1499_s0 + $0x80] sm:$0xff]  ;;  %v109_v49 = vpack.c.bf16 %v69_v43, %v68_v42  ;;  %v93_v50 = vpack.c.bf16 %v37_v44, %v36_v41  ;;  %v40_v53 = vld [vmem:[%s1499_s0 + $0x90] sm:$0xff]  ;;  %s849_s24 = sshll.u32 %s1041_s23, 4  ;;  %s850_s24 = int_to_ptr.vmem [resolvable:$true] %s849_s24 }
  0x16   :  { %v39_v48 = vld [vmem:[%s1499_s0 + $0x88] sm:$0xff]  ;;  %v110_v51 = vpack.c.bf16 %v71_v46, %v70_v45  ;;  %v72_v54 = vld [vmem:[%s1499_s0 + $0x190] sm:$0xff]  ;;  %v73_v55 = vld [vmem:[%s1499_s0 + $0x198] sm:$0xff]  ;;  %s1015_s25 = scalar_lea.vmem %s850_s24, 32  ;;  %p1020_p1 = scmp.lt.s32.totalorder %s850_s24, %s850_s24 }
  0x17   :  { %v94_v52 = vpack.c.bf16 %v39_v48, %v38_v47  ;;  %v41_v56 = vld [vmem:[%s1499_s0 + $0x98] sm:$0xff]  ;;  %v74_v57 = vld [vmem:[%s1499_s0 + $0x1a0] sm:$0xff]  ;;  %v75_v58 = vld [vmem:[%s1499_s0 + $0x1a8] sm:$0xff]  ;;  %v111_v61 = vpack.c.bf16 %v73_v55, %v72_v54  ;;  %p1016_p0 = scmp.ne.s32.totalorder %s850_s24, %s1015_s25  ;;  %p1021_p2 = scmp.lt.s32.totalorder %s1015_s25, %s1015_s25 }
  0x18   :  { %v42_v59 = vld [vmem:[%s1499_s0 + $0xa0] sm:$0xff]  ;;  %v43_v60 = vld [vmem:[%s1499_s0 + $0xa8] sm:$0xff]  ;;  %v95_v62 = vpack.c.bf16 %v41_v56, %v40_v53  ;;  %v112_v63 = vpack.c.bf16 %v75_v58, %v74_v57  ;;  %v44_v1 = vld [vmem:[%s1499_s0 + $0xb0] sm:$0xff] }
  0x19   :  { %943 = vmatmul.mubr.msk.bf16.gmra.mxu0 %vm132_vm2, %v91_v38  ;;  %v96_v0 = vpack.c.bf16 %v43_v60, %v42_v59  ;;  %v76_v2 = vld [vmem:[%s1499_s0 + $0x1b0] sm:$0xff]  ;;  %v77_v3 = vld [vmem:[%s1499_s0 + $0x1b8] sm:$0xff]  ;;  %v78_v5 = vld [vmem:[%s1499_s0 + $0x1c0] sm:$0xff]  ;;  %v1038_v38 = vmov 0.0   ;;  %p1022_p3 = por %p1021_p2, %p1020_p1 }
  0x1a   :  { %946 = vmatprep.mubr.msk.bf16.mxu0 %vm132_vm2, %v92_v40  ;;  %v45_v4 = vld [vmem:[%s1499_s0 + $0xb8] sm:$0xff]  ;;  %v79_v6 = vld [vmem:[%s1499_s0 + $0x1c8] sm:$0xff]  ;;  %v46_v7 = vld [vmem:[%s1499_s0 + $0xc0] sm:$0xff]  ;;  %v113_v9 = vpack.c.bf16 %v77_v3, %v76_v2  ;;  %998 = vmatprep.subr.mxu1 %v1038_v38 }
  0x1b   :  { %979 = vmatmul.mubr.msk.bf16.gmra.mxu1 %vm132_vm2, %v109_v49  ;;  %v47_v8 = vld [vmem:[%s1499_s0 + $0xc8] sm:$0xff]  ;;  %v97_v10 = vpack.c.bf16 %v45_v4, %v44_v1  ;;  %v114_v11 = vpack.c.bf16 %v79_v6, %v78_v5  ;;  %v48_v13 = vld [vmem:[%s1499_s0 + $0xd0] sm:$0xff]  ;;  %v81_v15 = vld [vmem:[%s1499_s0 + $0x1d8] sm:$0xff]  ;;  %p1023_p4 = pnand %p1022_p3, %p1016_p0 }
  0x1c   :  { %982 = vmatprep.mubr.msk.bf16.mxu1 %vm132_vm2, %v110_v51  ;;  %v98_v12 = vpack.c.bf16 %v47_v8, %v46_v7  ;;  %v80_v14 = vld [vmem:[%s1499_s0 + $0x1d0] sm:$0xff]  ;;  %v49_v16 = vld [vmem:[%s1499_s0 + $0xd8] sm:$0xff]  ;;  %v82_v17 = vld [vmem:[%s1499_s0 + $0x1e0] sm:$0xff] }
  0x1d   :  { %v83_v18 = vld [vmem:[%s1499_s0 + $0x1e8] sm:$0xff]  ;;  %v50_v19 = vld [vmem:[%s1499_s0 + $0xe0] sm:$0xff]  ;;  %v115_v21 = vpack.c.bf16 %v81_v15, %v80_v14  ;;  %v99_v22 = vpack.c.bf16 %v49_v16, %v48_v13  ;;  %v84_v25 = vld [vmem:[%s1499_s0 + $0x1f0] sm:$0xff] }
  0x1e   :  { %v51_v20 = vld [vmem:[%s1499_s0 + $0xe8] sm:$0xff]  ;;  %v116_v23 = vpack.c.bf16 %v83_v18, %v82_v17  ;;  %v85_v26 = vld [vmem:[%s1499_s0 + $0x1f8] sm:$0xff]  ;;  %v52_v27 = vld [vmem:[%s1499_s0 + $0xf0] sm:$0xff] }
  0x1f   :  { %v100_v24 = vpack.c.bf16 %v51_v20, %v50_v19  ;;  %v53_v28 = vld [vmem:[%s1499_s0 + $0xf8] sm:$0xff]  ;;  %v54_v29 = vld [vmem:[%s1499_s0 + $0x100] sm:$0xff]  ;;  %v55_v30 = vld [vmem:[%s1499_s0 + $0x108] sm:$0xff]  ;;  %v117_v31 = vpack.c.bf16 %v85_v26, %v84_v25 }
  0x20   :  { %v101_v32 = vpack.c.bf16 %v53_v28, %v52_v27  ;;  %v102_v33 = vpack.c.bf16 %v55_v30, %v54_v29  ;;  %v56_v34 = vld [vmem:[%s1499_s0 + $0x110] sm:$0xff]  ;;  %v57_v35 = vld [vmem:[%s1499_s0 + $0x118] sm:$0xff]  ;;  %v732_v37 = vld [vmem:[%s1502_s3 + $0x8] sm:$0xff] }
  0x21   :  { %947 = vmatmul.mubr.msk.bf16.gmra.mxu0 %vm132_vm2, %v93_v50  ;;  %v103_v36 = vpack.c.bf16 %v57_v35, %v56_v34  ;;  %999 = vmatpush3.msra.mxu1 %v732_v37  ;;  %v1307_v40 = vld [vmem:[%s1501_s2] ss:$0 sm:$0xff] }
  0x22   :  { %950 = vmatprep.mubr.msk.bf16.mxu0 %vm132_vm2, %v94_v52  ;;  %1000 = vmatprep.subr.mxu1 %v1038_v38 }
  0x23   :  { %983 = vmatmul.mubr.msk.bf16.gmra.mxu1 %vm132_vm2, %v111_v61 }
  0x24   :  { %986 = vmatprep.mubr.msk.bf16.mxu1 %vm132_vm2, %v112_v63 }
  0x29   :  { %951 = vmatmul.mubr.msk.bf16.gmra.mxu0 %vm132_vm2, %v95_v62 }
  0x2a   :  { %954 = vmatprep.mubr.msk.bf16.mxu0 %vm132_vm2, %v96_v0 }
  0x2b   :  { %987 = vmatmul.mubr.msk.bf16.gmra.mxu1 %vm132_vm2, %v113_v9 }
  0x2c   :  { %990 = vmatprep.mubr.msk.bf16.mxu1 %vm132_vm2, %v114_v11 }
  0x31   :  { %955 = vmatmul.mubr.msk.bf16.gmra.mxu0 %vm132_vm2, %v97_v10 }
  0x32   :  { %958 = vmatprep.mubr.msk.bf16.mxu0 %vm132_vm2, %v98_v12  ;;  %v731_v12 = vld [vmem:[%s1502_s3] sm:$0xff] }
  0x33   :  { %991 = vmatmul.mubr.msk.bf16.gmra.mxu1 %vm132_vm2, %v115_v21 }
  0x34   :  { %994 = vmatprep.mubr.msk.bf16.mxu1 %vm132_vm2, %v116_v23  ;;  %1001 = vmatpush3.msra.mxu1 %v731_v12 }
  0x39   :  { %959 = vmatmul.mubr.msk.bf16.gmra.mxu0 %vm132_vm2, %v99_v22 }
  0x3a   :  { %962 = vmatprep.mubr.msk.bf16.mxu0 %vm132_vm2, %v100_v24 }
  0x3b   :  { %995 = vmatmul.mubr.msk.bf16.gmra.mxu1 %vm132_vm2, %v117_v31 }
  0x3c   :  { %1002 = vmatprep.mubr.msk.f32.mxu1 %vm1039_vm4, %v1038_v38 }
  0x41   :  { %963 = vmatmul.mubr.msk.bf16.gmra.mxu0 %vm132_vm2, %v101_v32 }
  0x42   :  { %966 = vmatprep.mubr.msk.bf16.mxu0 %vm132_vm2, %v102_v33 }
  0x49   :  { %967 = vmatmul.mubr.msk.bf16.gmra.mxu0 %vm132_vm2, %v103_v36 }
  0xc9   :  { %v936_v39 = vpop.f32.mrf.mxu0 }
  0xca   :  { %v279_v44 = vadd.f32 %v936_v39, %v1307_v40  ;;  %v1316_v59 = vpop.f32.mrf.mxu1 }
  0xcb   :  { %v270_v41 = vpop.f32.mrf.mxu0 }
  0xcc   :  { %v271_v42 = vadd.f32 %v1307_v40, %v270_v41  ;;  %v527_v50 = vmax.f32 %v279_v44, 0.0  ;;  %v1323_v6 = vpop.f32.mrf.mxu1 }
  0xcd   :  { %v937_v43 = vpop.f32.mrf.mxu0 }
  0xce   :  { %v525_v46 = vmax.f32 %v271_v42, 0.0  ;;  %v282_v47 = vadd.f32 %v937_v43, %v1307_v40  ;;  %v593_v60 = vsel %vm589_vm3, %v527_v50, 0.0  ;;  %v1331_v18 = vpop.f32.mrf.mxu1 }
  0xcf   :  { %v273_v45 = vpop.f32.mrf.mxu0 }
  0xd0   :  { %v274_v48 = vadd.f32 %v1307_v40, %v273_v45  ;;  %v590_v53 = vsel %vm589_vm3, %v525_v46, 0.0  ;;  %v528_v54 = vmax.f32 %v282_v47, 0.0  ;;  %v1338_v29 = vpop.f32.mrf.mxu1 }
  0xd1   :  { %v940_v49 = vpop.f32.mrf.mxu0 }
  0xd2   :  { %v526_v51 = vmax.f32 %v274_v48, 0.0  ;;  %v295_v61 = vadd.f32 %v940_v49, %v1307_v40  ;;  %v595_v1 = vsel %vm589_vm3, %v528_v54, 0.0 }
  0xd3   :  { %v286_v52 = vpop.f32.mrf.mxu0  ;;  %v1343_v41 = vpop.f32.mrf.mxu1 }
  0xd4   :  { %v591_v55 = vsel %vm589_vm3, %v526_v51, 0.0  ;;  %v287_v56 = vadd.f32 %v1307_v40, %v286_v52  ;;  %v531_v7 = vmax.f32 %v295_v61, 0.0 }
  0xd5   :  { %v592_v57 = vadd.f32 %v591_v55, %v590_v53  ;;  %v941_v58 = vpop.f32.mrf.mxu0  ;;  %v1350_v52 = vpop.f32.mrf.mxu1 }
  0xd6   :  { %v529_v62 = vmax.f32 %v287_v56, 0.0  ;;  %v298_v2 = vadd.f32 %v941_v58, %v1307_v40  ;;  %v601_v19 = vsel %vm589_vm3, %v531_v7, 0.0 }
  0xd7   :  { %v594_v63 = vadd.f32 %v593_v60, %v592_v57  ;;  %v289_v0 = vpop.f32.mrf.mxu0 }
  0xd8   :  { %v290_v3 = vadd.f32 %v1307_v40, %v289_v0  ;;  %v597_v8 = vsel %vm589_vm3, %v529_v62, 0.0  ;;  %v532_v13 = vmax.f32 %v298_v2, 0.0  ;;  %v1355_v0 = vpop.f32.mrf.mxu1 }
  0xd9   :  { %v596_v4 = vadd.f32 %v595_v1, %v594_v63  ;;  %v944_v5 = vpop.f32.mrf.mxu0 }
  0xda   :  { %v530_v9 = vmax.f32 %v290_v3, 0.0  ;;  %v311_v20 = vadd.f32 %v944_v5, %v1307_v40  ;;  %v603_v24 = vsel %vm589_vm3, %v532_v13, 0.0  ;;  %v1362_v12 = vpop.f32.mrf.mxu1 }
  0xdb   :  { %v598_v10 = vadd.f32 %v597_v8, %v596_v4  ;;  %v302_v11 = vpop.f32.mrf.mxu0 }
  0xdc   :  { %v599_v14 = vsel %vm589_vm3, %v530_v9, 0.0  ;;  %v303_v15 = vadd.f32 %v1307_v40, %v302_v11  ;;  %v535_v30 = vmax.f32 %v311_v20, 0.0 }
  0xdd   :  { %v600_v16 = vadd.f32 %v599_v14, %v598_v10  ;;  %v945_v17 = vpop.f32.mrf.mxu0 }
  0xde   :  { %v533_v21 = vmax.f32 %v303_v15, 0.0  ;;  %v314_v25 = vadd.f32 %v945_v17, %v1307_v40  ;;  %v609_v42 = vsel %vm589_vm3, %v535_v30, 0.0 }
  0xdf   :  { %v602_v22 = vadd.f32 %v601_v19, %v600_v16  ;;  %v305_v23 = vpop.f32.mrf.mxu0 }
  0xe0   :  { %v306_v26 = vadd.f32 %v1307_v40, %v305_v23  ;;  %v605_v31 = vsel %vm589_vm3, %v533_v21, 0.0  ;;  %v536_v35 = vmax.f32 %v314_v25, 0.0 }
  0xe1   :  { %v604_v27 = vadd.f32 %v603_v24, %v602_v22  ;;  %v948_v28 = vpop.f32.mrf.mxu0  ;;  %v1367_v24 = vpop.f32.mrf.mxu1 }
  0xe2   :  { %v534_v32 = vmax.f32 %v306_v26, 0.0  ;;  %v327_v43 = vadd.f32 %v948_v28, %v1307_v40  ;;  %v611_v47 = vsel %vm589_vm3, %v536_v35, 0.0 }
  0xe3   :  { %v606_v33 = vadd.f32 %v605_v31, %v604_v27  ;;  %v318_v34 = vpop.f32.mrf.mxu0 }
  0xe4   :  { %v607_v36 = vsel %vm589_vm3, %v534_v32, 0.0  ;;  %v319_v37 = vadd.f32 %v1307_v40, %v318_v34  ;;  %v539_v53 = vmax.f32 %v327_v43, 0.0 }
  0xe5   :  { %v608_v38 = vadd.f32 %v607_v36, %v606_v33  ;;  %v949_v39 = vpop.f32.mrf.mxu0  ;;  %v1374_v36 = vpop.f32.mrf.mxu1 }
  0xe6   :  { %v537_v44 = vmax.f32 %v319_v37, 0.0  ;;  %v330_v48 = vadd.f32 %v949_v39, %v1307_v40  ;;  %v617_v1 = vsel %vm589_vm3, %v539_v53, 0.0 }
  0xe7   :  { %v610_v45 = vadd.f32 %v609_v42, %v608_v38  ;;  %v321_v46 = vpop.f32.mrf.mxu0 }
  0xe8   :  { %v322_v49 = vadd.f32 %v1307_v40, %v321_v46  ;;  %v613_v54 = vsel %vm589_vm3, %v537_v44, 0.0  ;;  %v540_v58 = vmax.f32 %v330_v48, 0.0 }
  0xe9   :  { %v612_v50 = vadd.f32 %v611_v47, %v610_v45  ;;  %v952_v51 = vpop.f32.mrf.mxu0 }
  0xea   :  { %v538_v55 = vmax.f32 %v322_v49, 0.0  ;;  %v343_v2 = vadd.f32 %v952_v51, %v1307_v40  ;;  %v619_v7 = vsel %vm589_vm3, %v540_v58, 0.0  ;;  %v1379_v49 = vpop.f32.mrf.mxu1 }
  0xeb   :  { %v614_v56 = vadd.f32 %v613_v54, %v612_v50  ;;  %v334_v57 = vpop.f32.mrf.mxu0 }
  0xec   :  { %v615_v60 = vsel %vm589_vm3, %v538_v55, 0.0  ;;  %v335_v61 = vadd.f32 %v1307_v40, %v334_v57  ;;  %v543_v13 = vmax.f32 %v343_v2, 0.0 }
  0xed   :  { %v616_v62 = vadd.f32 %v615_v60, %v614_v56  ;;  %v953_v63 = vpop.f32.mrf.mxu0 }
  0xee   :  { %v541_v3 = vmax.f32 %v335_v61, 0.0  ;;  %v346_v8 = vadd.f32 %v953_v63, %v1307_v40  ;;  %v625_v25 = vsel %vm589_vm3, %v543_v13, 0.0 }
  0xef   :  { %v618_v4 = vadd.f32 %v617_v1, %v616_v62  ;;  %v337_v5 = vpop.f32.mrf.mxu0  ;;  %v1386_v62 = vpop.f32.mrf.mxu1 }
  0xf0   :  { %v338_v9 = vadd.f32 %v1307_v40, %v337_v5  ;;  %v621_v14 = vsel %vm589_vm3, %v541_v3, 0.0  ;;  %v544_v19 = vmax.f32 %v346_v8, 0.0 }
  0xf1   :  { %v620_v10 = vadd.f32 %v619_v7, %v618_v4  ;;  %v956_v11 = vpop.f32.mrf.mxu0 }
  0xf2   :  { %v542_v15 = vmax.f32 %v338_v9, 0.0  ;;  %v359_v26 = vadd.f32 %v956_v11, %v1307_v40  ;;  %v627_v31 = vsel %vm589_vm3, %v544_v19, 0.0  ;;  %v1391_v11 = vpop.f32.mrf.mxu1 }
  0xf3   :  { %v622_v16 = vadd.f32 %v621_v14, %v620_v10  ;;  %v350_v17 = vpop.f32.mrf.mxu0 }
  0xf4   :  { %v623_v20 = vsel %vm589_vm3, %v542_v15, 0.0  ;;  %v351_v21 = vadd.f32 %v1307_v40, %v350_v17  ;;  %v547_v37 = vmax.f32 %v359_v26, 0.0 }
  0xf5   :  { %v624_v22 = vadd.f32 %v623_v20, %v622_v16  ;;  %v957_v23 = vpop.f32.mrf.mxu0 }
  0xf6   :  { %v545_v27 = vmax.f32 %v351_v21, 0.0  ;;  %v362_v32 = vadd.f32 %v957_v23, %v1307_v40  ;;  %v633_v50 = vsel %vm589_vm3, %v547_v37, 0.0 }
  0xf7   :  { %v626_v28 = vadd.f32 %v625_v25, %v624_v22  ;;  %v353_v30 = vpop.f32.mrf.mxu0  ;;  %v1398_v25 = vpop.f32.mrf.mxu1 }
  0xf8   :  { %v354_v33 = vadd.f32 %v1307_v40, %v353_v30  ;;  %v629_v38 = vsel %vm589_vm3, %v545_v27, 0.0  ;;  %v548_v44 = vmax.f32 %v362_v32, 0.0 }
  0xf9   :  { %v628_v34 = vadd.f32 %v627_v31, %v626_v28  ;;  %v960_v35 = vpop.f32.mrf.mxu0 }
  0xfa   :  { %v546_v39 = vmax.f32 %v354_v33, 0.0  ;;  %v375_v51 = vadd.f32 %v960_v35, %v1307_v40  ;;  %v635_v56 = vsel %vm589_vm3, %v548_v44, 0.0 }
  0xfb   :  { %v630_v42 = vadd.f32 %v629_v38, %v628_v34  ;;  %v366_v43 = vpop.f32.mrf.mxu0  ;;  %v1403_v38 = vpop.f32.mrf.mxu1 }
  0xfc   :  { %v631_v45 = vsel %vm589_vm3, %v546_v39, 0.0  ;;  %v367_v46 = vadd.f32 %v1307_v40, %v366_v43  ;;  %v551_v63 = vmax.f32 %v375_v51, 0.0 }
  0xfd   :  { %v632_v47 = vadd.f32 %v631_v45, %v630_v42  ;;  %v961_v48 = vpop.f32.mrf.mxu0  ;;  %v465_v51 = vpop.f32.mrf.mxu1 }
  0xfe   :  { %v549_v53 = vmax.f32 %v367_v46, 0.0  ;;  %v378_v57 = vadd.f32 %v961_v48, %v1307_v40  ;;  %v641_v13 = vsel %vm589_vm3, %v551_v63, 0.0 }
  0xff   :  { %v634_v54 = vadd.f32 %v633_v50, %v632_v47  ;;  %v369_v55 = vpop.f32.mrf.mxu0  ;;  %v1418_v63 = vpop.f32.mrf.mxu1 }
 0x100   :  { %v370_v58 = vadd.f32 %v1307_v40, %v369_v55  ;;  %v637_v1 = vsel %vm589_vm3, %v549_v53, 0.0  ;;  %v552_v5 = vmax.f32 %v378_v57, 0.0 }
 0x101   :  { %v636_v60 = vadd.f32 %v635_v56, %v634_v54  ;;  %v964_v61 = vpop.f32.mrf.mxu0  ;;  %v415_v54 = vadd.f32 %v1307_v40, %v1323_v6 }
 0x102   :  { %v550_v2 = vmax.f32 %v370_v58, 0.0  ;;  %v391_v14 = vadd.f32 %v964_v61, %v1307_v40  ;;  %v643_v19 = vsel %vm589_vm3, %v552_v5, 0.0  ;;  %v426_v5 = vadd.f32 %v1331_v18, %v1307_v40 }
 0x103   :  { %v638_v3 = vadd.f32 %v637_v1, %v636_v60  ;;  %v382_v4 = vpop.f32.mrf.mxu0  ;;  %v418_v60 = vadd.f32 %v1307_v40, %v1338_v29 }
 0x104   :  { %v639_v7 = vsel %vm589_vm3, %v550_v2, 0.0  ;;  %v383_v8 = vadd.f32 %v1307_v40, %v382_v4  ;;  %v555_v26 = vmax.f32 %v391_v14, 0.0  ;;  %v423_v2 = vadd.f32 %v1316_v59, %v1307_v40 }
 0x105   :  { %v640_v9 = vadd.f32 %v639_v7, %v638_v3  ;;  %v965_v10 = vpop.f32.mrf.mxu0  ;;  %v561_v3 = vmax.f32 %v415_v54, 0.0  ;;  %v562_v7 = vmax.f32 %v418_v60, 0.0 }
 0x106   :  { %v553_v15 = vmax.f32 %v383_v8, 0.0  ;;  %v394_v20 = vadd.f32 %v965_v10, %v1307_v40  ;;  %v649_v39 = vsel %vm589_vm3, %v555_v26, 0.0  ;;  %v563_v10 = vmax.f32 %v423_v2, 0.0 }
 0x107   :  { %v642_v16 = vadd.f32 %v641_v13, %v640_v9  ;;  %v385_v17 = vpop.f32.mrf.mxu0  ;;  %v478_v9 = vpop.f32.mrf.mxu1  ;;  %v666_v29 = vsel %vm589_vm3, %v561_v3, 0.0  ;;  %v431_v13 = vadd.f32 %v1307_v40, %v1350_v52  ;;  %v668_v59 = vsel %vm589_vm3, %v562_v7, 0.0 }
 0x108   :  { %v386_v21 = vadd.f32 %v1307_v40, %v385_v17  ;;  %v645_v27 = vsel %vm589_vm3, %v553_v15, 0.0  ;;  %v556_v32 = vmax.f32 %v394_v20, 0.0  ;;  %v564_v15 = vmax.f32 %v426_v5, 0.0 }
 0x109   :  { %v644_v22 = vadd.f32 %v643_v19, %v642_v16  ;;  %v968_v23 = vpop.f32.mrf.mxu0  ;;  %v434_v16 = vadd.f32 %v1307_v40, %v1362_v12  ;;  %v989_v19 = vpop.f32.mrf.mxu1  ;;  %v670_v18 = vsel %vm589_vm3, %v563_v10, 0.0  ;;  %v439_v20 = vadd.f32 %v1343_v41, %v1307_v40 }
 0x10a   :  { %v554_v28 = vmax.f32 %v386_v21, 0.0  ;;  %v407_v42 = vadd.f32 %v968_v23, %v1307_v40  ;;  %v651_v45 = vsel %vm589_vm3, %v556_v32, 0.0  ;;  %v565_v21 = vmax.f32 %v431_v13, 0.0 }
 0x10b   :  { %v646_v30 = vadd.f32 %v645_v27, %v644_v22  ;;  %v398_v31 = vpop.f32.mrf.mxu0  ;;  %v672_v23 = vsel %vm589_vm3, %v564_v15, 0.0  ;;  %v442_v52 = vadd.f32 %v1355_v0, %v1307_v40  ;;  %v566_v26 = vmax.f32 %v434_v16, 0.0 }
 0x10c   :  { %v647_v33 = vsel %vm589_vm3, %v554_v28, 0.0  ;;  %v399_v34 = vadd.f32 %v1307_v40, %v398_v31  ;;  %v559_v53 = vmax.f32 %v407_v42, 0.0  ;;  %v481_v28 = vpop.f32.mrf.mxu1  ;;  %v674_v12 = vsel %vm589_vm3, %v565_v21, 0.0 }
 0x10d   :  { %v648_v35 = vadd.f32 %v647_v33, %v646_v30  ;;  %v969_v37 = vpop.f32.mrf.mxu0  ;;  %v567_v30 = vmax.f32 %v439_v20, 0.0  ;;  %v447_v31 = vadd.f32 %v1307_v40, %v1374_v36  ;;  %v568_v33 = vmax.f32 %v442_v52, 0.0 }
 0x10e   :  { %v557_v46 = vmax.f32 %v399_v34, 0.0  ;;  %v410_v47 = vadd.f32 %v969_v37, %v1307_v40  ;;  %v662_v1 = vsel %vm589_vm3, %v559_v53, 0.0  ;;  %v676_v41 = vsel %vm589_vm3, %v566_v26, 0.0  ;;  %v992_v37 = vpop.f32.mrf.mxu1 }
 0x10f   :  { %v650_v43 = vadd.f32 %v649_v39, %v648_v35  ;;  %v401_v44 = vpop.f32.mrf.mxu0  ;;  %v450_v34 = vadd.f32 %v1307_v40, %v1386_v62  ;;  %v678_v0 = vsel %vm589_vm3, %v567_v30, 0.0  ;;  %v455_v39 = vadd.f32 %v1367_v24, %v1307_v40 }
 0x110   :  { %v402_v48 = vadd.f32 %v1307_v40, %v401_v44  ;;  %v659_v56 = vsel %vm589_vm3, %v557_v46, 0.0  ;;  %v560_v57 = vmax.f32 %v410_v47, 0.0  ;;  %v569_v42 = vmax.f32 %v447_v31, 0.0  ;;  %v494_v47 = vpop.f32.mrf.mxu1 }
 0x111   :  { %v1410_v50 = vadd.f32 %v651_v45, %v650_v43  ;;  %v680_v44 = vsel %vm589_vm3, %v568_v33, 0.0  ;;  %v458_v36 = vadd.f32 %v1379_v49, %v1307_v40  ;;  %v570_v45 = vmax.f32 %v450_v34, 0.0 }
 0x112   :  { %v558_v55 = vmax.f32 %v402_v48, 0.0  ;;  %v664_v6 = vsel %vm589_vm3, %v560_v57, 0.0  ;;  %v571_v48 = vmax.f32 %v455_v39, 0.0  ;;  %v682_v62 = vsel %vm589_vm3, %v569_v42, 0.0 }
 0x113   :  { %v463_v53 = vadd.f32 %v1307_v40, %v1398_v25  ;;  %v684_v24 = vsel %vm589_vm3, %v570_v45, 0.0  ;;  %v471_v49 = vadd.f32 %v1391_v11, %v1307_v40  ;;  %v474_v25 = vadd.f32 %v1403_v38, %v1307_v40 }
 0x114   :  { %v660_v58 = vsel %vm589_vm3, %v558_v55, 0.0  ;;  %v572_v55 = vmax.f32 %v458_v36, 0.0  ;;  %v686_v60 = vsel %vm589_vm3, %v571_v48, 0.0  ;;  %v479_v7 = vadd.f32 %v1307_v40, %v478_v9 }
 0x115   :  { %v661_v61 = vadd.f32 %v660_v58, %v659_v56  ;;  %v466_v56 = vadd.f32 %v1307_v40, %v465_v51  ;;  %v993_v58 = vpop.f32.mrf.mxu1  ;;  %v575_v5 = vmax.f32 %v471_v49, 0.0  ;;  %v576_v10 = vmax.f32 %v474_v25, 0.0 }
 0x116   :  { %v688_v2 = vsel %vm589_vm3, %v572_v55, 0.0  ;;  %v482_v11 = vadd.f32 %v1307_v40, %v481_v28  ;;  %v487_v38 = vadd.f32 %v1418_v63, %v1307_v40  ;;  %v495_v52 = vadd.f32 %v1307_v40, %v494_v47 }
 0x117   :  { %v663_v4 = vadd.f32 %v662_v1, %v661_v61  ;;  %v573_v61 = vmax.f32 %v463_v53, 0.0  ;;  %v574_v3 = vmax.f32 %v466_v56, 0.0  ;;  %v694_v15 = vsel %vm589_vm3, %v575_v5, 0.0 }
 0x118   :  { %v578_v9 = vmax.f32 %v482_v11, 0.0  ;;  %v506_v34 = vadd.f32 %v993_v58, %v1307_v40 }
 0x119   :  { %v665_v8 = vadd.f32 %v664_v6, %v663_v4  ;;  %v497_v6 = vpop.f32.mrf.mxu1  ;;  %v690_v51 = vsel %vm589_vm3, %v573_v61, 0.0 }
 0x11a   :  { %v700_v28 = vsel %vm589_vm3, %v578_v9, 0.0  ;;  %v498_v63 = vadd.f32 %v1307_v40, %v497_v6  ;;  %v584_v45 = vmax.f32 %v506_v34, 0.0  ;;  %v820_v9 = vlaneseq }
 0x11b   :  { %v667_v14 = vadd.f32 %v666_v29, %v665_v8  ;;  %v692_v29 = vsel %vm589_vm3, %v574_v3, 0.0 }
 0x11d   :  { %v669_v17 = vadd.f32 %v668_v59, %v667_v14  ;;  %v996_v14 = vpop.f32.mrf.mxu1  ;;  %v577_v59 = vmax.f32 %v479_v7, 0.0 }
 0x11f   :  { %v671_v22 = vadd.f32 %v670_v18, %v669_v17  ;;  %v696_v17 = vsel %vm589_vm3, %v576_v10, 0.0  ;;  %v490_v18 = vadd.f32 %v989_v19, %v1307_v40  ;;  %v510_v21 = vpop.f32.mrf.mxu1  ;;  %v503_v19 = vadd.f32 %v992_v37, %v1307_v40 }
 0x121   :  { %v673_v27 = vadd.f32 %v672_v23, %v671_v22  ;;  %v579_v22 = vmax.f32 %v487_v38, 0.0  ;;  %v698_v23 = vsel %vm589_vm3, %v577_v59, 0.0  ;;  %v583_v42 = vmax.f32 %v503_v19, 0.0 }
 0x123   :  { %v675_v32 = vadd.f32 %v674_v12, %v673_v27  ;;  %v580_v27 = vmax.f32 %v490_v18, 0.0  ;;  %v997_v12 = vpop.f32.mrf.mxu1  ;;  %v702_v31 = vsel %vm589_vm3, %v579_v22, 0.0  ;;  %v710_v48 = vsel %vm589_vm3, %v583_v42, 0.0  ;;  %v894_v22 = vld [vmem:[%s1503_s4] ss:$0 sm:$0xff] }
 0x124   :  { %v522_v56 = vadd.f32 %v997_v12, %v1307_v40 }
 0x125   :  { %v677_v35 = vadd.f32 %v676_v41, %v675_v32  ;;  %v581_v32 = vmax.f32 %v495_v52, 0.0  ;;  %v704_v41 = vsel %vm589_vm3, %v580_v27, 0.0  ;;  %v513_v39 = vpop.f32.mrf.mxu1 }
 0x126   :  { %v514_v37 = vadd.f32 %v1307_v40, %v513_v39 }
 0x127   :  { %v679_v43 = vadd.f32 %v678_v0, %v677_v35  ;;  %v582_v35 = vmax.f32 %v498_v63, 0.0 }
 0x129   :  { %v681_v46 = vadd.f32 %v680_v44, %v679_v43  ;;  %v706_v43 = vsel %vm589_vm3, %v581_v32, 0.0  ;;  %v511_v44 = vadd.f32 %v1307_v40, %v510_v21  ;;  %v821_v21 = vshrl.u32 %v820_v9, 7 }
 0x12b   :  { %v683_v54 = vadd.f32 %v682_v62, %v681_v46  ;;  %v708_v46 = vsel %vm589_vm3, %v582_v35, 0.0  ;;  %v519_v62 = vadd.f32 %v996_v14, %v1307_v40  ;;  %v585_v53 = vmax.f32 %v511_v44, 0.0 }
 0x12d   :  { %v685_v57 = vadd.f32 %v684_v24, %v683_v54  ;;  %v653_v54 = vrot.slane %v1410_v50, 4  ;;  %v712_v24 = vsel %vm589_vm3, %v584_v45, 0.0  ;;  %v714_v49 = vsel %vm589_vm3, %v585_v53, 0.0 }
 0x12f   :  { %v687_v1 = vadd.f32 %v686_v60, %v685_v57  ;;  %v586_v57 = vmax.f32 %v514_v37, 0.0  ;;  %v587_v60 = vmax.f32 %v519_v62, 0.0  ;;  %v654_v61 = vadd.f32 %v653_v54, %v1410_v50 }
 0x131   :  { %v689_v4 = vadd.f32 %v688_v2, %v687_v1  ;;  %v588_v2 = vmax.f32 %v522_v56, 0.0  ;;  %v716_v25 = vsel %vm589_vm3, %v586_v57, 0.0  ;;  %v655_v6 = vrot.slane %v654_v61, 2 }
 0x133   :  { %v691_v8 = vadd.f32 %v690_v51, %v689_v4  ;;  %v718_v4 = vsel %vm589_vm3, %v587_v60, 0.0  ;;  %v720_v51 = vsel %vm589_vm3, %v588_v2, 0.0  ;;  %v656_v40 = vadd.f32 %v655_v6, %v654_v61 }
 0x135   :  { %v693_v13 = vadd.f32 %v692_v29, %v691_v8  ;;  %v657_v29 = vrot.slane %v656_v40, 1 }
 0x137   :  { %v695_v16 = vadd.f32 %v694_v15, %v693_v13  ;;  %v658_v50 = vadd.f32 %v657_v29, %v656_v40 }
 0x139   :  { %v697_v20 = vadd.f32 %v696_v17, %v695_v16  ;;  %v729_v38 = vmul.f32 0.00390625, %v658_v50  ;;  %v1040_v17 = vmov 1966171168  }
 0x13a   :  { %v818_v18 = vunpack.c.l.s4 %v1040_v17 }
 0x13b   :  { %v699_v26 = vadd.f32 %v698_v23, %v697_v20 }
 0x13c   :  { %v819_v20 = vunpack.c.0.s8 %v818_v18 }
 0x13d   :  { %v701_v30 = vadd.f32 %v700_v28, %v699_v26 }
 0x13e   :  { %v822_v23 = vsub.s32 %v819_v20, %v821_v21 }
 0x13f   :  { %v703_v33 = vadd.f32 %v702_v31, %v701_v30 }
 0x141   :  { %v705_v0 = vadd.f32 %v704_v41, %v703_v33 }
 0x143   :  { %v707_v36 = vadd.f32 %v706_v43, %v705_v0 }
 0x145   :  { %v709_v47 = vadd.f32 %v708_v46, %v707_v36 }
 0x147   :  { %v711_v55 = vadd.f32 %v710_v48, %v709_v47 }
 0x149   :  { %v713_v58 = vadd.f32 %v712_v24, %v711_v55 }
 0x14b   :  { %v715_v1 = vadd.f32 %v714_v49, %v713_v58 }
 0x14d   :  { %v717_v3 = vadd.f32 %v716_v25, %v715_v1 }
 0x14f   :  { %v719_v5 = vadd.f32 %v718_v4, %v717_v3 }
 0x151   :  { %v721_v7 = vadd.f32 %v720_v51, %v719_v5 }
 0x153   :  { %v722_v8 = vrot.slane %v721_v7, 4 }
 0x155   :  { %v723_v10 = vadd.f32 %v722_v8, %v721_v7 }
 0x157   :  { %v724_v11 = vrot.slane %v723_v10, 2 }
 0x159   :  { %v725_v13 = vadd.f32 %v724_v11, %v723_v10 }
 0x15b   :  { %v726_v14 = vrot.slane %v725_v13, 1 }
 0x15d   :  { %v727_v15 = vadd.f32 %v726_v14, %v725_v13 }
 0x15f   :  { %v730_v59 = vmul.f32 0.00390625, %v727_v15 }
 0x161   :  { %v743_v16 = vsel %vm742_vm5, %v730_v59, %v729_v38 }
 0x162   :  { %1003 = vmatmul.mubr.msk.f32.vlgmr.msra.gmra.mxu1 %vm589_vm3, %v743_v16 }
 0x222   :  { %v812_v52 = vpop.f32.mrf.mxu1 }
 0x223   :  { %v813_v26 = vadd.f32 %v894_v22, %v812_v52 }
 0x224   :  { %v1004_v27 = vpop.f32.mrf.mxu1 }
 0x225   :  { %v823_v28 = vrot.slane %v813_v26, %v822_v23 }
 0x227   :  { %v824_v63 = vcombine.high %v823_v28, %v823_v28  ;;  %v831_v30 = vrot.slane %v823_v28, %v822_v23 }
 0x229   :  { %v838_v12 = vrot.slane %v824_v63, %v822_v23  ;;  %842 = vst.msk [vmem:[#allocation2] sm:$0x1] %vm841_vm6, %v831_v30 }
 0x22b   :  { %843 = vst.msk [vmem:[#allocation2 + $0x1] sm:$0x1] %vm841_vm6, %v838_v12 }
 0x22c   :  { %1026 = shalt.err (!%p1023_p4)
}
 0x22d   :  { %s1042_s4 = smov 16   ;;  %s1043_s1 = smov 1  }
 0x22e   :  { %855 = dma.vmem_to_hbm [thread:$0]  %s850_s24, 32, %s1504_s5, [#allocation3], %s1042_s4, %s1042_s4, %s1043_s1  }
 0x22f   :  { %1035 = dma.done.wait [#allocation3], 32  }
 0x230   :  { %1036 = vsyncadd [#allocation3], 4294967264 }
 0x231   :  { %859 = vsyncpa [#allocation3], 1 }

// kernel: attention_classifier_forward.2
= control target key start
LH: loop header
LB: loop body
LE: loop exit
PB: predicated region body
PF: predicated region fallthrough
CT: control target
= control target key end

     0   :  { %12 = vsyncpa [#allocation3], 0  ;;  %s6446_s0 = inlined_call_operand.vmem [shape: f32[2,8,128], index: 0, kind: input, shape index: {}]   ;;  %s6447_s1 = inlined_call_operand.hbm [shape: bf16[128,384], index: 1, kind: input, shape index: {}]   ;;  %s6448_s2 = inlined_call_operand.hbm [shape: f32[1,384], index: 2, kind: input, shape index: {}]   ;;  %s6449_s3 = inlined_call_operand.hbm [shape: bf16[128,128], index: 3, kind: input, shape index: {}]   ;;  %s6450_s4 = inlined_call_operand.vmem [shape: f32[1,128], index: 4, kind: input, shape index: {}]   ;;  %s6451_s5 = inlined_call_operand.vmem [shape: f32[1,128], index: 5, kind: input, shape index: {}]   ;;  %s6452_s6 = inlined_call_operand.hbm [shape: f32[1,128], index: 6, kind: input, shape index: {}]   ;;  %s6453_s7 = inlined_call_operand.vmem [shape: f32[2,8,128], index: 7, kind: output, shape index: {}]  }
   0x1   :  { %13 = vsyncpa [#allocation5], 0 }
   0x2   :  { %14 = vsyncpa [#allocation8], 0  ;;  %s5297_s24 = smov [#allocation4]   ;;  %s5298_s26 = smov [#allocation2]  }
   0x3   :  { %s35_s25 = sshll.u32 %s5297_s24, 4  ;;  %s22_s27 = sshll.u32 %s5298_s26, 4  ;;  %s36_s25 = int_to_ptr.vmem [resolvable:$true] %s35_s25  ;;  %s23_s27 = int_to_ptr.vmem [resolvable:$true] %s22_s27 }
   0x4   :  { %s5219_s28 = scalar_lea.vmem %s36_s25, 48  ;;  %s5223_s29 = scalar_lea.vmem %s36_s25, 64 }
   0x5   :  { %p5220_p0 = scmp.ne.s32.totalorder %s36_s25, %s5219_s28  ;;  %p5224_p1 = scmp.lt.s32.totalorder %s36_s25, %s36_s25 }
   0x6   :  { %p5225_p2 = scmp.lt.s32.totalorder %s5223_s29, %s5219_s28 }
   0x8   :  { %p5226_p3 = por %p5225_p2, %p5224_p1 }
   0xa   :  { %p5227_p4 = pnand %p5226_p3, %p5220_p0 }
   0xc   :  { %5230 = shalt.err (!%p5227_p4)
}
   0xd   :  { %38 = dma.hbm_to_vmem [thread:$0]  %s6448_s2, 48, %s36_s25, [#allocation5]  }
   0xe   :  { %s5239_s9 = scalar_lea.vmem %s23_s27, 3072  ;;  %p5244_p6 = scmp.lt.s32.totalorder %s23_s27, %s23_s27 }
   0xf   :  { %p5240_p5 = scmp.ne.s32.totalorder %s23_s27, %s5239_s9  ;;  %p5245_p7 = scmp.lt.s32.totalorder %s5239_s9, %s5239_s9 }
  0x11   :  { %p5246_p8 = por %p5245_p7, %p5244_p6 }
  0x13   :  { %p5247_p9 = pnand %p5246_p8, %p5240_p5 }
  0x15   :  { %5250 = shalt.err (!%p5247_p9)
}
  0x16   :  { %s5299_s10 = smov 192   ;;  %s5300_s11 = smov 12  }
  0x17   :  { %28 = dma.hbm_to_vmem [thread:$0]  %s6447_s1, 3072, %s23_s27, [#allocation3], %s5299_s10, %s5299_s10, %s5300_s11  }
  0x18   :  { %s5301_s14 = smov [#allocation6]  }
  0x19   :  { %s44_s15 = sshll.u32 %s5301_s14, 4  ;;  %s45_s15 = int_to_ptr.vmem [resolvable:$true] %s44_s15 }
  0x1a   :  { %s5259_s16 = scalar_lea.vmem %s45_s15, 1024  ;;  %p5264_p11 = scmp.lt.s32.totalorder %s45_s15, %s45_s15 }
  0x1b   :  { %p5260_p10 = scmp.ne.s32.totalorder %s45_s15, %s5259_s16  ;;  %p5265_p12 = scmp.lt.s32.totalorder %s5259_s16, %s5259_s16 }
  0x1d   :  { %p5266_p13 = por %p5265_p12, %p5264_p11 }
  0x1f   :  { %p5267_p0 = pnand %p5266_p13, %p5260_p10 }
  0x21   :  { %5270 = shalt.err (!%p5267_p0)
}
  0x22   :  { %s5302_s2 = smov 64   ;;  %s5303_s17 = smov 4  }
  0x23   :  { %50 = dma.hbm_to_vmem [thread:$0]  %s6449_s3, 1024, %s45_s15, [#allocation5], %s5302_s2, %s5302_s2, %s5303_s17  }
  0x24   :  { %s5304_s20 = smov [#allocation7]  }
  0x25   :  { %s61_s1 = sshll.u32 %s5304_s20, 4  ;;  %s62_s1 = int_to_ptr.vmem [resolvable:$true] %s61_s1 }
  0x26   :  { %s5279_s21 = scalar_lea.vmem %s62_s1, 16  ;;  %s5283_s22 = scalar_lea.vmem %s62_s1, 32 }
  0x27   :  { %p5280_p1 = scmp.ne.s32.totalorder %s62_s1, %s5279_s21  ;;  %p5284_p2 = scmp.lt.s32.totalorder %s62_s1, %s62_s1 }
  0x28   :  { %p5285_p3 = scmp.lt.s32.totalorder %s5283_s22, %s5279_s21 }
  0x2a   :  { %p5286_p4 = por %p5285_p3, %p5284_p2 }
  0x2c   :  { %p5287_p5 = pnand %p5286_p4, %p5280_p1 }
  0x2e   :  { %5290 = shalt.err (!%p5287_p5)
}
  0x2f   :  { %64 = dma.hbm_to_vmem [thread:$0]  %s6452_s6, 16, %s62_s1, [#allocation8]  }
  0x30   :  { %5291 = dma.done.wait [#allocation3], 3072  }
  0x31   :  { %5292 = vsyncadd [#allocation3], 4294964224 }
  0x32   :  { %5293 = dma.done.wait [#allocation5], 1072  }
  0x33   :  { %5294 = vsyncadd [#allocation5], 4294966224 }
  0x34   :  { %5295 = dma.done.wait [#allocation8], 16  }
  0x35   :  { %5296 = vsyncadd [#allocation8], 4294967280  ;;  %v5305_v0 = vmov 0   ;;  %v5306_v1 = vmov 0.0   ;;  %v5103_v2 = vld [vmem:[#allocation2 + $0xac] ss:$12 sps:$4 sm:$0xff]   ;;  %v115_v29 = vlaneseq }
  0x36   :  { %290 = vmatprep.mubr.bf16.mxu0 %v5305_v0  ;;  %4817 = vmatprep.subr.bf16.mxu1 %v5306_v1  ;;  %v5105_v3 = vld [vmem:[#allocation2 + $0xa8] ss:$12 sps:$4 sm:$0xff]   ;;  %v5108_v5 = vld [vmem:[#allocation2 + $0x90] ss:$12 sps:$4 sm:$0xff]   ;;  %v5111_v7 = vld [vmem:[#allocation2 + $0x78] ss:$12 sps:$4 sm:$0xff]  }
  0x37   :  { %258 = vmatprep.subr.bf16.mxu0 %v5103_v2  ;;  %v5106_v4 = vld [vmem:[#allocation2 + $0x94] ss:$12 sps:$4 sm:$0xff]   ;;  %v5109_v6 = vld [vmem:[#allocation2 + $0x7c] ss:$12 sps:$4 sm:$0xff]   ;;  %v5112_v8 = vld [vmem:[#allocation2 + $0x64] ss:$12 sps:$4 sm:$0xff]  }
  0x38   :  { %259 = vmatpush1.bf16.msra.mxu0 %v5105_v3  ;;  %v5114_v9 = vld [vmem:[#allocation2 + $0x60] ss:$12 sps:$4 sm:$0xff]   ;;  %v5127_v11 = vld [vmem:[#allocation2 + $0xb0] ss:$12 sps:$4 sm:$0xff]   ;;  %v5128_v12 = vld [vmem:[#allocation2 + $0x98] ss:$12 sps:$4 sm:$0xff]  }
  0x39   :  { %260 = vmatprep.subr.bf16.mxu0 %v5106_v4  ;;  %v5115_v10 = vld [vmem:[#allocation2 + $0x4c] ss:$12 sps:$4 sm:$0xff]   ;;  %4818 = vmatpush3.bf16.msra.mxu1 %v5127_v11  ;;  %v5117_v13 = vld [vmem:[#allocation2 + $0x48] ss:$12 sps:$4 sm:$0xff]   ;;  %v5120_v16 = vld [vmem:[#allocation2 + $0x30] ss:$12 sps:$4 sm:$0xff]  }
  0x3a   :  { %v5118_v14 = vld [vmem:[#allocation2 + $0x34] ss:$12 sps:$4 sm:$0xff]   ;;  %4819 = vmatprep.subr.bf16.mxu1 %v5306_v1  ;;  %v5121_v17 = vld [vmem:[#allocation2 + $0x1c] ss:$12 sps:$4 sm:$0xff]   ;;  %v5123_v19 = vld [vmem:[#allocation2 + $0x18] ss:$12 sps:$4 sm:$0xff]  }
  0x3b   :  { %v5129_v15 = vld [vmem:[#allocation2 + $0x80] ss:$12 sps:$4 sm:$0xff]   ;;  %v5130_v18 = vld [vmem:[#allocation2 + $0x68] ss:$12 sps:$4 sm:$0xff]   ;;  %v5124_v20 = vld [vmem:[#allocation2 + $0x4] ss:$12 sps:$4 sm:$0xff]  }
  0x3c   :  { %261 = vmatpush1.bf16.msra.mxu0 %v5108_v5  ;;  %v5126_v21 = vld [vmem:[#allocation2] ss:$12 sps:$4 sm:$0xff]   ;;  %v5131_v25 = vld [vmem:[#allocation2 + $0x50] ss:$12 sps:$4 sm:$0xff]   ;;  %v5132_v26 = vld [vmem:[#allocation2 + $0x38] ss:$12 sps:$4 sm:$0xff]  }
  0x3d   :  { %262 = vmatprep.subr.bf16.mxu0 %v5109_v6  ;;  %4820 = vmatpush3.bf16.msra.mxu1 %v5128_v12  ;;  %v78_v22 = vld [vmem:[%s6446_s0] sm:$0xff]  ;;  %v79_v23 = vld [vmem:[%s6446_s0 + $0x8] sm:$0xff]  ;;  %vm5307_vm0 = vmmov 0   ;;  %v5392_v30 = vshrl.u32 %v115_v29, 7  ;;  %s5308_s0 = smov 80   ;;  %s5309_s27 = smov 112  }
  0x3e   :  { %4821 = vmatprep.subr.bf16.mxu1 %v5306_v1  ;;  %v80_v24 = vpack.c.bf16 %v79_v23, %v78_v22  ;;  %v5133_v27 = vld [vmem:[#allocation2 + $0x20] ss:$12 sps:$4 sm:$0xff]   ;;  %v5134_v28 = vld [vmem:[#allocation2 + $0x8] ss:$12 sps:$4 sm:$0xff]   ;;  %4833 = vmatprep.mubr.msk.bf16.mxu1 %vm5307_vm0, %v5306_v1  ;;  %s5310_s28 = smov 96   ;;  %s5311_s29 = smov 48  }
  0x3f   :  { %v121_v31 = vsub.s32 1, %v5392_v30  ;;  %v113_v32 = vld [vmem:[#allocation4] sm:$0x7]  ;;  %v117_v33 = vsub.s32 0, %v5392_v30  ;;  %s5312_s30 = smov 32   ;;  %s5313_s8 = smov 16  }
  0x40   :  { %263 = vmatpush1.bf16.msra.mxu0 %v5111_v7  ;;  %v125_v44 = vsub.s32 2, %v5392_v30  ;;  %v5314_v50 = vmov 1983009808   ;;  %v5315_v54 = vmov 1934713408   ;;  %vm2154_vm1 = vcmask 130048  }
  0x41   :  { %264 = vmatprep.subr.bf16.mxu0 %v5112_v8  ;;  %4822 = vmatpush3.bf16.msra.mxu1 %v5129_v15  ;;  %v122_v34 = vrot.slane %v113_v32, %v121_v31  ;;  %v118_v37 = vrot.slane %v113_v32, %v117_v33  ;;  %v389_v51 = vunpack.c.l.s4 %v5314_v50  ;;  %v453_v55 = vunpack.c.l.s4 %v5315_v54 }
  0x42   :  { %4823 = vmatprep.subr.bf16.mxu1 %v5306_v1  ;;  %v126_v46 = vrot.slane %v113_v32, %v125_v44  ;;  %vm3087_vm2 = vcmask 1043456   ;;  %vm2891_vm3 = vcmask 64512   ;;  %vm4423_vm4 = vcmask 261120  }
  0x43   :  { %v390_v56 = vunpack.c.0.s8 %v389_v51  ;;  %v454_v59 = vunpack.c.0.s8 %v453_v55  ;;  %vm4426_vm5 = vcmask 392192   ;;  %vm4429_vm6 = vcmask 523264  }
  0x44   :  { %265 = vmatpush1.bf16.msra.mxu0 %v5114_v9  ;;  %vm4432_vm7 = vcmask 654336   ;;  %vm4435_vm8 = vcmask 785408   ;;  %vm4438_vm9 = vcmask 916480  }
  0x45   :  { %266 = vmatprep.subr.bf16.mxu0 %v5115_v10  ;;  %4824 = vmatpush3.bf16.msra.mxu1 %v5130_v18  ;;  %v5480_v60 = vsub.s32 %v390_v56, %v5392_v30  ;;  %v5485_v4 = vsub.s32 %v454_v59, %v5392_v30 }
  0x46   :  { %4825 = vmatprep.subr.bf16.mxu1 %v5306_v1 }
  0x48   :  { %267 = vmatpush1.bf16.msra.mxu0 %v5117_v13 }
  0x49   :  { %268 = vmatprep.subr.bf16.mxu0 %v5118_v14  ;;  %4826 = vmatpush3.bf16.msra.mxu1 %v5131_v25 }
  0x4a   :  { %4827 = vmatprep.subr.bf16.mxu1 %v5306_v1 }
  0x4c   :  { %269 = vmatpush1.bf16.msra.mxu0 %v5120_v16 }
  0x4d   :  { %270 = vmatprep.subr.bf16.mxu0 %v5121_v17  ;;  %4828 = vmatpush3.bf16.msra.mxu1 %v5132_v26 }
  0x4e   :  { %4829 = vmatprep.subr.bf16.mxu1 %v5306_v1 }
  0x50   :  { %271 = vmatpush1.bf16.msra.mxu0 %v5123_v19 }
  0x51   :  { %272 = vmatprep.subr.bf16.mxu0 %v5124_v20  ;;  %4830 = vmatpush3.bf16.msra.mxu1 %v5133_v27 }
  0x52   :  { %4831 = vmatprep.subr.bf16.mxu1 %v5306_v1 }
  0x54   :  { %273 = vmatpush1.bf16.msra.mxu0 %v5126_v21 }
  0x55   :  { %4861 = vmatprep.subr.bf16.mxu0 %v5306_v1  ;;  %4832 = vmatpush3.bf16.msra.mxu1 %v5134_v28 }
  0x56   :  { %4837 = vmatprep.subr.bf16.mxu1 %v5306_v1 }
  0x57   :  { %291 = vmatmul.mubr.bf16.vlgmr.msra.gmra.mxu0 %v80_v24 }
  0x58   :  { %4863 = vmatprep.mubr.msk.bf16.mxu0 %vm5307_vm0, %v5306_v1  ;;  %4834 = vmatmul.mubr.bf16.vlgmr.msra.gmra.mxu1 %v80_v24 }
  0x59   :  { %4839 = vmatprep.mubr.msk.bf16.mxu1 %vm5307_vm0, %v5306_v1 }
 0x117   :  { %v292_v35 = vpop.f32.mrf.mxu0 }
 0x118   :  { %v5402_v39 = vadd.f32 %v292_v35, %v118_v37  ;;  %v335_v45 = vpop.f32.mrf.mxu1 }
 0x119   :  { %v294_v36 = vpop.f32.mrf.mxu0  ;;  %v5461_v48 = vadd.f32 %v335_v45, %v126_v46 }
 0x11a   :  { %v5396_v38 = vadd.f32 %v294_v36, %v122_v34  ;;  %v4835_v47 = vpop.f32.mrf.mxu1 }
 0x11b   :  { %v296_v40 = vpop.f32.mrf.mxu0 }
 0x11c   :  { %960 = vrot.lane.b32.xlu1 %v5396_v38, %s5308_s0  ;;  %948 = vrot.lane.b32.xlu0 %v5396_v38, %s5309_s27  ;;  %v5434_v43 = vadd.f32 %v296_v40, %v118_v37  ;;  %v338_v49 = vpop.f32.mrf.mxu1 }
 0x11d   :  { %v298_v41 = vpop.f32.mrf.mxu0  ;;  %v5475_v52 = vadd.f32 %v338_v49, %v126_v46 }
 0x11e   :  { %v5428_v42 = vadd.f32 %v298_v41, %v122_v34  ;;  %v4836_v53 = vpop.f32.mrf.mxu1 }
 0x120   :  { %954 = vrot.lane.b32.xlu0 %v5396_v38, %s5310_s28  ;;  %344 = vrot.lane.b32.xlu1 %v5402_v39, %s5309_s27 }
 0x124   :  { %350 = vrot.lane.b32.xlu0 %v5402_v39, %s5310_s28  ;;  %356 = vrot.lane.b32.xlu1 %v5402_v39, %s5308_s0 }
 0x128   :  { %966 = vrot.lane.b32.xlu0 %v5396_v38, %s5302_s2  ;;  %972 = vrot.lane.b32.xlu1 %v5396_v38, %s5311_s29 }
 0x12c   :  { %978 = vrot.lane.b32.xlu0 %v5396_v38, %s5312_s30  ;;  %984 = vrot.lane.b32.xlu1 %v5396_v38, %s5313_s8 }
 0x130   :  { %362 = vrot.lane.b32.xlu0 %v5402_v39, %s5302_s2  ;;  %368 = vrot.lane.b32.xlu1 %v5402_v39, %s5311_s29 }
 0x134   :  { %374 = vrot.lane.b32.xlu0 %v5402_v39, %s5312_s30  ;;  %380 = vrot.lane.b32.xlu1 %v5402_v39, %s5313_s8 }
 0x138   :  { %950 = vrot.lane.b32.xlu0 %v5428_v42, %s5309_s27  ;;  %956 = vrot.lane.b32.xlu1 %v5428_v42, %s5310_s28 }
 0x13c   :  { %962 = vrot.lane.b32.xlu0 %v5428_v42, %s5308_s0  ;;  %346 = vrot.lane.b32.xlu1 %v5434_v43, %s5309_s27 }
 0x140   :  { %352 = vrot.lane.b32.xlu0 %v5434_v43, %s5310_s28  ;;  %358 = vrot.lane.b32.xlu1 %v5434_v43, %s5308_s0 }
 0x144   :  { %968 = vrot.lane.b32.xlu0 %v5428_v42, %s5302_s2  ;;  %974 = vrot.lane.b32.xlu1 %v5428_v42, %s5311_s29 }
 0x148   :  { %980 = vrot.lane.b32.xlu0 %v5428_v42, %s5312_s30  ;;  %986 = vrot.lane.b32.xlu1 %v5428_v42, %s5313_s8 }
 0x14c   :  { %364 = vrot.lane.b32.xlu0 %v5434_v43, %s5302_s2  ;;  %370 = vrot.lane.b32.xlu1 %v5434_v43, %s5311_s29 }
 0x150   :  { %376 = vrot.lane.b32.xlu0 %v5434_v43, %s5312_s30  ;;  %382 = vrot.lane.b32.xlu1 %v5434_v43, %s5313_s8 }
 0x154   :  { %1552 = vrot.lane.b32.xlu1 %v5461_v48, %s5309_s27  ;;  %1558 = vrot.lane.b32.xlu0 %v5461_v48, %s5310_s28 }
 0x158   :  { %1564 = vrot.lane.b32.xlu1 %v5461_v48, %s5308_s0  ;;  %1570 = vrot.lane.b32.xlu0 %v5461_v48, %s5302_s2 }
 0x15c   :  { %1588 = vrot.lane.b32.xlu0 %v5461_v48, %s5313_s8  ;;  %1576 = vrot.lane.b32.xlu1 %v5461_v48, %s5311_s29 }
 0x160   :  { %1582 = vrot.lane.b32.xlu1 %v5461_v48, %s5312_s30 }
 0x18e   :  { %v961_v57 = vpop.permute.xlu1 %960  ;;  %v949_v58 = vpop.permute.xlu0 %948 }
 0x18f   :  { %v1006_v61 = vcombine.low %v949_v58, %v961_v57  ;;  %v1007_v62 = vcombine.high %v949_v58, %v961_v57 }
 0x191   :  { %v1014_v5 = vrot.slane %v1006_v61, %v5480_v60  ;;  %v1021_v6 = vrot.slane %v1007_v62, %v5480_v60 }
 0x192   :  { %v955_v63 = vpop.permute.xlu0 %954  ;;  %v345_v0 = vpop.permute.xlu1 %344 }
 0x193   :  { %v990_v2 = vcombine.low %v5396_v38, %v955_v63  ;;  %v991_v3 = vcombine.high %v5396_v38, %v955_v63 }
 0x195   :  { %v998_v7 = vrot.slane %v990_v2, %v5480_v60  ;;  %v1005_v8 = vrot.slane %v991_v3, %v5480_v60 }
 0x196   :  { %v351_v9 = vpop.permute.xlu0 %350  ;;  %v357_v10 = vpop.permute.xlu1 %356 }
 0x197   :  { %v1054_v11 = vcombine.low %v998_v7, %v1014_v5  ;;  %v1055_v12 = vcombine.high %v998_v7, %v1014_v5  ;;  %v1070_v13 = vcombine.low %v1005_v8, %v1021_v6  ;;  %v1071_v14 = vcombine.high %v1005_v8, %v1021_v6 }
 0x198   :  { %v386_v15 = vcombine.low %v5402_v39, %v351_v9  ;;  %v387_v16 = vcombine.high %v5402_v39, %v351_v9  ;;  %v402_v17 = vcombine.low %v345_v0, %v357_v10  ;;  %v403_v18 = vcombine.high %v345_v0, %v357_v10 }
 0x199   :  { %v1062_v19 = vrot.slane %v1054_v11, %v5485_v4  ;;  %v1069_v20 = vrot.slane %v1055_v12, %v5485_v4  ;;  %v1078_v21 = vrot.slane %v1070_v13, %v5485_v4  ;;  %v1085_v22 = vrot.slane %v1071_v14, %v5485_v4 }
 0x19a   :  { %v394_v23 = vrot.slane %v386_v15, %v5480_v60  ;;  %v401_v24 = vrot.slane %v387_v16, %v5480_v60  ;;  %v410_v25 = vrot.slane %v402_v17, %v5480_v60  ;;  %v417_v26 = vrot.slane %v403_v18, %v5480_v60  ;;  %v967_v27 = vpop.permute.xlu0 %966  ;;  %v973_v28 = vpop.permute.xlu1 %972 }
 0x19b   :  { %v4644_v29 = vcombine.low %v1062_v19, %v1069_v20  ;;  %v4646_v30 = vcombine.high %v1062_v19, %v1069_v20  ;;  %v4648_v31 = vcombine.low %v1078_v21, %v1085_v22  ;;  %v4650_v32 = vcombine.high %v1078_v21, %v1085_v22 }
 0x19c   :  { %v450_v33 = vcombine.low %v394_v23, %v410_v25  ;;  %v451_v34 = vcombine.high %v394_v23, %v410_v25  ;;  %v466_v35 = vcombine.low %v401_v24, %v417_v26  ;;  %v467_v36 = vcombine.high %v401_v24, %v417_v26 }
 0x19d   :  { %v5502_v37 = vrot.slane %v4644_v29, %v5480_v60  ;;  %v5505_v38 = vrot.slane %v4646_v30, %v5480_v60  ;;  %v5508_v39 = vrot.slane %v4648_v31, %v5480_v60  ;;  %v5511_v40 = vrot.slane %v4650_v32, %v5480_v60 }
 0x19e   :  { %v458_v41 = vrot.slane %v450_v33, %v5485_v4  ;;  %v465_v44 = vrot.slane %v451_v34, %v5485_v4  ;;  %v474_v45 = vrot.slane %v466_v35, %v5485_v4  ;;  %v481_v46 = vrot.slane %v467_v36, %v5485_v4  ;;  %v979_v47 = vpop.permute.xlu0 %978  ;;  %v985_v49 = vpop.permute.xlu1 %984 }
 0x19f   :  { %v1022_v50 = vcombine.low %v967_v27, %v979_v47  ;;  %v1023_v51 = vcombine.high %v967_v27, %v979_v47  ;;  %v1038_v53 = vcombine.low %v973_v28, %v985_v49  ;;  %v1039_v54 = vcombine.high %v973_v28, %v985_v49 }
 0x1a0   :  { %v4628_v55 = vcombine.low %v458_v41, %v465_v44  ;;  %v4630_v56 = vcombine.high %v458_v41, %v465_v44  ;;  %v4632_v57 = vcombine.low %v474_v45, %v481_v46  ;;  %v4634_v58 = vcombine.high %v474_v45, %v481_v46 }
 0x1a1   :  { %v1030_v59 = vrot.slane %v1022_v50, %v5480_v60  ;;  %v1037_v61 = vrot.slane %v1023_v51, %v5480_v60  ;;  %v1046_v62 = vrot.slane %v1038_v53, %v5480_v60  ;;  %v1053_v63 = vrot.slane %v1039_v54, %v5480_v60 }
 0x1a2   :  { %v5522_v0 = vrot.slane %v4628_v55, %v5480_v60  ;;  %v5525_v2 = vrot.slane %v4630_v56, %v5480_v60  ;;  %v5528_v3 = vrot.slane %v4632_v57, %v5480_v60  ;;  %v5531_v5 = vrot.slane %v4634_v58, %v5480_v60  ;;  %v363_v6 = vpop.permute.xlu0 %362  ;;  %v369_v7 = vpop.permute.xlu1 %368 }
 0x1a3   :  { %v1086_v8 = vcombine.low %v1030_v59, %v1046_v62  ;;  %v1087_v9 = vcombine.high %v1030_v59, %v1046_v62  ;;  %v1102_v10 = vcombine.low %v1037_v61, %v1053_v63  ;;  %v1103_v11 = vcombine.high %v1037_v61, %v1053_v63 }
 0x1a4   :  { %v722_v12 = vcombine.low %v5522_v0, %v5525_v2  ;;  %v754_v13 = vcombine.low %v5528_v3, %v5531_v5  ;;  %v723_v18 = vcombine.high %v5522_v0, %v5525_v2  ;;  %v755_v21 = vcombine.high %v5528_v3, %v5531_v5 }
 0x1a5   :  { %v5538_v14 = vrot.slane %v1086_v8, %v5485_v4  ;;  %v5541_v15 = vrot.slane %v1087_v9, %v5485_v4  ;;  %v5544_v16 = vrot.slane %v1102_v10, %v5485_v4  ;;  %v5547_v17 = vrot.slane %v1103_v11, %v5485_v4 }
 0x1a6   :  { %v375_v19 = vpop.permute.xlu0 %374  ;;  %v381_v20 = vpop.permute.xlu1 %380  ;;  %v1326_v22 = vcombine.low %v5502_v37, %v5505_v38  ;;  %v1358_v23 = vcombine.low %v5508_v39, %v5511_v40  ;;  %v5558_v24 = vrot.slane %v722_v12, %v5485_v4  ;;  %v5567_v32 = vrot.slane %v754_v13, %v5485_v4 }
 0x1a7   :  { %v418_v25 = vcombine.low %v363_v6, %v375_v19  ;;  %v419_v26 = vcombine.high %v363_v6, %v375_v19  ;;  %v434_v27 = vcombine.low %v369_v7, %v381_v20  ;;  %v435_v28 = vcombine.high %v369_v7, %v381_v20 }
 0x1a8   :  { %v4645_v29 = vcombine.low %v5538_v14, %v5541_v15  ;;  %v4647_v30 = vcombine.high %v5538_v14, %v5541_v15  ;;  %v4649_v31 = vcombine.low %v5544_v16, %v5547_v17  ;;  %v1334_v45 = vrot.slane %v1326_v22, %v5485_v4 }
 0x1a9   :  { %v426_v33 = vrot.slane %v418_v25, %v5480_v60  ;;  %v433_v34 = vrot.slane %v419_v26, %v5480_v60  ;;  %v442_v35 = vrot.slane %v434_v27, %v5480_v60  ;;  %v449_v36 = vrot.slane %v435_v28, %v5480_v60 }
 0x1aa   :  { %v951_v41 = vpop.permute.xlu0 %950  ;;  %v957_v44 = vpop.permute.xlu1 %956  ;;  %v1366_v46 = vrot.slane %v1358_v23, %v5485_v4  ;;  %v4651_v55 = vcombine.high %v5544_v16, %v5547_v17  ;;  %v786_v10 = vcombine.low %v5558_v24, %v5567_v32  ;;  %v769_v0 = vrot.slane %v755_v21, %v5485_v4 }
 0x1ab   :  { %v1126_v47 = vcombine.low %v5428_v42, %v957_v44  ;;  %v1127_v49 = vcombine.high %v5428_v42, %v957_v44  ;;  %v482_v50 = vcombine.low %v426_v33, %v442_v35  ;;  %v483_v51 = vcombine.high %v426_v33, %v442_v35 }
 0x1ac   :  { %v498_v53 = vcombine.low %v433_v34, %v449_v36  ;;  %v499_v54 = vcombine.high %v433_v34, %v449_v36  ;;  %v1390_v56 = vcombine.low %v1334_v45, %v1366_v46  ;;  %v1391_v19 = vcombine.high %v1334_v45, %v1366_v46 }
 0x1ad   :  { %v1134_v57 = vrot.slane %v1126_v47, %v5480_v60  ;;  %v1141_v58 = vrot.slane %v1127_v49, %v5480_v60  ;;  %v490_v59 = vrot.slane %v482_v50, %v5485_v4  ;;  %v497_v61 = vrot.slane %v483_v51, %v5485_v4 }
 0x1ae   :  { %v506_v62 = vrot.slane %v498_v53, %v5485_v4  ;;  %v513_v42 = vrot.slane %v499_v54, %v5485_v4  ;;  %v963_v63 = vpop.permute.xlu0 %962  ;;  %v347_v6 = vpop.permute.xlu1 %346  ;;  %v1534_v7 = vpack.c.bf16 %v1390_v56, %v1390_v56  ;;  %v5604_v36 = vrot.slane %v4645_v29, %v5480_v60 }
 0x1af   :  { %v1142_v8 = vcombine.low %v951_v41, %v963_v63  ;;  %v1143_v9 = vcombine.high %v951_v41, %v963_v63  ;;  %v4629_v11 = vcombine.low %v490_v59, %v497_v61  ;;  %v4631_v12 = vcombine.high %v490_v59, %v497_v61 }
 0x1b0   :  { %v4633_v13 = vcombine.low %v506_v62, %v513_v42  ;;  %v4635_v14 = vcombine.high %v506_v62, %v513_v42  ;;  %v2159_v15 = vsel %vm2154_vm1, %v1534_v7, 0  ;;  %v5607_v41 = vrot.slane %v4647_v30, %v5480_v60 }
 0x1b1   :  { %v1150_v16 = vrot.slane %v1142_v8, %v5480_v60  ;;  %v1157_v17 = vrot.slane %v1143_v9, %v5480_v60  ;;  %v5591_v20 = vrot.slane %v4629_v11, %v5480_v60  ;;  %v5594_v22 = vrot.slane %v4631_v12, %v5480_v60  ;;  %4838 = vmatpush3.bf16.xpose.msra.mxu1 %v2159_v15 }
 0x1b2   :  { %v5597_v23 = vrot.slane %v4633_v13, %v5480_v60  ;;  %v5600_v25 = vrot.slane %v4635_v14, %v5480_v60  ;;  %v353_v26 = vpop.permute.xlu0 %352  ;;  %4843 = vmatprep.subr.bf16.mxu1 %v5306_v1  ;;  %v359_v35 = vpop.permute.xlu1 %358  ;;  %v5610_v44 = vrot.slane %v4649_v31, %v5480_v60  ;;  %v5613_v45 = vrot.slane %v4651_v55, %v5480_v60 }
 0x1b3   :  { %v1190_v27 = vcombine.low %v1134_v57, %v1150_v16  ;;  %v1191_v28 = vcombine.high %v1134_v57, %v1150_v16  ;;  %v1206_v33 = vcombine.low %v1141_v58, %v1157_v17  ;;  %v1207_v34 = vcombine.high %v1141_v58, %v1157_v17 }
 0x1b4   :  { %v1535_v29 = vpack.c.bf16 %v1391_v19, %v1391_v19  ;;  %v522_v30 = vcombine.low %v5434_v43, %v353_v26  ;;  %v523_v51 = vcombine.high %v5434_v43, %v353_v26  ;;  %v538_v31 = vcombine.low %v347_v6, %v359_v35 }
 0x1b5   :  { %v1198_v46 = vrot.slane %v1190_v27, %v5485_v4  ;;  %v1205_v47 = vrot.slane %v1191_v28, %v5485_v4  ;;  %v5618_v49 = vrot.slane %v1206_v33, %v5485_v4  ;;  %v5621_v50 = vrot.slane %v1207_v34, %v5485_v4 }
 0x1b6   :  { %v969_v53 = vpop.permute.xlu0 %968  ;;  %v738_v54 = vcombine.low %v5591_v20, %v5594_v22  ;;  %v739_v55 = vcombine.high %v5591_v20, %v5594_v22  ;;  %v770_v56 = vcombine.low %v5597_v23, %v5600_v25  ;;  %v930_v57 = vpack.c.bf16 %v786_v10, %v786_v10  ;;  %v975_v11 = vpop.permute.xlu1 %974 }
 0x1b7   :  { %v771_v58 = vcombine.high %v5597_v23, %v5600_v25  ;;  %v530_v59 = vrot.slane %v522_v30, %v5480_v60  ;;  %v537_v61 = vrot.slane %v523_v51, %v5480_v60  ;;  %v539_v43 = vcombine.high %v347_v6, %v359_v35 }
 0x1b8   :  { %v4652_v62 = vcombine.low %v1198_v46, %v1205_v47  ;;  %v4654_v42 = vcombine.high %v1198_v46, %v1205_v47  ;;  %v4656_v63 = vcombine.low %v5618_v49, %v5621_v50  ;;  %4840 = vmatmul.mubr.msk.bf16.vlgmr.msra.gmra.mxu1 %vm2154_vm1, %v930_v57  ;;  %v2205_v7 = vsel %vm2154_vm1, %v1535_v29, 0 }
 0x1b9   :  { %4844 = vmatpush3.bf16.xpose.msra.mxu1 %v2205_v7  ;;  %v546_v8 = vrot.slane %v538_v31, %v5480_v60  ;;  %v553_v9 = vrot.slane %v539_v43, %v5480_v60  ;;  %v1342_v10 = vcombine.low %v5604_v36, %v5607_v41  ;;  %v1374_v6 = vcombine.low %v5610_v44, %v5613_v45 }
 0x1ba   :  { %4845 = vmatprep.mubr.msk.bf16.mxu1 %vm5307_vm0, %v5306_v1  ;;  %v787_v12 = vcombine.high %v5558_v24, %v5567_v32  ;;  %4849 = vmatprep.subr.bf16.mxu1 %v5306_v1  ;;  %v1327_v13 = vcombine.high %v5502_v37, %v5505_v38  ;;  %v1359_v14 = vcombine.high %v5508_v39, %v5511_v40  ;;  %v981_v26 = vpop.permute.xlu0 %980  ;;  %v987_v31 = vpop.permute.xlu1 %986 }
 0x1bb   :  { %v586_v15 = vcombine.low %v530_v59, %v546_v8  ;;  %v587_v16 = vcombine.high %v530_v59, %v546_v8  ;;  %v602_v17 = vcombine.low %v537_v61, %v553_v9  ;;  %v603_v19 = vcombine.high %v537_v61, %v553_v9 }
 0x1bc   :  { %v5655_v27 = vrot.slane %v1342_v10, %v5485_v4  ;;  %v5658_v28 = vrot.slane %v1374_v6, %v5485_v4  ;;  %v931_v24 = vpack.c.bf16 %v787_v12, %v787_v12  ;;  %v1341_v32 = vrot.slane %v1327_v13, %v5485_v4 }
 0x1bd   :  { %v594_v33 = vrot.slane %v586_v15, %v5485_v4  ;;  %v601_v37 = vrot.slane %v587_v16, %v5485_v4  ;;  %v610_v38 = vrot.slane %v602_v17, %v5485_v4  ;;  %v617_v39 = vrot.slane %v603_v19, %v5485_v4 }
 0x1be   :  { %v1394_v40 = vcombine.low %v5655_v27, %v5658_v28  ;;  %v1373_v34 = vrot.slane %v1359_v14, %v5485_v4  ;;  %v1158_v35 = vcombine.low %v969_v53, %v981_v26  ;;  %v1159_v46 = vcombine.high %v969_v53, %v981_v26  ;;  %v365_v6 = vpop.permute.xlu0 %364 }
 0x1bf   :  { %v4636_v47 = vcombine.low %v594_v33, %v601_v37  ;;  %v4638_v29 = vcombine.high %v594_v33, %v601_v37  ;;  %v4640_v30 = vcombine.low %v610_v38, %v617_v39  ;;  %v4642_v51 = vcombine.high %v610_v38, %v617_v39 }
 0x1c0   :  { %v5669_v57 = vrot.slane %v4652_v62, %v5480_v60  ;;  %v4658_v59 = vcombine.high %v5618_v49, %v5621_v50  ;;  %v1538_v61 = vpack.c.bf16 %v1394_v40, %v1394_v40  ;;  %4846 = vmatmul.mubr.msk.bf16.vlgmr.msra.gmra.mxu1 %vm2154_vm1, %v931_v24  ;;  %v1392_v43 = vcombine.low %v1341_v32, %v1373_v34  ;;  %v371_v24 = vpop.permute.xlu1 %370 }
 0x1c1   :  { %v5675_v7 = vrot.slane %v4654_v42, %v5480_v60  ;;  %v5678_v53 = vrot.slane %v4656_v63, %v5480_v60  ;;  %v1166_v8 = vrot.slane %v1158_v35, %v5480_v60  ;;  %v1173_v9 = vrot.slane %v1159_v46, %v5480_v60  ;;  %4851 = vmatprep.mubr.msk.bf16.mxu1 %vm5307_vm0, %v5306_v1 }
 0x1c2   :  { %v2343_v62 = vsel %vm2154_vm1, %v1538_v61, 0  ;;  %v1536_v49 = vpack.c.bf16 %v1392_v43, %v1392_v43  ;;  %v1174_v50 = vcombine.low %v975_v11, %v987_v31  ;;  %v1175_v10 = vcombine.high %v975_v11, %v987_v31  ;;  %v377_v40 = vpop.permute.xlu0 %376 }
 0x1c3   :  { %v5686_v12 = vrot.slane %v4636_v47, %v5480_v60  ;;  %v5689_v42 = vrot.slane %v4638_v29, %v5480_v60  ;;  %v5692_v63 = vrot.slane %v4640_v30, %v5480_v60  ;;  %v5695_v13 = vrot.slane %v4642_v51, %v5480_v60  ;;  %4862 = vmatpush3.bf16.xpose.msra.mxu0 %v2343_v62 }
 0x1c4   :  { %v2251_v14 = vsel %vm2154_vm1, %v1536_v49, 0  ;;  %v1182_v15 = vrot.slane %v1174_v50, %v5480_v60  ;;  %v1189_v11 = vrot.slane %v1175_v10, %v5480_v60  ;;  %v5704_v16 = vrot.slane %v738_v54, %v5485_v4  ;;  %4873 = vmatprep.subr.bf16.mxu0 %v5306_v1 }
 0x1c5   :  { %4850 = vmatpush3.bf16.xpose.msra.mxu1 %v2251_v14  ;;  %v5711_v17 = vrot.slane %v770_v56, %v5485_v4  ;;  %v1343_v19 = vcombine.high %v5604_v36, %v5607_v41  ;;  %v1375_v26 = vcombine.high %v5610_v44, %v5613_v45  ;;  %v737_v54 = vrot.slane %v723_v18, %v5485_v4 }
 0x1c6   :  { %v1222_v33 = vcombine.low %v1166_v8, %v1182_v15  ;;  %v1223_v37 = vcombine.high %v1166_v8, %v1182_v15  ;;  %v1238_v38 = vcombine.low %v1173_v9, %v1189_v11  ;;  %v1239_v39 = vcombine.high %v1173_v9, %v1189_v11  ;;  %4855 = vmatprep.subr.bf16.mxu1 %v5306_v1  ;;  %v383_v8 = vpop.permute.xlu1 %382 }
 0x1c7   :  { %v790_v56 = vcombine.low %v5704_v16, %v5711_v17  ;;  %v5725_v36 = vrot.slane %v1343_v19, %v5485_v4  ;;  %v5728_v41 = vrot.slane %v1375_v26, %v5485_v4  ;;  %v788_v47 = vcombine.low %v737_v54, %v769_v0 }
 0x1c8   :  { %v5735_v2 = vrot.slane %v1222_v33, %v5485_v4  ;;  %v5738_v18 = vrot.slane %v1223_v37, %v5485_v4  ;;  %v5741_v44 = vrot.slane %v1238_v38, %v5485_v4  ;;  %v5744_v45 = vrot.slane %v1239_v39, %v5485_v4 }
 0x1c9   :  { %v934_v35 = vpack.c.bf16 %v790_v56, %v790_v56  ;;  %v1396_v46 = vcombine.low %v5725_v36, %v5728_v41  ;;  %v1393_v3 = vcombine.high %v1341_v32, %v1373_v34  ;;  %v5749_v5 = vrot.slane %v4658_v59, %v5480_v60 }
 0x1ca   :  { %v858_v21 = vcombine.low %v5686_v12, %v5689_v42  ;;  %v859_v29 = vcombine.high %v5686_v12, %v5689_v42  ;;  %v890_v30 = vcombine.low %v5692_v63, %v5695_v13  ;;  %v932_v31 = vpack.c.bf16 %v788_v47, %v788_v47 }
 0x1cb   :  { %4864 = vmatmul.mubr.msk.bf16.vlgmr.msra.gmra.mxu0 %vm2154_vm1, %v934_v35  ;;  %v1540_v51 = vpack.c.bf16 %v1396_v46, %v1396_v46  ;;  %v1537_v61 = vpack.c.bf16 %v1393_v3, %v1393_v3  ;;  %v554_v43 = vcombine.low %v365_v6, %v377_v40  ;;  %v4653_v32 = vcombine.low %v5735_v2, %v5738_v18 }
 0x1cc   :  { %v4655_v34 = vcombine.high %v5735_v2, %v5738_v18  ;;  %v4657_v59 = vcombine.low %v5741_v44, %v5744_v45  ;;  %v4659_v9 = vcombine.high %v5741_v44, %v5744_v45  ;;  %4875 = vmatprep.mubr.msk.bf16.mxu0 %vm5307_vm0, %v5306_v1  ;;  %4852 = vmatmul.mubr.msk.bf16.vlgmr.msra.gmra.mxu1 %vm2154_vm1, %v932_v31 }
 0x1cd   :  { %v2435_v62 = vsel %vm2154_vm1, %v1540_v51, 0  ;;  %v2297_v49 = vsel %vm2154_vm1, %v1537_v61, 0  ;;  %v555_v50 = vcombine.high %v365_v6, %v377_v40  ;;  %v562_v10 = vrot.slane %v554_v43, %v5480_v60  ;;  %4857 = vmatprep.mubr.msk.bf16.mxu1 %vm5307_vm0, %v5306_v1 }
 0x1ce   :  { %4874 = vmatpush3.bf16.xpose.msra.mxu0 %v2435_v62  ;;  %4856 = vmatpush3.bf16.xpose.msra.mxu1 %v2297_v49  ;;  %v570_v14 = vcombine.low %v371_v24, %v383_v8  ;;  %v571_v15 = vcombine.high %v371_v24, %v383_v8  ;;  %v5776_v11 = vrot.slane %v739_v55, %v5485_v4 }
 0x1cf   :  { %v569_v19 = vrot.slane %v555_v50, %v5480_v60  ;;  %v5783_v26 = vrot.slane %v771_v58, %v5485_v4  ;;  %4885 = vmatprep.subr.bf16.mxu0 %v5306_v1  ;;  %v1462_v6 = vcombine.low %v5669_v57, %v5675_v7  ;;  %v1494_v24 = vcombine.low %v5678_v53, %v5749_v5 }
 0x1d0   :  { %v578_v20 = vrot.slane %v570_v14, %v5480_v60  ;;  %v585_v22 = vrot.slane %v571_v15, %v5480_v60  ;;  %v789_v55 = vcombine.high %v737_v54, %v769_v0  ;;  %4867 = vmatprep.subr.bf16.mxu1 %v5306_v1  ;;  %v1395_v33 = vcombine.high %v5655_v27, %v5658_v28 }
 0x1d1   :  { %v792_v23 = vcombine.low %v5776_v11, %v5783_v26  ;;  %v5798_v25 = vrot.slane %v1462_v6, %v5485_v4  ;;  %v5801_v58 = vrot.slane %v1494_v24, %v5485_v4  ;;  %v5815_v46 = vrot.slane %v858_v21, %v5485_v4 }
 0x1d2   :  { %v618_v37 = vcombine.low %v562_v10, %v578_v20  ;;  %v619_v38 = vcombine.high %v562_v10, %v578_v20  ;;  %v634_v39 = vcombine.low %v569_v19, %v585_v22  ;;  %v635_v56 = vcombine.high %v569_v19, %v585_v22 }
 0x1d3   :  { %v936_v2 = vpack.c.bf16 %v792_v23, %v792_v23  ;;  %v1526_v54 = vcombine.low %v5798_v25, %v5801_v58  ;;  %v933_v0 = vpack.c.bf16 %v789_v55, %v789_v55  ;;  %v1539_v18 = vpack.c.bf16 %v1395_v33, %v1395_v33 }
 0x1d4   :  { %v626_v44 = vrot.slane %v618_v37, %v5485_v4  ;;  %v633_v45 = vrot.slane %v619_v38, %v5485_v4  ;;  %v642_v40 = vrot.slane %v634_v39, %v5485_v4  ;;  %v649_v35 = vrot.slane %v635_v56, %v5485_v4 }
 0x1d5   :  { %4876 = vmatmul.mubr.msk.bf16.vlgmr.msra.gmra.mxu0 %vm2154_vm1, %v936_v2  ;;  %v1542_v27 = vpack.c.bf16 %v1526_v54, %v1526_v54  ;;  %4858 = vmatmul.mubr.msk.bf16.vlgmr.msra.gmra.mxu1 %vm2154_vm1, %v933_v0  ;;  %v2389_v28 = vsel %vm2154_vm1, %v1539_v18, 0  ;;  %v5818_v47 = vrot.slane %v890_v30, %v5485_v4  ;;  %v1413_v3 = vrot.slane %v4653_v32, %v5480_v60 }
 0x1d6   :  { %v1429_v51 = vrot.slane %v4655_v34, %v5480_v60  ;;  %v4637_v31 = vcombine.low %v626_v44, %v633_v45  ;;  %v4639_v61 = vcombine.high %v626_v44, %v633_v45  ;;  %4868 = vmatpush3.bf16.xpose.msra.mxu1 %v2389_v28  ;;  %v4641_v43 = vcombine.low %v642_v40, %v649_v35 }
 0x1d7   :  { %v2527_v8 = vsel %vm2154_vm1, %v1542_v27, 0  ;;  %4887 = vmatprep.mubr.msk.bf16.mxu0 %vm5307_vm0, %v5306_v1  ;;  %v1463_v21 = vcombine.high %v5669_v57, %v5675_v7  ;;  %v1495_v30 = vcombine.high %v5678_v53, %v5749_v5  ;;  %4869 = vmatprep.mubr.msk.bf16.mxu1 %vm5307_vm0, %v5306_v1  ;;  %v1445_v32 = vrot.slane %v4657_v59, %v5480_v60 }
 0x1d8   :  { %v1461_v34 = vrot.slane %v4659_v9, %v5480_v60  ;;  %v4643_v62 = vcombine.high %v642_v40, %v649_v35  ;;  %4886 = vmatpush3.bf16.xpose.msra.mxu0 %v2527_v8  ;;  %v922_v49 = vcombine.low %v5815_v46, %v5818_v47  ;;  %v891_v50 = vcombine.high %v5692_v63, %v5695_v13 }
 0x1d9   :  { %4897 = vmatprep.subr.bf16.mxu0 %v5306_v1  ;;  %v1477_v57 = vrot.slane %v1463_v21, %v5485_v4  ;;  %v1509_v7 = vrot.slane %v1495_v30, %v5485_v4  ;;  %v791_v53 = vcombine.high %v5704_v16, %v5711_v17  ;;  %v5843_v5 = vrot.slane %v4637_v31, %v5480_v60 }
 0x1da   :  { %v5846_v59 = vrot.slane %v4639_v61, %v5480_v60  ;;  %4879 = vmatprep.subr.bf16.mxu1 %v5306_v1  ;;  %v841_v9 = vrot.slane %v4641_v43, %v5480_v60  ;;  %v1397_v10 = vcombine.high %v5725_v36, %v5728_v41  ;;  %v857_v14 = vrot.slane %v4643_v62, %v5480_v60 }
 0x1db   :  { %v1528_v63 = vcombine.low %v1477_v57, %v1509_v7  ;;  %v935_v13 = vpack.c.bf16 %v791_v53, %v791_v53  ;;  %v938_v15 = vpack.c.bf16 %v922_v49, %v922_v49  ;;  %v1478_v19 = vcombine.low %v1413_v3, %v1429_v51 }
 0x1dc   :  { %v1510_v16 = vcombine.low %v1445_v32, %v1461_v34  ;;  %v1541_v6 = vpack.c.bf16 %v1397_v10, %v1397_v10  ;;  %v5858_v24 = vrot.slane %v859_v29, %v5485_v4  ;;  %v5861_v20 = vrot.slane %v891_v50, %v5485_v4 }
 0x1dd   :  { %v1544_v17 = vpack.c.bf16 %v1528_v63, %v1528_v63  ;;  %4870 = vmatmul.mubr.msk.bf16.vlgmr.msra.gmra.mxu1 %vm2154_vm1, %v935_v13  ;;  %v1486_v36 = vrot.slane %v1478_v19, %v5485_v4  ;;  %v874_v22 = vcombine.low %v5843_v5, %v5846_v59  ;;  %v1527_v42 = vcombine.high %v5798_v25, %v5801_v58 }
 0x1de   :  { %v1518_v41 = vrot.slane %v1510_v16, %v5485_v4  ;;  %4881 = vmatprep.mubr.msk.bf16.mxu1 %vm5307_vm0, %v5306_v1  ;;  %v2481_v12 = vsel %vm2154_vm1, %v1541_v6, 0  ;;  %v906_v29 = vcombine.low %v841_v9, %v857_v14  ;;  %v1479_v33 = vcombine.high %v1413_v3, %v1429_v51 }
 0x1df   :  { %4888 = vmatmul.mubr.msk.bf16.vlgmr.msra.gmra.mxu0 %vm2154_vm1, %v938_v15  ;;  %v2619_v55 = vsel %vm2154_vm1, %v1544_v17, 0  ;;  %4880 = vmatpush3.bf16.xpose.msra.mxu1 %v2481_v12  ;;  %v924_v37 = vcombine.low %v5858_v24, %v5861_v20  ;;  %v793_v38 = vcombine.high %v5776_v11, %v5783_v26  ;;  %v1511_v39 = vcombine.high %v1445_v32, %v1461_v34  ;;  %v1553_v32 = vpop.permute.xlu1 %1552  ;;  %v1559_v34 = vpop.permute.xlu0 %1558 }
 0x1e0   :  { %4898 = vmatpush3.bf16.xpose.msra.mxu0 %v2619_v55  ;;  %v1530_v23 = vcombine.low %v1486_v36, %v1518_v41  ;;  %4899 = vmatprep.mubr.msk.bf16.mxu0 %vm5307_vm0, %v5306_v1  ;;  %v1543_v58 = vpack.c.bf16 %v1527_v42, %v1527_v42  ;;  %v1493_v56 = vrot.slane %v1479_v33, %v5485_v4 }
 0x1e1   :  { %4909 = vmatprep.subr.bf16.mxu0 %v5306_v1  ;;  %4891 = vmatprep.subr.bf16.mxu1 %v5306_v1  ;;  %v1525_v2 = vrot.slane %v1511_v39, %v5485_v4  ;;  %v940_v54 = vpack.c.bf16 %v924_v37, %v924_v37  ;;  %v937_v0 = vpack.c.bf16 %v793_v38, %v793_v38 }
 0x1e2   :  { %v1546_v25 = vpack.c.bf16 %v1530_v23, %v1530_v23  ;;  %v882_v18 = vrot.slane %v874_v22, %v5485_v4  ;;  %v914_v44 = vrot.slane %v906_v29, %v5485_v4  ;;  %v2573_v11 = vsel %vm2154_vm1, %v1543_v58, 0 }
 0x1e3   :  { %v1532_v26 = vcombine.low %v1493_v56, %v1525_v2  ;;  %v1529_v40 = vcombine.high %v1477_v57, %v1509_v7  ;;  %v875_v35 = vcombine.high %v5843_v5, %v5846_v59  ;;  %v907_v27 = vcombine.high %v841_v9, %v857_v14  ;;  %v1565_v53 = vpop.permute.xlu1 %1564 }
 0x1e4   :  { %v2711_v45 = vsel %vm2154_vm1, %v1546_v25, 0  ;;  %v926_v28 = vcombine.low %v882_v18, %v914_v44  ;;  %v923_v3 = vcombine.high %v5815_v46, %v5818_v47  ;;  %v1531_v47 = vcombine.high %v1486_v36, %v1518_v41 }
 0x1e5   :  { %v1548_v51 = vpack.c.bf16 %v1532_v26, %v1532_v26  ;;  %v1545_v31 = vpack.c.bf16 %v1529_v40, %v1529_v40  ;;  %v889_v8 = vrot.slane %v875_v35, %v5485_v4  ;;  %v921_v21 = vrot.slane %v907_v27, %v5485_v4 }
 0x1e6   :  { %4882 = vmatmul.mubr.msk.bf16.vlgmr.msra.gmra.mxu1 %vm2154_vm1, %v937_v0  ;;  %v942_v61 = vpack.c.bf16 %v926_v28, %v926_v28  ;;  %v939_v43 = vpack.c.bf16 %v923_v3, %v923_v3  ;;  %v1594_v62 = vcombine.low %v5461_v48, %v1559_v34  ;;  %v1595_v49 = vcombine.high %v5461_v48, %v1559_v34 }
 0x1e7   :  { %4900 = vmatmul.mubr.msk.bf16.vlgmr.msra.gmra.mxu0 %vm2154_vm1, %v940_v54  ;;  %4892 = vmatpush3.bf16.xpose.msra.mxu1 %v2573_v11  ;;  %v2803_v30 = vsel %vm2154_vm1, %v1548_v51, 0  ;;  %v2665_v46 = vsel %vm2154_vm1, %v1545_v31, 0  ;;  %v928_v50 = vcombine.low %v889_v8, %v921_v21  ;;  %v925_v57 = vcombine.high %v5858_v24, %v5861_v20 }
 0x1e8   :  { %4910 = vmatpush3.bf16.xpose.msra.mxu0 %v2711_v45  ;;  %4911 = vmatprep.mubr.msk.bf16.mxu0 %vm5307_vm0, %v5306_v1  ;;  %v1547_v7 = vpack.c.bf16 %v1531_v47, %v1531_v47  ;;  %v1602_v5 = vrot.slane %v1594_v62, %v5480_v60  ;;  %v1609_v48 = vrot.slane %v1595_v49, %v5480_v60 }
 0x1e9   :  { %4921 = vmatprep.subr.bf16.mxu0 %v5306_v1  ;;  %4893 = vmatprep.mubr.msk.bf16.mxu1 %vm5307_vm0, %v5306_v1  ;;  %v1610_v59 = vcombine.low %v1553_v32, %v1565_v53  ;;  %v1611_v9 = vcombine.high %v1553_v32, %v1565_v53  ;;  %v944_v63 = vpack.c.bf16 %v928_v50, %v928_v50 }
 0x1ea   :  { %4903 = vmatprep.subr.bf16.mxu1 %v5306_v1  ;;  %v941_v13 = vpack.c.bf16 %v925_v57, %v925_v57  ;;  %v2757_v15 = vsel %vm2154_vm1, %v1547_v7, 0  ;;  %v1533_v19 = vcombine.high %v1493_v56, %v1525_v2  ;;  %v927_v24 = vcombine.high %v882_v18, %v914_v44 }
 0x1eb   :  { %v1618_v10 = vrot.slane %v1610_v59, %v5480_v60  ;;  %v1625_v14 = vrot.slane %v1611_v9, %v5480_v60  ;;  %v929_v54 = vcombine.high %v889_v8, %v921_v21  ;;  %v1571_v21 = vpop.permute.xlu0 %1570 }
 0x1ec   :  { %v1549_v55 = vpack.c.bf16 %v1533_v19, %v1533_v19  ;;  %v943_v23 = vpack.c.bf16 %v927_v24, %v927_v24 }
 0x1ed   :  { %v1658_v16 = vcombine.low %v1602_v5, %v1618_v10  ;;  %v1659_v17 = vcombine.high %v1602_v5, %v1618_v10  ;;  %v1674_v6 = vcombine.low %v1609_v48, %v1625_v14  ;;  %v1675_v20 = vcombine.high %v1609_v48, %v1625_v14 }
 0x1ee   :  { %4894 = vmatmul.mubr.msk.bf16.vlgmr.msra.gmra.mxu1 %vm2154_vm1, %v939_v43  ;;  %v2849_v25 = vsel %vm2154_vm1, %v1549_v55, 0  ;;  %v945_v45 = vpack.c.bf16 %v929_v54, %v929_v54 }
 0x1ef   :  { %4912 = vmatmul.mubr.msk.bf16.vlgmr.msra.gmra.mxu0 %vm2154_vm1, %v942_v61  ;;  %4904 = vmatpush3.bf16.xpose.msra.mxu1 %v2665_v46  ;;  %v1666_v36 = vrot.slane %v1658_v16, %v5485_v4  ;;  %v1673_v41 = vrot.slane %v1659_v17, %v5485_v4  ;;  %v1682_v22 = vrot.slane %v1674_v6, %v5485_v4  ;;  %v1589_v46 = vpop.permute.xlu0 %1588 }
 0x1f0   :  { %4922 = vmatpush3.bf16.xpose.msra.mxu0 %v2803_v30  ;;  %4923 = vmatprep.mubr.msk.bf16.mxu0 %vm5307_vm0, %v5306_v1  ;;  %v1689_v12 = vrot.slane %v1675_v20, %v5485_v4  ;;  %v1577_v30 = vpop.permute.xlu1 %1576 }
 0x1f1   :  { %4905 = vmatprep.mubr.msk.bf16.mxu1 %vm5307_vm0, %v5306_v1  ;;  %4915 = vmatprep.subr.bf16.mxu1 %v5306_v1  ;;  %v4660_v42 = vcombine.low %v1666_v36, %v1673_v41  ;;  %v4662_v29 = vcombine.high %v1666_v36, %v1673_v41  ;;  %v1642_v32 = vcombine.low %v1577_v30, %v1589_v46 }
 0x1f2   :  { %4933 = vmatprep.subr.bf16.mxu0 %v5306_v1  ;;  %v4664_v33 = vcombine.low %v1682_v22, %v1689_v12  ;;  %v4666_v37 = vcombine.high %v1682_v22, %v1689_v12  ;;  %v1643_v34 = vcombine.high %v1577_v30, %v1589_v46 }
 0x1f3   :  { %v1874_v38 = vrot.slane %v4660_v42, %v5480_v60  ;;  %v1890_v39 = vrot.slane %v4662_v29, %v5480_v60  ;;  %v1650_v50 = vrot.slane %v1642_v32, %v5480_v60 }
 0x1f4   :  { %v1906_v58 = vrot.slane %v4664_v33, %v5480_v60  ;;  %v1922_v56 = vrot.slane %v4666_v37, %v5480_v60  ;;  %v1583_v47 = vpop.permute.xlu1 %1582  ;;  %v1657_v57 = vrot.slane %v1643_v34, %v5480_v60 }
 0x1f5   :  { %v1930_v2 = vcombine.low %v1874_v38, %v1890_v39  ;;  %v1931_v3 = vcombine.high %v1874_v38, %v1890_v39  ;;  %v1626_v62 = vcombine.low %v1571_v21, %v1583_v47  ;;  %v1627_v49 = vcombine.high %v1571_v21, %v1583_v47 }
 0x1f6   :  { %4906 = vmatmul.mubr.msk.bf16.vlgmr.msra.gmra.mxu1 %vm2154_vm1, %v941_v13  ;;  %v1962_v0 = vcombine.low %v1906_v58, %v1922_v56  ;;  %v1963_v51 = vcombine.high %v1906_v58, %v1922_v56 }
 0x1f7   :  { %4924 = vmatmul.mubr.msk.bf16.vlgmr.msra.gmra.mxu0 %vm2154_vm1, %v944_v63  ;;  %4916 = vmatpush3.bf16.xpose.msra.mxu1 %v2757_v15  ;;  %v1938_v18 = vrot.slane %v1930_v2, %v5485_v4  ;;  %v1945_v31 = vrot.slane %v1931_v3, %v5485_v4  ;;  %v1634_v7 = vrot.slane %v1626_v62, %v5480_v60 }
 0x1f8   :  { %4917 = vmatprep.mubr.msk.bf16.mxu1 %vm5307_vm0, %v5306_v1  ;;  %4927 = vmatprep.subr.bf16.mxu1 %v5306_v1  ;;  %v1970_v44 = vrot.slane %v1962_v0, %v5485_v4  ;;  %v1977_v61 = vrot.slane %v1963_v51, %v5485_v4  ;;  %v1641_v53 = vrot.slane %v1627_v49, %v5480_v60 }
 0x1f9   :  { %4935 = vmatprep.mubr.msk.bf16.mxu0 %vm5307_vm0, %v5306_v1  ;;  %v1690_v5 = vcombine.low %v1634_v7, %v1650_v50  ;;  %v1691_v48 = vcombine.high %v1634_v7, %v1650_v50 }
 0x1fa   :  { %v1994_v11 = vcombine.low %v1938_v18, %v1970_v44  ;;  %v1995_v26 = vcombine.high %v1938_v18, %v1970_v44  ;;  %v5952_v43 = vcombine.low %v1945_v31, %v1977_v61  ;;  %v5954_v8 = vcombine.high %v1945_v31, %v1977_v61 }
 0x1fb   :  { %v1706_v59 = vcombine.low %v1641_v53, %v1657_v57  ;;  %v1707_v9 = vcombine.high %v1641_v53, %v1657_v57  ;;  %v1698_v63 = vrot.slane %v1690_v5, %v5485_v4  ;;  %v1705_v13 = vrot.slane %v1691_v48, %v5485_v4 }
 0x1fc   :  { %v2138_v40 = vpack.c.bf16 %v1994_v11, %v1994_v11  ;;  %v2139_v35 = vpack.c.bf16 %v1995_v26, %v1995_v26 }
 0x1fd   :  { %v1714_v10 = vrot.slane %v1706_v59, %v5485_v4  ;;  %v1721_v14 = vrot.slane %v1707_v9, %v5485_v4  ;;  %v4661_v15 = vcombine.low %v1698_v63, %v1705_v13  ;;  %v4663_v19 = vcombine.high %v1698_v63, %v1705_v13 }
 0x1fe   :  { %4918 = vmatmul.mubr.msk.bf16.vlgmr.msra.gmra.mxu1 %vm2154_vm1, %v943_v23  ;;  %v3089_v27 = vsel %vm3087_vm2, %v2138_v40, 0  ;;  %v3135_v28 = vsel %vm3087_vm2, %v2139_v35, 0 }
 0x1ff   :  { %4928 = vmatpush3.bf16.xpose.msra.mxu1 %v2849_v25  ;;  %4929 = vmatprep.mubr.msk.bf16.mxu1 %vm5307_vm0, %v5306_v1  ;;  %v4665_v16 = vcombine.low %v1714_v10, %v1721_v14  ;;  %v4667_v17 = vcombine.high %v1714_v10, %v1721_v14  ;;  %v1881_v29 = vrot.slane %v4661_v15, %v5480_v60 }
 0x200   :  { %4939 = vmatprep.subr.bf16.mxu1 %v5306_v1  ;;  %4934 = vmatpush3.bf16.msra.mxu0 %v3089_v27  ;;  %v1897_v23 = vrot.slane %v4663_v19, %v5480_v60 }
 0x201   :  { %4945 = vmatprep.subr.bf16.mxu0 %v5306_v1  ;;  %v1913_v33 = vrot.slane %v4665_v16, %v5480_v60  ;;  %v1929_v37 = vrot.slane %v4667_v17, %v5480_v60 }
 0x202   :  { %v1946_v25 = vcombine.low %v1881_v29, %v1897_v23  ;;  %v1947_v56 = vcombine.high %v1881_v29, %v1897_v23 }
 0x203   :  { %v1978_v58 = vcombine.low %v1913_v33, %v1929_v37  ;;  %v1979_v0 = vcombine.high %v1913_v33, %v1929_v37 }
 0x204   :  { %v1954_v44 = vrot.slane %v1946_v25, %v5485_v4  ;;  %v1961_v11 = vrot.slane %v1947_v56, %v5485_v4 }
 0x205   :  { %v1993_v35 = vrot.slane %v1979_v0, %v5485_v4 }
 0x206   :  { %4930 = vmatmul.mubr.msk.bf16.vlgmr.msra.gmra.mxu1 %vm2154_vm1, %v945_v45  ;;  %v1986_v45 = vrot.slane %v1978_v58, %v5485_v4 }
 0x207   :  { %4941 = vmatprep.mubr.msk.bf16.mxu1 %vm5307_vm0, %v5306_v1  ;;  %4940 = vmatpush3.bf16.msra.mxu1 %v3135_v28  ;;  %v5992_v61 = vcombine.low %v1961_v11, %v1993_v35  ;;  %v5994_v21 = vcombine.high %v1961_v11, %v1993_v35 }
 0x208   :  { %4951 = vmatprep.subr.bf16.mxu1 %v5306_v1  ;;  %v5988_v28 = vcombine.low %v1954_v44, %v1986_v45  ;;  %v5990_v3 = vcombine.high %v1954_v44, %v1986_v45 }
 0x278   :  { %v5964_v6 = vpop.f32.mrf.mxu1 }
 0x279   :  { %v2892_v24 = vsel %vm2891_vm3, %v5964_v6, -inf }
 0x27a   :  { %2893 = vmax.xlane.f32.xlu0 %v2892_v24  ;;  %v4841_v20 = vpop.f32.mrf.mxu1 }
 0x27c   :  { %v2198_v36 = vpop.f32.mrf.mxu1 }
 0x27e   :  { %v4842_v41 = vpop.f32.mrf.mxu1 }
 0x280   :  { %v5968_v22 = vpop.f32.mrf.mxu1 }
 0x281   :  { %v2895_v27 = vsel %vm2891_vm3, %v5968_v22, -inf }
 0x282   :  { %v4847_v55 = vpop.f32.mrf.mxu1 }
 0x284   :  { %v2244_v12 = vpop.f32.mrf.mxu1 }
 0x286   :  { %v4848_v42 = vpop.f32.mrf.mxu1 }
 0x28b   :  { %v5974_v38 = vpop.f32.mrf.mxu0 }
 0x28c   :  { %v2904_v39 = vsel %vm2891_vm3, %v5974_v38, -inf  ;;  %v5978_v54 = vpop.f32.mrf.mxu1 }
 0x28d   :  { %2905 = vmax.xlane.f32.xlu1 %v2904_v39  ;;  %v4865_v2 = vpop.f32.mrf.mxu0  ;;  %v2898_v18 = vsel %vm2891_vm3, %v5978_v54, -inf }
 0x28e   :  { %2899 = vmax.xlane.f32.xlu0 %v2898_v18  ;;  %v4853_v40 = vpop.f32.mrf.mxu1 }
 0x28f   :  { %v2382_v26 = vpop.f32.mrf.mxu0 }
 0x290   :  { %v2290_v31 = vpop.f32.mrf.mxu1 }
 0x291   :  { %2896 = vmax.xlane.f32.xlu1 %v2895_v27  ;;  %v4866_v51 = vpop.f32.mrf.mxu0 }
 0x292   :  { %v4854_v30 = vpop.f32.mrf.mxu1 }
 0x295   :  { %v5996_v46 = vpop.f32.mrf.mxu0  ;;  %v5998_v47 = vpop.f32.mrf.mxu1 }
 0x296   :  { %v2910_v32 = vsel %vm2891_vm3, %v5996_v46, -inf  ;;  %v2901_v34 = vsel %vm2891_vm3, %v5998_v47, -inf }
 0x297   :  { %2911 = vmax.xlane.f32.xlu1 %v2910_v32  ;;  %v4877_v62 = vpop.f32.mrf.mxu0  ;;  %2902 = vmax.xlane.f32.xlu0 %v2901_v34  ;;  %v4859_v49 = vpop.f32.mrf.mxu1 }
 0x299   :  { %v2474_v50 = vpop.f32.mrf.mxu0  ;;  %v2336_v57 = vpop.f32.mrf.mxu1 }
 0x29b   :  { %v4878_v7 = vpop.f32.mrf.mxu0  ;;  %v4860_v53 = vpop.f32.mrf.mxu1 }
 0x29d   :  { %v6004_v5 = vpop.f32.mrf.mxu1 }
 0x29e   :  { %v2907_v48 = vsel %vm2891_vm3, %v6004_v5, -inf }
 0x29f   :  { %v6008_v59 = vpop.f32.mrf.mxu0  ;;  %2908 = vmax.xlane.f32.xlu0 %v2907_v48  ;;  %v4871_v9 = vpop.f32.mrf.mxu1 }
 0x2a0   :  { %v2916_v63 = vsel %vm2891_vm3, %v6008_v59, -inf }
 0x2a1   :  { %2917 = vmax.xlane.f32.xlu1 %v2916_v63  ;;  %v4889_v13 = vpop.f32.mrf.mxu0  ;;  %v2428_v10 = vpop.f32.mrf.mxu1 }
 0x2a3   :  { %v2566_v14 = vpop.f32.mrf.mxu0  ;;  %v4872_v15 = vpop.f32.mrf.mxu1 }
 0x2a5   :  { %v4890_v19 = vpop.f32.mrf.mxu0 }
 0x2a6   :  { %v6014_v17 = vpop.f32.mrf.mxu1 }
 0x2a7   :  { %v6012_v16 = vpop.f32.mrf.mxu0  ;;  %v2913_v20 = vsel %vm2891_vm3, %v6014_v17, -inf }
 0x2a8   :  { %v2922_v24 = vsel %vm2891_vm3, %v6012_v16, -inf  ;;  %2914 = vmax.xlane.f32.xlu0 %v2913_v20  ;;  %v4883_v41 = vpop.f32.mrf.mxu1 }
 0x2a9   :  { %2923 = vmax.xlane.f32.xlu1 %v2922_v24  ;;  %v4901_v36 = vpop.f32.mrf.mxu0 }
 0x2aa   :  { %v2520_v12 = vpop.f32.mrf.mxu1 }
 0x2ab   :  { %v2658_v55 = vpop.f32.mrf.mxu0 }
 0x2ac   :  { %v4884_v29 = vpop.f32.mrf.mxu1 }
 0x2ad   :  { %v4902_v42 = vpop.f32.mrf.mxu0 }
 0x2ae   :  { %v6022_v33 = vpop.f32.mrf.mxu1 }
 0x2af   :  { %v6020_v23 = vpop.f32.mrf.mxu0  ;;  %v2919_v39 = vsel %vm2891_vm3, %v6022_v33, -inf }
 0x2b0   :  { %v2928_v37 = vsel %vm2891_vm3, %v6020_v23, -inf  ;;  %2920 = vmax.xlane.f32.xlu0 %v2919_v39  ;;  %v4895_v58 = vpop.f32.mrf.mxu1 }
 0x2b1   :  { %2929 = vmax.xlane.f32.xlu1 %v2928_v37  ;;  %v4913_v25 = vpop.f32.mrf.mxu0 }
 0x2b2   :  { %v2612_v2 = vpop.f32.mrf.mxu1 }
 0x2b3   :  { %v2750_v56 = vpop.f32.mrf.mxu0 }
 0x2b4   :  { %v4896_v18 = vpop.f32.mrf.mxu1 }
 0x2b5   :  { %v4914_v0 = vpop.f32.mrf.mxu0 }
 0x2b6   :  { %v6030_v45 = vpop.f32.mrf.mxu1 }
 0x2b7   :  { %v6028_v44 = vpop.f32.mrf.mxu0  ;;  %v2925_v26 = vsel %vm2891_vm3, %v6030_v45, -inf }
 0x2b8   :  { %v2934_v11 = vsel %vm2891_vm3, %v6028_v44, -inf  ;;  %2926 = vmax.xlane.f32.xlu0 %v2925_v26  ;;  %v4907_v35 = vpop.f32.mrf.mxu1 }
 0x2b9   :  { %2935 = vmax.xlane.f32.xlu1 %v2934_v11  ;;  %v4925_v40 = vpop.f32.mrf.mxu0 }
 0x2ba   :  { %v2704_v51 = vpop.f32.mrf.mxu1 }
 0x2bb   :  { %v2842_v27 = vpop.f32.mrf.mxu0 }
 0x2bc   :  { %v4908_v30 = vpop.f32.mrf.mxu1 }
 0x2bd   :  { %v4926_v31 = vpop.f32.mrf.mxu0 }
 0x2be   :  { %v6036_v32 = vpop.f32.mrf.mxu1 }
 0x2bf   :  { %v2931_v34 = vsel %vm2891_vm3, %v6036_v32, -inf }
 0x2c0   :  { %2932 = vmax.xlane.f32.xlu0 %v2931_v34  ;;  %v4919_v62 = vpop.f32.mrf.mxu1 }
 0x2c2   :  { %v2796_v49 = vpop.f32.mrf.mxu1 }
 0x2c4   :  { %v4920_v50 = vpop.f32.mrf.mxu1 }
 0x2c6   :  { %v6040_v57 = vpop.f32.mrf.mxu1 }
 0x2c7   :  { %v2937_v7 = vsel %vm2891_vm3, %v6040_v57, -inf }
 0x2c8   :  { %2938 = vmax.xlane.f32.xlu0 %v2937_v7  ;;  %v4931_v53 = vpop.f32.mrf.mxu1 }
 0x2ca   :  { %1560 = vrot.lane.b32.xlu1 %v5475_v52, %s5310_s28  ;;  %v2888_v48 = vpop.f32.mrf.mxu1 }
 0x2cc   :  { %v4932_v9 = vpop.f32.mrf.mxu1 }
 0x2ce   :  { %1566 = vrot.lane.b32.xlu1 %v5475_v52, %s5308_s0 }
 0x2d2   :  { %1572 = vrot.lane.b32.xlu1 %v5475_v52, %s5302_s2 }
 0x2de   :  { %1554 = vrot.lane.b32.xlu0 %v5475_v52, %s5309_s27 }
 0x303   :  { %v2894_v63 = vpop.xlane.xlu0 %2893 }
 0x304   :  { %v2940_v13 = vsub.f32 %v5964_v6, %v2894_v63 }
 0x306   :  { %v2956_v10 = vmul.f32 1.442695, %v2940_v13 }
 0x308   :  { %5143 = vpow2.f32 %v2956_v10 }
 0x315   :  { %v6053_v14 = vpop.eup %5143 }
 0x316   :  { %v2906_v15 = vpop.xlane.xlu1 %2905  ;;  %v2988_v19 = vsel %vm2891_vm3, %v6053_v14, 0.0 }
 0x317   :  { %v2944_v24 = vsub.f32 %v5974_v38, %v2906_v15  ;;  %2989 = vadd.xlane.f32.xlu1 %v2988_v19  ;;  %v2900_v55 = vpop.xlane.xlu0 %2899 }
 0x318   :  { %v2942_v6 = vsub.f32 %v5978_v54, %v2900_v55 }
 0x319   :  { %v2964_v20 = vmul.f32 1.442695, %v2944_v24 }
 0x31a   :  { %v2897_v36 = vpop.xlane.xlu1 %2896  ;;  %v2960_v37 = vmul.f32 1.442695, %v2942_v6 }
 0x31b   :  { %5145 = vpow2.f32 %v2964_v20  ;;  %v2941_v41 = vsub.f32 %v5968_v22, %v2897_v36 }
 0x31d   :  { %v2958_v12 = vmul.f32 1.442695, %v2941_v41 }
 0x31f   :  { %5147 = vpow2.f32 %v2958_v12 }
 0x320   :  { %v2912_v42 = vpop.xlane.xlu1 %2911  ;;  %v2903_v25 = vpop.xlane.xlu0 %2902 }
 0x321   :  { %v2946_v29 = vsub.f32 %v5996_v46, %v2912_v42  ;;  %v2943_v56 = vsub.f32 %v5998_v47, %v2903_v25 }
 0x323   :  { %v2968_v39 = vmul.f32 1.442695, %v2946_v29  ;;  %v2962_v11 = vmul.f32 1.442695, %v2943_v56 }
 0x325   :  { %5149 = vpow2.f32 %v2968_v39 }
 0x326   :  { %5151 = vpow2.f32 %v2960_v37 }
 0x328   :  { %v6061_v38 = vpop.eup %5145  ;;  %v2909_v58 = vpop.xlane.xlu0 %2908 }
 0x329   :  { %v2945_v22 = vsub.f32 %v6004_v5, %v2909_v58  ;;  %v3000_v2 = vsel %vm2891_vm3, %v6061_v38, 0.0 }
 0x32a   :  { %v2918_v54 = vpop.xlane.xlu1 %2917  ;;  %3001 = vadd.xlane.f32.xlu0 %v3000_v2 }
 0x32b   :  { %v2948_v0 = vsub.f32 %v6008_v59, %v2918_v54  ;;  %v2966_v46 = vmul.f32 1.442695, %v2945_v22 }
 0x32c   :  { %v6068_v18 = vpop.eup %5147 }
 0x32d   :  { %v2972_v26 = vmul.f32 1.442695, %v2948_v0  ;;  %5153 = vpow2.f32 %v2966_v46  ;;  %v2991_v40 = vsel %vm2891_vm3, %v6068_v18, 0.0 }
 0x32e   :  { %2992 = vadd.xlane.f32.xlu0 %v2991_v40 }
 0x32f   :  { %5155 = vpow2.f32 %v2972_v26 }
 0x330   :  { %5157 = vpow2.f32 %v2962_v11 }
 0x331   :  { %v2915_v31 = vpop.xlane.xlu0 %2914 }
 0x332   :  { %v6072_v47 = vpop.eup %5149  ;;  %v2924_v5 = vpop.xlane.xlu1 %2923  ;;  %v2947_v34 = vsub.f32 %v6014_v17, %v2915_v31 }
 0x333   :  { %v2950_v35 = vsub.f32 %v6012_v16, %v2924_v5  ;;  %v3006_v59 = vsel %vm2891_vm3, %v6072_v47, 0.0  ;;  %v6077_v27 = vpop.eup %5151 }
 0x334   :  { %3007 = vadd.xlane.f32.xlu1 %v3006_v59  ;;  %v2994_v30 = vsel %vm2891_vm3, %v6077_v27, 0.0  ;;  %v2970_v9 = vmul.f32 1.442695, %v2947_v34  ;;  %v2140_v34 = vpack.c.bf16 %v5952_v43, %v5952_v43 }
 0x335   :  { %v2976_v51 = vmul.f32 1.442695, %v2950_v35 }
 0x337   :  { %5159 = vpow2.f32 %v2976_v51 }
 0x338   :  { %2995 = vadd.xlane.f32.xlu1 %v2994_v30 }
 0x339   :  { %v2921_v50 = vpop.xlane.xlu0 %2920 }
 0x33a   :  { %v6082_v62 = vpop.eup %5153  ;;  %v2930_v49 = vpop.xlane.xlu1 %2929  ;;  %v2949_v7 = vsub.f32 %v6022_v33, %v2921_v50 }
 0x33b   :  { %v2952_v16 = vsub.f32 %v6020_v23, %v2930_v49  ;;  %v3003_v53 = vsel %vm2891_vm3, %v6082_v62, 0.0 }
 0x33c   :  { %v6088_v48 = vpop.eup %5155  ;;  %3004 = vadd.xlane.f32.xlu1 %v3003_v53  ;;  %v2974_v13 = vmul.f32 1.442695, %v2949_v7 }
 0x33d   :  { %v2980_v63 = vmul.f32 1.442695, %v2952_v16  ;;  %v3012_v17 = vsel %vm2891_vm3, %v6088_v48, 0.0  ;;  %v6092_v10 = vpop.eup %5157  ;;  %v3181_v16 = vsel %vm3087_vm2, %v2140_v34, 0 }
 0x33e   :  { %3013 = vadd.xlane.f32.xlu0 %v3012_v17  ;;  %v2997_v23 = vsel %vm2891_vm3, %v6092_v10, 0.0 }
 0x33f   :  { %5161 = vpow2.f32 %v2980_v63 }
 0x340   :  { %5163 = vpow2.f32 %v2974_v13 }
 0x341   :  { %5165 = vpow2.f32 %v2970_v9  ;;  %v2927_v33 = vpop.xlane.xlu0 %2926 }
 0x342   :  { %2998 = vadd.xlane.f32.xlu0 %v2997_v23  ;;  %v2951_v15 = vsub.f32 %v6030_v45, %v2927_v33  ;;  %v2936_v2 = vpop.xlane.xlu1 %2935 }
 0x343   :  { %v2954_v54 = vsub.f32 %v6028_v44, %v2936_v2 }
 0x344   :  { %v6097_v19 = vpop.eup %5159  ;;  %v2978_v24 = vmul.f32 1.442695, %v2951_v15 }
 0x345   :  { %v3018_v20 = vsel %vm2891_vm3, %v6097_v19, 0.0  ;;  %v2984_v46 = vmul.f32 1.442695, %v2954_v54 }
 0x346   :  { %3019 = vadd.xlane.f32.xlu0 %v3018_v20  ;;  %5167 = vpow2.f32 %v2978_v24  ;;  %v1561_v5 = vpop.permute.xlu1 %1560 }
 0x347   :  { %v1731_v43 = vcombine.high %v5475_v52, %v1561_v5 }
 0x349   :  { %v2933_v36 = vpop.xlane.xlu0 %2932  ;;  %v1745_v15 = vrot.slane %v1731_v43, %v5480_v60 }
 0x34a   :  { %v2953_v41 = vsub.f32 %v6036_v32, %v2933_v36 }
 0x34c   :  { %v6102_v55 = vpop.eup %5161  ;;  %v2982_v6 = vmul.f32 1.442695, %v2953_v41 }
 0x34d   :  { %v6104_v12 = vpop.eup %5163  ;;  %v3024_v42 = vsel %vm2891_vm3, %v6102_v55, 0.0 }
 0x34e   :  { %v6108_v45 = vpop.eup %5165  ;;  %3025 = vadd.xlane.f32.xlu0 %v3024_v42  ;;  %v3015_v29 = vsel %vm2891_vm3, %v6104_v12, 0.0  ;;  %5169 = vpow2.f32 %v2982_v6 }
 0x34f   :  { %3016 = vadd.xlane.f32.xlu1 %v3015_v29  ;;  %v3009_v37 = vsel %vm2891_vm3, %v6108_v45, 0.0 }
 0x351   :  { %v2939_v56 = vpop.xlane.xlu0 %2938 }
 0x352   :  { %3010 = vadd.xlane.f32.xlu0 %v3009_v37  ;;  %v2955_v22 = vsub.f32 %v6040_v57, %v2939_v56  ;;  %v1567_v57 = vpop.permute.xlu1 %1566 }
 0x353   :  { %v6114_v32 = vpop.eup %5167 }
 0x354   :  { %v3021_v39 = vsel %vm2891_vm3, %v6114_v32, 0.0  ;;  %v2986_v0 = vmul.f32 1.442695, %v2955_v22 }
 0x355   :  { %3022 = vadd.xlane.f32.xlu1 %v3021_v39  ;;  %v1555_v31 = vpop.permute.xlu0 %1554 }
 0x356   :  { %5171 = vpow2.f32 %v2986_v0  ;;  %v6138_v59 = vpop.permute.xlu1 %1572  ;;  %v1746_v53 = vcombine.low %v1555_v31, %v1567_v57  ;;  %v1747_v9 = vcombine.high %v1555_v31, %v1567_v57 }
 0x357   :  { %5173 = vpow2.f32 %v2984_v46 }
 0x358   :  { %v1754_v13 = vrot.slane %v1746_v53, %v5480_v60  ;;  %v1761_v17 = vrot.slane %v1747_v9, %v5480_v60 }
 0x35a   :  { %v1810_v36 = vcombine.low %v1745_v15, %v1761_v17  ;;  %v1811_v41 = vcombine.high %v1745_v15, %v1761_v17 }
 0x35b   :  { %v6118_v25 = vpop.eup %5169 }
 0x35c   :  { %v3027_v58 = vsel %vm2891_vm3, %v6118_v25, 0.0  ;;  %v1825_v56 = vrot.slane %v1811_v41, %v5485_v4 }
 0x35d   :  { %3028 = vadd.xlane.f32.xlu0 %v3027_v58  ;;  %v1818_v58 = vrot.slane %v1810_v36, %v5485_v4 }
 0x35f   :  { %v4674_v46 = vcombine.high %v1818_v58, %v1825_v56 }
 0x361   :  { %v2058_v31 = vrot.slane %v4674_v46, %v5480_v60 }
 0x363   :  { %v6130_v11 = vpop.eup %5171 }
 0x364   :  { %v3033_v26 = vsel %vm2891_vm3, %v6130_v11, 0.0  ;;  %v6134_v40 = vpop.eup %5173 }
 0x365   :  { %v3030_v35 = vsel %vm2891_vm3, %v6134_v40, 0.0 }
 0x366   :  { %1584 = vrot.lane.b32.xlu1 %v5475_v52, %s5312_s30 }
 0x36a   :  { %1590 = vrot.lane.b32.xlu1 %v5475_v52, %s5313_s8 }
 0x373   :  { %1578 = vrot.lane.b32.xlu0 %v5475_v52, %s5311_s29 }
 0x38e   :  { %3034 = vadd.xlane.f32.xlu1 %v3033_v26 }
 0x392   :  { %3031 = vadd.xlane.f32.xlu0 %v3030_v35 }
 0x3a0   :  { %v2990_v44 = vpop.xlane.xlu1 %2989 }
 0x3a1   :  { %5175 = vrcp.f32 %v2990_v44  ;;  %v2142_v44 = vpack.c.bf16 %v5988_v28, %v5988_v28 }
 0x3ae   :  { %v5176_v51 = vpop.eup %5175 }
 0x3af   :  { %v3052_v30 = vmul.f32 %v5176_v51, %v6053_v14  ;;  %v1730_v14 = vcombine.low %v5475_v52, %v1561_v5  ;;  %v2141_v52 = vpack.c.bf16 %v5954_v8, %v5954_v8  ;;  %v4672_v8 = vcombine.low %v1818_v58, %v1825_v56 }
 0x3b0   :  { %v2145_v56 = vpack.c.bf16 %v5994_v21, %v5994_v21 }
 0x3b1   :  { %v3068_v49 = vpack.c.bf16 %v3052_v30, %v3052_v30  ;;  %v1738_v23 = vrot.slane %v1730_v14, %v5480_v60  ;;  %v3227_v2 = vsel %vm3087_vm2, %v2141_v52, 0  ;;  %v2042_v51 = vrot.slane %v4672_v8, %v5480_v60 }
 0x3b3   :  { %v3002_v50 = vpop.xlane.xlu0 %3001  ;;  %4936 = vmatmul.mubr.msk.bf16.vlgmr.msra.gmra.mxu0 %vm2891_vm3, %v3068_v49  ;;  %v1794_v24 = vcombine.low %v1738_v23, %v1754_v13  ;;  %v1795_v20 = vcombine.high %v1738_v23, %v1754_v13  ;;  %v2098_v53 = vcombine.low %v2042_v51, %v2058_v31  ;;  %v2143_v23 = vpack.c.bf16 %v5990_v3, %v5990_v3 }
 0x3b4   :  { %4946 = vmatpush3.bf16.msra.mxu0 %v3181_v16  ;;  %4947 = vmatprep.mubr.msk.bf16.mxu0 %vm5307_vm0, %v5306_v1  ;;  %v3273_v16 = vsel %vm3087_vm2, %v2142_v44, 0  ;;  %v2099_v41 = vcombine.high %v2042_v51, %v2058_v31 }
 0x3b5   :  { %4957 = vmatprep.subr.bf16.mxu0 %v5306_v1  ;;  %v1802_v29 = vrot.slane %v1794_v24, %v5485_v4  ;;  %v1809_v37 = vrot.slane %v1795_v20, %v5485_v4  ;;  %v3319_v3 = vsel %vm3087_vm2, %v2143_v23, 0 }
 0x3b7   :  { %v2993_v7 = vpop.xlane.xlu0 %2992  ;;  %v4668_v54 = vcombine.low %v1802_v29, %v1809_v37  ;;  %v4670_v0 = vcombine.high %v1802_v29, %v1809_v37 }
 0x3b8   :  { %5177 = vrcp.f32 %v2993_v7 }
 0x3b9   :  { %v2010_v35 = vrot.slane %v4668_v54, %v5480_v60  ;;  %v2026_v57 = vrot.slane %v4670_v0, %v5480_v60 }
 0x3bb   :  { %v2066_v7 = vcombine.low %v2010_v35, %v2026_v57  ;;  %v2067_v24 = vcombine.high %v2010_v35, %v2026_v57 }
 0x3bd   :  { %v3008_v63 = vpop.xlane.xlu1 %3007  ;;  %v2074_v14 = vrot.slane %v2066_v7, %v5485_v4 }
 0x3c1   :  { %v2996_v33 = vpop.xlane.xlu1 %2995 }
 0x3c2   :  { %5179 = vrcp.f32 %v2996_v33 }
 0x3c3   :  { %5181 = vrcp.f32 %v3002_v50 }
 0x3c5   :  { %v5178_v6 = vpop.eup %5177  ;;  %v3005_v26 = vpop.xlane.xlu1 %3004 }
 0x3c6   :  { %v3053_v42 = vmul.f32 %v5178_v6, %v6068_v18 }
 0x3c7   :  { %v3014_v39 = vpop.xlane.xlu0 %3013 }
 0x3c8   :  { %v3069_v22 = vpack.c.bf16 %v3053_v42, %v3053_v42  ;;  %v2081_v42 = vrot.slane %v2067_v24, %v5485_v4 }
 0x3ca   :  { %4942 = vmatmul.mubr.msk.bf16.vlgmr.msra.gmra.mxu1 %vm2891_vm3, %v3069_v22 }
 0x3cb   :  { %v2999_v18 = vpop.xlane.xlu0 %2998  ;;  %4952 = vmatpush3.bf16.msra.mxu1 %v3227_v2  ;;  %4953 = vmatprep.mubr.msk.bf16.mxu1 %vm5307_vm0, %v5306_v1 }
 0x3cc   :  { %5183 = vrcp.f32 %v2999_v18  ;;  %4963 = vmatprep.subr.bf16.mxu1 %v5306_v1 }
 0x3cd   :  { %5185 = vrcp.f32 %v3008_v63  ;;  %v2106_v63 = vrot.slane %v2098_v53, %v5485_v4 }
 0x3ce   :  { %5187 = vrcp.f32 %v3005_v26 }
 0x3cf   :  { %v5180_v5 = vpop.eup %5179  ;;  %v3020_v50 = vpop.xlane.xlu0 %3019  ;;  %5189 = vrcp.f32 %v3014_v39  ;;  %v2113_v39 = vrot.slane %v2099_v41, %v5485_v4  ;;  %v2131_v18 = vcombine.high %v2074_v14, %v2106_v63 }
 0x3d0   :  { %v3054_v30 = vmul.f32 %v5180_v5, %v6077_v27  ;;  %v5182_v49 = vpop.eup %5181  ;;  %v2144_v27 = vpack.c.bf16 %v5992_v61, %v5992_v61  ;;  %v2130_v61 = vcombine.low %v2074_v14, %v2106_v63 }
 0x3d1   :  { %v3056_v28 = vmul.f32 %v5182_v49, %v6061_v38  ;;  %v2132_v54 = vcombine.low %v2081_v42, %v2113_v39  ;;  %v2147_v44 = vpack.c.bf16 %v2131_v18, %v2131_v18 }
 0x3d2   :  { %v3070_v34 = vpack.c.bf16 %v3054_v30, %v3054_v30  ;;  %v3365_v38 = vsel %vm3087_vm2, %v2144_v27, 0  ;;  %v2146_v37 = vpack.c.bf16 %v2130_v61, %v2130_v61 }
 0x3d3   :  { %v3072_v17 = vpack.c.bf16 %v3056_v28, %v3056_v28  ;;  %v2148_v46 = vpack.c.bf16 %v2132_v54, %v2132_v54  ;;  %v2133_v28 = vcombine.high %v2081_v42, %v2113_v39 }
 0x3d4   :  { %4948 = vmatmul.mubr.msk.bf16.vlgmr.msra.gmra.mxu0 %vm2891_vm3, %v3070_v34  ;;  %v3457_v2 = vsel %vm3087_vm2, %v2146_v37, 0 }
 0x3d5   :  { %4958 = vmatpush3.bf16.msra.mxu0 %v3273_v16  ;;  %4959 = vmatprep.mubr.msk.bf16.mxu0 %vm5307_vm0, %v5306_v1  ;;  %v3549_v34 = vsel %vm3087_vm2, %v2148_v46, 0 }
 0x3d6   :  { %4969 = vmatprep.subr.bf16.mxu0 %v5306_v1 }
 0x3d7   :  { %v6179_v9 = vpop.xlane.xlu0 %3025 }
 0x3d8   :  { %v3017_v20 = vpop.xlane.xlu1 %3016 }
 0x3d9   :  { %v5184_v43 = vpop.eup %5183 }
 0x3da   :  { %v3055_v13 = vmul.f32 %v5184_v43, %v6092_v10  ;;  %v5186_v33 = vpop.eup %5185 }
 0x3db   :  { %v3011_v15 = vpop.xlane.xlu0 %3010  ;;  %v5188_v6 = vpop.eup %5187  ;;  %v3058_v10 = vmul.f32 %v5186_v33, %v6072_v47  ;;  %v2149_v33 = vpack.c.bf16 %v2133_v28, %v2133_v28 }
 0x3dc   :  { %5191 = vrcp.f32 %v3011_v15  ;;  %v3071_v36 = vpack.c.bf16 %v3055_v13, %v3055_v13  ;;  %4960 = vmatmul.mubr.msk.bf16.vlgmr.msra.gmra.mxu0 %vm2891_vm3, %v3072_v17  ;;  %v3057_v29 = vmul.f32 %v5188_v6, %v6082_v62  ;;  %v5190_v47 = vpop.eup %5189  ;;  %v3411_v62 = vsel %vm3087_vm2, %v2145_v56, 0 }
 0x3dd   :  { %4970 = vmatpush3.bf16.msra.mxu0 %v3365_v38  ;;  %4971 = vmatprep.mubr.msk.bf16.mxu0 %vm5307_vm0, %v5306_v1  ;;  %5193 = vrcp.f32 %v3020_v50  ;;  %v3074_v58 = vpack.c.bf16 %v3058_v10, %v3058_v10  ;;  %v3060_v21 = vmul.f32 %v5190_v47, %v6088_v48  ;;  %v3595_v10 = vsel %vm3087_vm2, %v2149_v33, 0 }
 0x3de   :  { %4954 = vmatmul.mubr.msk.bf16.vlgmr.msra.gmra.mxu1 %vm2891_vm3, %v3071_v36  ;;  %4981 = vmatprep.subr.bf16.mxu0 %v5306_v1  ;;  %5195 = vrcp.f32 %v3017_v20  ;;  %v3023_v52 = vpop.xlane.xlu1 %3022  ;;  %v3073_v22 = vpack.c.bf16 %v3057_v29, %v3057_v29 }
 0x3df   :  { %4964 = vmatpush3.bf16.msra.mxu1 %v3319_v3  ;;  %4965 = vmatprep.mubr.msk.bf16.mxu1 %vm5307_vm0, %v5306_v1  ;;  %5197 = vrcp.f32 %v3023_v52  ;;  %v3076_v57 = vpack.c.bf16 %v3060_v21, %v3060_v21 }
 0x3e0   :  { %4975 = vmatprep.subr.bf16.mxu1 %v5306_v1  ;;  %5199 = vrcp.f32 %v6179_v9 }
 0x3e2   :  { %v1585_v0 = vpop.permute.xlu1 %1584 }
 0x3e3   :  { %v1762_v5 = vcombine.low %v6138_v59, %v1585_v0  ;;  %v1763_v48 = vcombine.high %v6138_v59, %v1585_v0  ;;  %v3503_v59 = vsel %vm3087_vm2, %v2147_v44, 0 }
 0x3e4   :  { %4972 = vmatmul.mubr.msk.bf16.vlgmr.msra.gmra.mxu0 %vm2891_vm3, %v3074_v58 }
 0x3e5   :  { %4982 = vmatpush3.bf16.msra.mxu0 %v3457_v2  ;;  %4983 = vmatprep.mubr.msk.bf16.mxu0 %vm5307_vm0, %v5306_v1  ;;  %v1777_v27 = vrot.slane %v1763_v48, %v5480_v60 }
 0x3e6   :  { %4966 = vmatmul.mubr.msk.bf16.vlgmr.msra.gmra.mxu1 %vm2891_vm3, %v3073_v22  ;;  %4993 = vmatprep.subr.bf16.mxu0 %v5306_v1  ;;  %v3029_v8 = vpop.xlane.xlu0 %3028  ;;  %v1591_v31 = vpop.permute.xlu1 %1590 }
 0x3e7   :  { %4976 = vmatpush3.bf16.msra.mxu1 %v3411_v62  ;;  %4977 = vmatprep.mubr.msk.bf16.mxu1 %vm5307_vm0, %v5306_v1  ;;  %5201 = vrcp.f32 %v3029_v8 }
 0x3e8   :  { %4987 = vmatprep.subr.bf16.mxu1 %v5306_v1 }
 0x3e9   :  { %v5192_v26 = vpop.eup %5191 }
 0x3ea   :  { %v3059_v35 = vmul.f32 %v5192_v26, %v6108_v45  ;;  %v5194_v51 = vpop.eup %5193  ;;  %v1579_v49 = vpop.permute.xlu0 %1578  ;;  %v1770_v45 = vrot.slane %v1762_v5, %v5480_v60 }
 0x3eb   :  { %v5196_v50 = vpop.eup %5195  ;;  %v1778_v16 = vcombine.low %v1579_v49, %v1591_v31  ;;  %v1779_v7 = vcombine.high %v1579_v49, %v1591_v31  ;;  %v3062_v53 = vmul.f32 %v5194_v51, %v6097_v19 }
 0x3ec   :  { %v3075_v30 = vpack.c.bf16 %v3059_v35, %v3059_v35  ;;  %4984 = vmatmul.mubr.msk.bf16.vlgmr.msra.gmra.mxu0 %vm2891_vm3, %v3076_v57  ;;  %v3061_v19 = vmul.f32 %v5196_v50, %v6104_v12  ;;  %v5198_v61 = vpop.eup %5197 }
 0x3ed   :  { %4994 = vmatpush3.bf16.msra.mxu0 %v3549_v34  ;;  %4995 = vmatprep.mubr.msk.bf16.mxu0 %vm5307_vm0, %v5306_v1  ;;  %v1786_v14 = vrot.slane %v1778_v16, %v5480_v60  ;;  %v1793_v63 = vrot.slane %v1779_v7, %v5480_v60  ;;  %v3078_v9 = vpack.c.bf16 %v3062_v53, %v3062_v53  ;;  %v5200_v21 = vpop.eup %5199 }
 0x3ee   :  { %4978 = vmatmul.mubr.msk.bf16.vlgmr.msra.gmra.mxu1 %vm2891_vm3, %v3075_v30  ;;  %5005 = vmatprep.subr.bf16.mxu0 %v5306_v1  ;;  %v3077_v36 = vpack.c.bf16 %v3061_v19, %v3061_v19  ;;  %v3063_v39 = vmul.f32 %v5198_v61, %v6114_v32  ;;  %v3064_v44 = vmul.f32 %v5200_v21, %v6102_v55 }
 0x3ef   :  { %4988 = vmatpush3.bf16.msra.mxu1 %v3503_v59  ;;  %4989 = vmatprep.mubr.msk.bf16.mxu1 %vm5307_vm0, %v5306_v1  ;;  %v1826_v43 = vcombine.low %v1770_v45, %v1786_v14  ;;  %v1827_v13 = vcombine.high %v1770_v45, %v1786_v14  ;;  %v1842_v17 = vcombine.low %v1777_v27, %v1793_v63 }
 0x3f0   :  { %4999 = vmatprep.subr.bf16.mxu1 %v5306_v1  ;;  %v1843_v23 = vcombine.high %v1777_v27, %v1793_v63  ;;  %v3079_v18 = vpack.c.bf16 %v3063_v39, %v3063_v39  ;;  %v3080_v49 = vpack.c.bf16 %v3064_v44, %v3064_v44 }
 0x3f1   :  { %v1834_v15 = vrot.slane %v1826_v43, %v5485_v4  ;;  %v1841_v38 = vrot.slane %v1827_v13, %v5485_v4  ;;  %v1850_v24 = vrot.slane %v1842_v17, %v5485_v4 }
 0x3f2   :  { %v1857_v20 = vrot.slane %v1843_v23, %v5485_v4 }
 0x3f3   :  { %v4669_v41 = vcombine.low %v1834_v15, %v1841_v38  ;;  %v4671_v12 = vcombine.high %v1834_v15, %v1841_v38 }
 0x3f4   :  { %4996 = vmatmul.mubr.msk.bf16.vlgmr.msra.gmra.mxu0 %vm2891_vm3, %v3078_v9  ;;  %v4673_v6 = vcombine.low %v1850_v24, %v1857_v20  ;;  %v4675_v3 = vcombine.high %v1850_v24, %v1857_v20  ;;  %v5202_v8 = vpop.eup %5201 }
 0x3f5   :  { %5007 = vmatprep.mubr.msk.bf16.mxu0 %vm5307_vm0, %v5306_v1  ;;  %v2017_v42 = vrot.slane %v4669_v41, %v5480_v60  ;;  %v2033_v52 = vrot.slane %v4671_v12, %v5480_v60  ;;  %v3065_v51 = vmul.f32 %v5202_v8, %v6118_v25 }
 0x3f6   :  { %4990 = vmatmul.mubr.msk.bf16.vlgmr.msra.gmra.mxu1 %vm2891_vm3, %v3077_v36  ;;  %v2049_v29 = vrot.slane %v4673_v6, %v5480_v60  ;;  %v2065_v37 = vrot.slane %v4675_v3, %v5480_v60 }
 0x3f7   :  { %5000 = vmatpush3.bf16.msra.mxu1 %v3595_v10  ;;  %5001 = vmatprep.mubr.msk.bf16.mxu1 %vm5307_vm0, %v5306_v1  ;;  %v2082_v58 = vcombine.low %v2017_v42, %v2033_v52  ;;  %v2083_v47 = vcombine.high %v2017_v42, %v2033_v52  ;;  %v3081_v50 = vpack.c.bf16 %v3065_v51, %v3065_v51 }
 0x3f8   :  { %5011 = vmatprep.subr.bf16.mxu1 %v5306_v1  ;;  %v2114_v56 = vcombine.low %v2049_v29, %v2065_v37  ;;  %v2115_v22 = vcombine.high %v2049_v29, %v2065_v37 }
 0x3f9   :  { %v2090_v2 = vrot.slane %v2082_v58, %v5485_v4  ;;  %v2097_v62 = vrot.slane %v2083_v47, %v5485_v4 }
 0x3fa   :  { %v2122_v54 = vrot.slane %v2114_v56, %v5485_v4  ;;  %v2129_v0 = vrot.slane %v2115_v22, %v5485_v4 }
 0x3fc   :  { %v2134_v46 = vcombine.low %v2090_v2, %v2122_v54  ;;  %v2135_v26 = vcombine.high %v2090_v2, %v2122_v54  ;;  %v2136_v32 = vcombine.low %v2097_v62, %v2129_v0  ;;  %v2137_v5 = vcombine.high %v2097_v62, %v2129_v0 }
 0x3fe   :  { %5002 = vmatmul.mubr.msk.bf16.vlgmr.msra.gmra.mxu1 %vm2891_vm3, %v3079_v18  ;;  %v2150_v35 = vpack.c.bf16 %v2134_v46, %v2134_v46  ;;  %v2151_v57 = vpack.c.bf16 %v2135_v26, %v2135_v26  ;;  %v2152_v30 = vpack.c.bf16 %v2136_v32, %v2136_v32  ;;  %v2153_v34 = vpack.c.bf16 %v2137_v5, %v2137_v5 }
 0x3ff   :  { %5013 = vmatprep.mubr.msk.bf16.mxu1 %vm5307_vm0, %v5306_v1 }
 0x400   :  { %v3641_v48 = vsel %vm3087_vm2, %v2150_v35, 0  ;;  %v3687_v31 = vsel %vm3087_vm2, %v2151_v57, 0  ;;  %v3733_v55 = vsel %vm3087_vm2, %v2152_v30, 0  ;;  %v3779_v25 = vsel %vm3087_vm2, %v2153_v34, 0 }
 0x401   :  { %5006 = vmatpush3.bf16.msra.mxu0 %v3641_v48  ;;  %5012 = vmatpush3.bf16.msra.mxu1 %v3687_v31 }
 0x402   :  { %5017 = vmatprep.subr.bf16.mxu0 %v5306_v1  ;;  %5023 = vmatprep.subr.bf16.mxu1 %v5306_v1 }
 0x404   :  { %5008 = vmatmul.mubr.msk.bf16.vlgmr.msra.gmra.mxu0 %vm2891_vm3, %v3080_v49 }
 0x405   :  { %5018 = vmatpush3.bf16.msra.mxu0 %v3733_v55  ;;  %5019 = vmatprep.mubr.msk.bf16.mxu0 %vm5307_vm0, %v5306_v1 }
 0x406   :  { %5014 = vmatmul.mubr.msk.bf16.vlgmr.msra.gmra.mxu1 %vm2891_vm3, %v3081_v50  ;;  %5029 = vmatprep.subr.bf16.mxu0 %v5306_v1 }
 0x407   :  { %5024 = vmatpush3.bf16.msra.mxu1 %v3779_v25  ;;  %5025 = vmatprep.mubr.msk.bf16.mxu1 %vm5307_vm0, %v5306_v1 }
 0x417   :  { %v3035_v16 = vpop.xlane.xlu1 %3034 }
 0x418   :  { %5203 = vrcp.f32 %v3035_v16 }
 0x41b   :  { %v3032_v7 = vpop.xlane.xlu0 %3031 }
 0x41c   :  { %5205 = vrcp.f32 %v3032_v7 }
 0x425   :  { %v5204_v45 = vpop.eup %5203 }
 0x426   :  { %v3067_v59 = vmul.f32 %v5204_v45, %v6130_v11 }
 0x428   :  { %v3083_v53 = vpack.c.bf16 %v3067_v59, %v3067_v59 }
 0x429   :  { %v5206_v28 = vpop.eup %5205 }
 0x42a   :  { %5026 = vmatmul.mubr.msk.bf16.vlgmr.msra.gmra.mxu1 %vm2891_vm3, %v3083_v53  ;;  %v3066_v27 = vmul.f32 %v5206_v28, %v6134_v40 }
 0x42c   :  { %v3082_v14 = vpack.c.bf16 %v3066_v27, %v3066_v27 }
 0x42e   :  { %5020 = vmatmul.mubr.msk.bf16.vlgmr.msra.gmra.mxu0 %vm2891_vm3, %v3082_v14 }
 0x42f   :  { %5045 = vmatprep.mubr.msk.bf16.mxu0 %vm5307_vm0, %v5306_v1 }
 0x473   :  { %v3125_v63 = vpop.f32.mrf.mxu0 }
 0x475   :  { %v4937_v19 = vpop.f32.mrf.mxu0 }
 0x477   :  { %v3128_v43 = vpop.f32.mrf.mxu0 }
 0x479   :  { %v4938_v13 = vpop.f32.mrf.mxu0 }
 0x48a   :  { %v3171_v17 = vpop.f32.mrf.mxu1 }
 0x48c   :  { %v4943_v23 = vpop.f32.mrf.mxu1 }
 0x48e   :  { %v3174_v9 = vpop.f32.mrf.mxu1 }
 0x490   :  { %v4944_v11 = vpop.f32.mrf.mxu1 }
 0x494   :  { %v3217_v33 = vpop.f32.mrf.mxu0 }
 0x495   :  { %v3821_v40 = vcombine.low %v3125_v63, %v3217_v33  ;;  %v3822_v36 = vcombine.high %v3125_v63, %v3217_v33 }
 0x496   :  { %v4949_v15 = vpop.f32.mrf.mxu0 }
 0x497   :  { %v3829_v42 = vrot.slane %v3821_v40, %v5480_v60  ;;  %v3836_v52 = vrot.slane %v3822_v36, %v5480_v60 }
 0x498   :  { %v3220_v38 = vpop.f32.mrf.mxu0 }
 0x49a   :  { %v4950_v24 = vpop.f32.mrf.mxu0 }
 0x49c   :  { %v3309_v20 = vpop.f32.mrf.mxu0 }
 0x49e   :  { %v3263_v61 = vpop.f32.mrf.mxu1  ;;  %v4961_v41 = vpop.f32.mrf.mxu0 }
 0x49f   :  { %v3837_v12 = vcombine.low %v3171_v17, %v3263_v61  ;;  %v3838_v6 = vcombine.high %v3171_v17, %v3263_v61 }
 0x4a0   :  { %v4955_v3 = vpop.f32.mrf.mxu1  ;;  %v3312_v10 = vpop.f32.mrf.mxu0 }
 0x4a1   :  { %v3845_v29 = vrot.slane %v3837_v12, %v5480_v60  ;;  %v3852_v37 = vrot.slane %v3838_v6, %v5480_v60 }
 0x4a2   :  { %v3266_v39 = vpop.f32.mrf.mxu1  ;;  %v4962_v58 = vpop.f32.mrf.mxu0 }
 0x4a3   :  { %v3885_v56 = vcombine.low %v3829_v42, %v3845_v29  ;;  %v3886_v47 = vcombine.high %v3829_v42, %v3845_v29  ;;  %v3901_v22 = vcombine.low %v3836_v52, %v3852_v37  ;;  %v3902_v2 = vcombine.high %v3836_v52, %v3852_v37 }
 0x4a4   :  { %v4956_v54 = vpop.f32.mrf.mxu1  ;;  %v3401_v62 = vpop.f32.mrf.mxu0 }
 0x4a5   :  { %v3893_v0 = vrot.slane %v3885_v56, %v5485_v4  ;;  %v3900_v21 = vrot.slane %v3886_v47, %v5485_v4  ;;  %v3909_v18 = vrot.slane %v3901_v22, %v5485_v4  ;;  %v3916_v8 = vrot.slane %v3902_v2, %v5485_v4 }
 0x4a6   :  { %v3355_v46 = vpop.f32.mrf.mxu1  ;;  %v3853_v26 = vcombine.low %v3309_v20, %v3401_v62  ;;  %v3854_v32 = vcombine.high %v3309_v20, %v3401_v62  ;;  %v4973_v5 = vpop.f32.mrf.mxu0 }
 0x4a7   :  { %v4708_v35 = vcombine.low %v3893_v0, %v3900_v21  ;;  %v4710_v57 = vcombine.high %v3893_v0, %v3900_v21  ;;  %v4712_v44 = vcombine.low %v3909_v18, %v3916_v8  ;;  %v4714_v51 = vcombine.high %v3909_v18, %v3916_v8 }
 0x4a8   :  { %v4967_v48 = vpop.f32.mrf.mxu1  ;;  %v3404_v31 = vpop.f32.mrf.mxu0  ;;  %v3861_v23 = vrot.slane %v3853_v26, %v5480_v60  ;;  %v3868_v9 = vrot.slane %v3854_v32, %v5480_v60 }
 0x4a9   :  { %v6289_v30 = vrot.slane %v4708_v35, %v5480_v60  ;;  %v6292_v34 = vrot.slane %v4710_v57, %v5480_v60  ;;  %v6295_v49 = vrot.slane %v4712_v44, %v5480_v60  ;;  %v6298_v50 = vrot.slane %v4714_v51, %v5480_v60 }
 0x4aa   :  { %v3358_v55 = vpop.f32.mrf.mxu1  ;;  %v4974_v25 = vpop.f32.mrf.mxu0 }
 0x4ab   :  { %v4157_v16 = vcombine.low %v6289_v30, %v6292_v34  ;;  %v4189_v7 = vcombine.low %v6295_v49, %v6298_v50 }
 0x4ac   :  { %v4968_v45 = vpop.f32.mrf.mxu1  ;;  %v3493_v59 = vpop.f32.mrf.mxu0 }
 0x4ad   :  { %v6305_v53 = vrot.slane %v4157_v16, %v5485_v4  ;;  %v6308_v28 = vrot.slane %v4189_v7, %v5485_v4 }
 0x4ae   :  { %v3447_v27 = vpop.f32.mrf.mxu1  ;;  %v4985_v14 = vpop.f32.mrf.mxu0 }
 0x4af   :  { %v3869_v63 = vcombine.low %v3355_v46, %v3447_v27  ;;  %v3870_v19 = vcombine.high %v3355_v46, %v3447_v27  ;;  %v4221_v43 = vcombine.low %v6305_v53, %v6308_v28 }
 0x4b0   :  { %v4979_v13 = vpop.f32.mrf.mxu1  ;;  %v3496_v17 = vpop.f32.mrf.mxu0 }
 0x4b1   :  { %v3877_v11 = vrot.slane %v3869_v63, %v5480_v60  ;;  %v3884_v33 = vrot.slane %v3870_v19, %v5480_v60 }
 0x4b2   :  { %v3450_v15 = vpop.f32.mrf.mxu1  ;;  %v4986_v38 = vpop.f32.mrf.mxu0 }
 0x4b3   :  { %v3917_v24 = vcombine.low %v3861_v23, %v3877_v11  ;;  %v3918_v20 = vcombine.high %v3861_v23, %v3877_v11  ;;  %v3933_v40 = vcombine.low %v3868_v9, %v3884_v33  ;;  %v3934_v36 = vcombine.high %v3868_v9, %v3884_v33 }
 0x4b4   :  { %v4980_v61 = vpop.f32.mrf.mxu1  ;;  %v3585_v41 = vpop.f32.mrf.mxu0 }
 0x4b5   :  { %v3925_v12 = vrot.slane %v3917_v24, %v5485_v4  ;;  %v3932_v6 = vrot.slane %v3918_v20, %v5485_v4  ;;  %v3941_v3 = vrot.slane %v3933_v40, %v5485_v4  ;;  %v3948_v10 = vrot.slane %v3934_v36, %v5485_v4 }
 0x4b6   :  { %v3539_v42 = vpop.f32.mrf.mxu1  ;;  %v4997_v52 = vpop.f32.mrf.mxu0  ;;  %v3957_v32 = vcombine.low %v3493_v59, %v3585_v41  ;;  %v3958_v5 = vcombine.high %v3493_v59, %v3585_v41  ;;  %v4158_v41 = vcombine.high %v6289_v30, %v6292_v34 }
 0x4b7   :  { %v4709_v29 = vcombine.low %v3925_v12, %v3932_v6  ;;  %v4711_v37 = vcombine.high %v3925_v12, %v3932_v6  ;;  %v4713_v39 = vcombine.low %v3941_v3, %v3948_v10  ;;  %v4715_v58 = vcombine.high %v3941_v3, %v3948_v10 }
 0x4b8   :  { %v4991_v56 = vpop.f32.mrf.mxu1  ;;  %v3588_v47 = vpop.f32.mrf.mxu0  ;;  %v3965_v14 = vrot.slane %v3957_v32, %v5480_v60  ;;  %v3972_v63 = vrot.slane %v3958_v5, %v5480_v60  ;;  %v4190_v12 = vcombine.high %v6295_v49, %v6298_v50  ;;  %v4172_v30 = vrot.slane %v4158_v41, %v5485_v4  ;;  %v5136_v5 = vld [vmem:[#allocation6 + $0x30] sm:$0xff]  }
 0x4b9   :  { %v4108_v22 = vrot.slane %v4709_v29, %v5480_v60  ;;  %v4124_v2 = vrot.slane %v4711_v37, %v5480_v60  ;;  %v4140_v54 = vrot.slane %v4713_v39, %v5480_v60  ;;  %v4156_v62 = vrot.slane %v4715_v58, %v5480_v60 }
 0x4ba   :  { %v3542_v0 = vpop.f32.mrf.mxu1  ;;  %v4998_v21 = vpop.f32.mrf.mxu0  ;;  %v4204_v34 = vrot.slane %v4190_v12, %v5485_v4 }
 0x4bb   :  { %v4173_v18 = vcombine.low %v4108_v22, %v4124_v2  ;;  %v4205_v8 = vcombine.low %v4140_v54, %v4156_v62  ;;  %v4174_v46 = vcombine.high %v4108_v22, %v4124_v2  ;;  %v4206_v26 = vcombine.high %v4140_v54, %v4156_v62  ;;  %v5135_v21 = vld [vmem:[#allocation6 + $0x38] sm:$0xff]  }
 0x4bc   :  { %v4992_v35 = vpop.f32.mrf.mxu1  ;;  %v4223_v32 = vcombine.low %v4172_v30, %v4204_v34  ;;  %5030 = vmatpush3.bf16.msra.mxu0 %v5135_v21 }
 0x4bd   :  { %v6325_v57 = vrot.slane %v4173_v18, %v5485_v4  ;;  %v6328_v44 = vrot.slane %v4205_v8, %v5485_v4  ;;  %v6331_v51 = vrot.slane %v4174_v46, %v5485_v4  ;;  %v6334_v48 = vrot.slane %v4206_v26, %v5485_v4  ;;  %5031 = vmatprep.subr.bf16.mxu0 %v5306_v1 }
 0x4be   :  { %v3631_v31 = vpop.f32.mrf.mxu1 }
 0x4bf   :  { %v3973_v55 = vcombine.low %v3539_v42, %v3631_v31  ;;  %v3974_v25 = vcombine.high %v3539_v42, %v3631_v31  ;;  %v4226_v16 = vcombine.high %v6325_v57, %v6328_v44  ;;  %v4225_v7 = vcombine.low %v6325_v57, %v6328_v44 }
 0x4c0   :  { %v5003_v45 = vpop.f32.mrf.mxu1  ;;  %v4228_v59 = vcombine.high %v6331_v51, %v6334_v48  ;;  %v4227_v27 = vcombine.low %v6331_v51, %v6334_v48  ;;  %v4222_v31 = vcombine.high %v6305_v53, %v6308_v28  ;;  %5032 = vmatpush3.bf16.msra.mxu0 %v5136_v5 }
 0x4c1   :  { %v3981_v19 = vrot.slane %v3973_v55, %v5480_v60  ;;  %v3988_v13 = vrot.slane %v3974_v25, %v5480_v60  ;;  %5033 = vmatprep.subr.bf16.mxu0 %v5306_v1 }
 0x4c2   :  { %v3634_v17 = vpop.f32.mrf.mxu1 }
 0x4c3   :  { %v4021_v23 = vcombine.low %v3965_v14, %v3981_v19  ;;  %v4022_v9 = vcombine.high %v3965_v14, %v3981_v19  ;;  %v4037_v11 = vcombine.low %v3972_v63, %v3988_v13  ;;  %v4038_v33 = vcombine.high %v3972_v63, %v3988_v13  ;;  %v5137_v19 = vld [vmem:[#allocation6 + $0x28] sm:$0xff]  }
 0x4c4   :  { %v5004_v15 = vpop.f32.mrf.mxu1  ;;  %v6352_v36 = vpop.f32.mrf.mxu0  ;;  %v4224_v13 = vcombine.high %v4172_v30, %v4204_v34  ;;  %5034 = vmatpush3.bf16.msra.mxu0 %v5137_v19 }
 0x4c5   :  { %v4029_v38 = vrot.slane %v4021_v23, %v5485_v4  ;;  %v4036_v24 = vrot.slane %v4022_v9, %v5485_v4  ;;  %v4045_v20 = vrot.slane %v4037_v11, %v5485_v4  ;;  %v4052_v40 = vrot.slane %v4038_v33, %v5485_v4  ;;  %v5138_v23 = vld [vmem:[#allocation6 + $0x20] sm:$0xff]   ;;  %5035 = vmatprep.subr.bf16.mxu0 %v5306_v1  ;;  %v5139_v9 = vld [vmem:[#allocation6 + $0x18] sm:$0xff]   ;;  %v5140_v11 = vld [vmem:[#allocation6 + $0x10] sm:$0xff]  }
 0x4c6   :  { %v6354_v61 = vpop.f32.mrf.mxu1  ;;  %v5009_v52 = vpop.f32.mrf.mxu0 }
 0x4c7   :  { %v4716_v6 = vcombine.low %v4029_v38, %v4036_v24  ;;  %v4718_v3 = vcombine.high %v4029_v38, %v4036_v24  ;;  %v4720_v10 = vcombine.low %v4045_v20, %v4052_v40  ;;  %v4722_v42 = vcombine.high %v4045_v20, %v4052_v40 }
 0x4c8   :  { %v5015_v29 = vpop.f32.mrf.mxu1  ;;  %v3680_v47 = vpop.f32.mrf.mxu0  ;;  %5036 = vmatpush3.bf16.msra.mxu0 %v5138_v23 }
 0x4c9   :  { %v4237_v37 = vrot.slane %v4716_v6, %v5480_v60  ;;  %v4253_v39 = vrot.slane %v4718_v3, %v5480_v60  ;;  %v4269_v58 = vrot.slane %v4720_v10, %v5480_v60  ;;  %v4285_v56 = vrot.slane %v4722_v42, %v5480_v60  ;;  %5037 = vmatprep.subr.bf16.mxu0 %v5306_v1 }
 0x4ca   :  { %v3726_v22 = vpop.f32.mrf.mxu1  ;;  %v5010_v49 = vpop.f32.mrf.mxu0 }
 0x4cb   :  { %v4294_v50 = vcombine.high %v4237_v37, %v4253_v39  ;;  %v4326_v2 = vcombine.high %v4269_v58, %v4285_v56  ;;  %v4293_v54 = vcombine.low %v4237_v37, %v4253_v39  ;;  %v4325_v62 = vcombine.low %v4269_v58, %v4285_v56 }
 0x4cc   :  { %v5016_v0 = vpop.f32.mrf.mxu1  ;;  %5038 = vmatpush3.bf16.msra.mxu0 %v5139_v9 }
 0x4cd   :  { %v4308_v18 = vrot.slane %v4294_v50, %v5485_v4  ;;  %v4340_v8 = vrot.slane %v4326_v2, %v5485_v4  ;;  %v6369_v46 = vrot.slane %v4293_v54, %v5485_v4  ;;  %v6372_v26 = vrot.slane %v4325_v62, %v5485_v4  ;;  %5039 = vmatprep.subr.bf16.mxu0 %v5306_v1  ;;  %v5141_v62 = vld [vmem:[#allocation6 + $0x8] sm:$0xff]  }
 0x4cf   :  { %v4359_v35 = vcombine.low %v4308_v18, %v4340_v8  ;;  %v4358_v55 = vcombine.high %v6369_v46, %v6372_v26  ;;  %v4357_v25 = vcombine.low %v6369_v46, %v6372_v26  ;;  %v4360_v63 = vcombine.high %v4308_v18, %v4340_v8 }
 0x4d0   :  { %5040 = vmatpush3.bf16.msra.mxu0 %v5140_v11 }
 0x4d1   :  { %v5073_v45 = vpack.i.bf16 %v4359_v35, %v4223_v32  ;;  %v5068_v14 = vpack.i.bf16 %v4358_v55, %v4222_v31  ;;  %v5078_v17 = vpack.i.bf16 %v4360_v63, %v4224_v13  ;;  %5041 = vmatprep.subr.bf16.mxu0 %v5306_v1  ;;  %v5142_v55 = vld [vmem:[#allocation6] sm:$0xff]  }
 0x4d3   :  { %5074 = vrot.lane.b32.xlu1 %v5073_v45, %s5312_s30  ;;  %5069 = vrot.lane.b32.xlu0 %v5068_v14, %s5313_s8 }
 0x4d4   :  { %5042 = vmatpush3.bf16.msra.mxu0 %v5141_v62 }
 0x4d5   :  { %5043 = vmatprep.subr.bf16.mxu0 %v5306_v1 }
 0x4d7   :  { %5079 = vrot.lane.b32.xlu0 %v5078_v17, %s5311_s29 }
 0x4d8   :  { %5044 = vmatpush3.bf16.msra.mxu0 %v5142_v55 }
 0x4ea   :  { %v3815_v33 = vpop.f32.mrf.mxu1 }
 0x4eb   :  { %v4005_v38 = vcombine.low %v6354_v61, %v3815_v33  ;;  %v4006_v24 = vcombine.high %v6354_v61, %v3815_v33 }
 0x4ec   :  { %v5027_v15 = vpop.f32.mrf.mxu1 }
 0x4ed   :  { %v4013_v10 = vrot.slane %v4005_v38, %v5480_v60  ;;  %v4020_v42 = vrot.slane %v4006_v24, %v5480_v60 }
 0x4ee   :  { %v3769_v20 = vpop.f32.mrf.mxu0  ;;  %v3818_v40 = vpop.f32.mrf.mxu1 }
 0x4ef   :  { %v3989_v41 = vcombine.low %v6352_v36, %v3769_v20  ;;  %v3990_v12 = vcombine.high %v6352_v36, %v3769_v20 }
 0x4f0   :  { %v5021_v6 = vpop.f32.mrf.mxu0  ;;  %v5028_v3 = vpop.f32.mrf.mxu1 }
 0x4f1   :  { %v3997_v52 = vrot.slane %v3989_v41, %v5480_v60  ;;  %v4004_v29 = vrot.slane %v3990_v12, %v5480_v60 }
 0x4f2   :  { %v3772_v37 = vpop.f32.mrf.mxu0 }
 0x4f3   :  { %v4053_v39 = vcombine.low %v3997_v52, %v4013_v10  ;;  %v4054_v58 = vcombine.high %v3997_v52, %v4013_v10  ;;  %v4069_v61 = vcombine.low %v4004_v29, %v4020_v42  ;;  %v4070_v56 = vcombine.high %v4004_v29, %v4020_v42 }
 0x4f4   :  { %v5022_v47 = vpop.f32.mrf.mxu0 }
 0x4f5   :  { %v4061_v22 = vrot.slane %v4053_v39, %v5485_v4  ;;  %v4068_v36 = vrot.slane %v4054_v58, %v5485_v4  ;;  %v4077_v30 = vrot.slane %v4069_v61, %v5485_v4  ;;  %v4084_v34 = vrot.slane %v4070_v56, %v5485_v4 }
 0x4f7   :  { %v4717_v49 = vcombine.low %v4061_v22, %v4068_v36  ;;  %v4719_v50 = vcombine.high %v4061_v22, %v4068_v36  ;;  %v4721_v2 = vcombine.low %v4077_v30, %v4084_v34  ;;  %v4723_v54 = vcombine.high %v4077_v30, %v4084_v34  ;;  %v4724_v30 = vld [vmem:[%s6450_s4] ss:$0 sm:$0xff] }
 0x4f9   :  { %v4244_v0 = vrot.slane %v4717_v49, %v5480_v60  ;;  %v4260_v21 = vrot.slane %v4719_v50, %v5480_v60  ;;  %v4276_v18 = vrot.slane %v4721_v2, %v5480_v60  ;;  %v4292_v8 = vrot.slane %v4723_v54, %v5480_v60 }
 0x4fb   :  { %v4309_v32 = vcombine.low %v4244_v0, %v4260_v21  ;;  %v4341_v5 = vcombine.low %v4276_v18, %v4292_v8  ;;  %v4310_v35 = vcombine.high %v4244_v0, %v4260_v21  ;;  %v4342_v31 = vcombine.high %v4276_v18, %v4292_v8 }
 0x4fd   :  { %v4317_v45 = vrot.slane %v4309_v32, %v5485_v4  ;;  %v4349_v14 = vrot.slane %v4341_v5, %v5485_v4  ;;  %v4324_v63 = vrot.slane %v4310_v35, %v5485_v4  ;;  %v4356_v19 = vrot.slane %v4342_v31, %v5485_v4 }
 0x4ff   :  { %v4362_v13 = vcombine.high %v4317_v45, %v4349_v14  ;;  %v4361_v17 = vcombine.low %v4317_v45, %v4349_v14  ;;  %v4364_v23 = vcombine.high %v4324_v63, %v4356_v19  ;;  %v4363_v9 = vcombine.low %v4324_v63, %v4356_v19 }
 0x501   :  { %v5088_v60 = vpack.i.bf16 %v4362_v13, %v4226_v16  ;;  %v5083_v1 = vpack.i.bf16 %v4361_v17, %v4225_v7  ;;  %v5098_v4 = vpack.i.bf16 %v4364_v23, %v4228_v59  ;;  %v5093_v11 = vpack.i.bf16 %v4363_v9, %v4227_v27  ;;  %v4734_v23 = vld [vmem:[#allocation7] ss:$0 sm:$0xff] }
 0x503   :  { %5089 = vrot.lane.b32.xlu0 %v5088_v60, %s5308_s0  ;;  %5084 = vrot.lane.b32.xlu1 %v5083_v1, %s5302_s2  ;;  %v4733_v60 = vld [vmem:[%s6451_s5] ss:$0 sm:$0xff] }
 0x507   :  { %5099 = vrot.lane.b32.xlu0 %v5098_v4, %s5309_s27  ;;  %5094 = vrot.lane.b32.xlu1 %v5093_v11, %s5310_s28 }
 0x545   :  { %v5070_v57 = vpop.permute.xlu0 %5069  ;;  %v5075_v7 = vpop.permute.xlu1 %5074 }
 0x546   :  { %v5072_v44 = vunpack.i.h.bf16 %v5070_v57  ;;  %v5071_v16 = vunpack.i.l.bf16 %v5070_v57  ;;  %v5077_v15 = vunpack.i.h.bf16 %v5075_v7  ;;  %v5076_v38 = vunpack.i.l.bf16 %v5075_v7 }
 0x548   :  { %v4421_v59 = vsel %vm2154_vm1, %v4221_v43, %v5071_v16  ;;  %v4422_v51 = vsel %vm2154_vm1, %v4357_v25, %v5072_v44 }
 0x549   :  { %v5080_v33 = vpop.permute.xlu0 %5079  ;;  %v4425_v40 = vsel %vm4423_vm4, %v4422_v51, %v5077_v15  ;;  %v4424_v41 = vsel %vm4423_vm4, %v4421_v59, %v5076_v38 }
 0x54a   :  { %v5082_v48 = vunpack.i.h.bf16 %v5080_v33  ;;  %v5081_v27 = vunpack.i.l.bf16 %v5080_v33 }
 0x54c   :  { %v4427_v3 = vsel %vm4426_vm5, %v4424_v41, %v5081_v27  ;;  %v4428_v10 = vsel %vm4426_vm5, %v4425_v40, %v5082_v48 }
 0x575   :  { %v5090_v24 = vpop.permute.xlu0 %5089  ;;  %v5085_v20 = vpop.permute.xlu1 %5084 }
 0x576   :  { %v5087_v12 = vunpack.i.h.bf16 %v5085_v20  ;;  %v5086_v6 = vunpack.i.l.bf16 %v5085_v20  ;;  %v5092_v53 = vunpack.i.h.bf16 %v5090_v24  ;;  %v5091_v28 = vunpack.i.l.bf16 %v5090_v24 }
 0x578   :  { %v4430_v43 = vsel %vm4429_vm6, %v4427_v3, %v5086_v6  ;;  %v4431_v42 = vsel %vm4429_vm6, %v4428_v10, %v5087_v12 }
 0x579   :  { %v5100_v46 = vpop.permute.xlu0 %5099  ;;  %v5095_v26 = vpop.permute.xlu1 %5094  ;;  %v4433_v39 = vsel %vm4432_vm7, %v4430_v43, %v5091_v28  ;;  %v4434_v58 = vsel %vm4432_vm7, %v4431_v42, %v5092_v53 }
 0x57a   :  { %v5102_v25 = vunpack.i.h.bf16 %v5100_v46  ;;  %v5101_v52 = vunpack.i.l.bf16 %v5100_v46  ;;  %v5097_v29 = vunpack.i.h.bf16 %v5095_v26  ;;  %v5096_v37 = vunpack.i.l.bf16 %v5095_v26 }
 0x57c   :  { %v4436_v61 = vsel %vm4435_vm8, %v4433_v39, %v5096_v37  ;;  %v4437_v56 = vsel %vm4435_vm8, %v4434_v58, %v5097_v29 }
 0x57d   :  { %v4439_v47 = vsel %vm4438_vm9, %v4436_v61, %v5101_v52  ;;  %v4440_v22 = vsel %vm4438_vm9, %v4437_v56, %v5102_v25 }
 0x57e   :  { %v4441_v36 = vpack.c.bf16 %v4440_v22, %v4439_v47 }
 0x580   :  { %5046 = vmatmul.mubr.bf16.vlgmr.msra.gmra.mxu0 %v4441_v36 }
 0x640   :  { %v4547_v34 = vpop.f32.mrf.mxu0 }
 0x641   :  { %v4548_v49 = vadd.f32 %v4724_v30, %v4547_v34 }
 0x642   :  { %v5047_v50 = vpop.f32.mrf.mxu0 }
 0x643   :  { %4554 = vadd.xlane.f32.xlu1 %v4548_v49 }
 0x644   :  { %v4550_v2 = vpop.f32.mrf.mxu0 }
 0x645   :  { %v4551_v54 = vadd.f32 %v4724_v30, %v4550_v2 }
 0x646   :  { %v5048_v62 = vpop.f32.mrf.mxu0 }
 0x647   :  { %4556 = vadd.xlane.f32.xlu0 %v4551_v54 }
 0x6cc   :  { %v4555_v0 = vpop.xlane.xlu1 %4554 }
 0x6cd   :  { %v4559_v21 = vmul.f32 0.0078125, %v4555_v0 }
 0x6cf   :  { %v4561_v18 = vsub.f32 %v4548_v49, %v4559_v21 }
 0x6d0   :  { %v4557_v8 = vpop.xlane.xlu0 %4556 }
 0x6d1   :  { %v4560_v32 = vmul.f32 0.0078125, %v4557_v8  ;;  %v4563_v5 = vmul.f32 %v4561_v18, %v4561_v18 }
 0x6d3   :  { %v4562_v35 = vsub.f32 %v4551_v54, %v4560_v32  ;;  %4565 = vadd.xlane.f32.xlu0 %v4563_v5 }
 0x6d5   :  { %v4564_v31 = vmul.f32 %v4562_v35, %v4562_v35 }
 0x6d7   :  { %4567 = vadd.xlane.f32.xlu1 %v4564_v31 }
 0x75c   :  { %v4566_v55 = vpop.xlane.xlu0 %4565 }
 0x75d   :  { %v4569_v45 = vmul.f32 0.0078125, %v4566_v55 }
 0x75f   :  { %v4571_v14 = vadd.f32 1e-05, %v4569_v45 }
 0x760   :  { %v4568_v63 = vpop.xlane.xlu1 %4567 }
 0x761   :  { %5207 = vrsqrt.f32 %v4571_v14  ;;  %v4570_v19 = vmul.f32 0.0078125, %v4568_v63 }
 0x763   :  { %v4572_v13 = vadd.f32 1e-05, %v4570_v19 }
 0x765   :  { %5209 = vrsqrt.f32 %v4572_v13 }
 0x76e   :  { %v5208_v17 = vpop.eup %5207 }
 0x76f   :  { %v4575_v1 = vmul.f32 %v5208_v17, %v4561_v18 }
 0x771   :  { %v4584_v9 = vmul.f32 %v4733_v60, %v4575_v1 }
 0x772   :  { %v5210_v4 = vpop.eup %5209 }
 0x773   :  { %v4593_v11 = vadd.f32 %v4734_v23, %v4584_v9  ;;  %v4576_v57 = vmul.f32 %v5210_v4, %v4562_v35 }
 0x775   :  { %4595 = vst [vmem:[%s6453_s7] sm:$0xff] %v4593_v11  ;;  %v4585_v44 = vmul.f32 %v4733_v60, %v4576_v57 }
 0x777   :  { %v4594_v16 = vadd.f32 %v4734_v23, %v4585_v44 }
 0x779   :  { %4596 = vst [vmem:[%s6453_s7 + $0x8] sm:$0xff] %v4594_v16 }
 0x77a   :  { %4601 = vsyncpa [#allocation3], 1 }
 0x77b   :  { %4602 = vsyncpa [#allocation5], 1 }
 0x77c   :  { %4603 = vsyncpa [#allocation8], 1 }

</bundles_post_ra>
